<compile_context>
chip_gen: v6e
topology: v6e:2x2x1
jax: 0.10.0
libtpu: 0.0.40
codegen_flags: <defaults>
</compile_context>

<pallas_src>
import functools
import math

import jax
import jax.numpy as jnp
from jax import lax
from jax.experimental import pallas as pl
from jax.experimental.pallas import tpu as pltpu

LN_EPS = 1e-5
LANE = 128


def _round_up(x, m):
    return (x + m - 1) // m * m


def _layernorm(x, gamma, beta, d_real, d_pad):
    # Padding-aware LayerNorm.  Columns >= d_real of `x` are exactly zero by
    # construction, so stats over the real d_real features are recovered exactly:
    #   mu  = sum(x) / d_real
    #   var = (sum((x-mu)^2) - (d_pad-d_real)*mu^2) / d_real
    mu = jnp.sum(x, axis=-1, keepdims=True) * (1.0 / d_real)
    xc = x - mu
    ss = jnp.sum(xc * xc, axis=-1, keepdims=True)
    var = (ss - float(d_pad - d_real) * mu * mu) * (1.0 / d_real)
    return xc * lax.rsqrt(var + LN_EPS) * gamma + beta


def decoder_kernel(tgt_ref, mem_ref,
                   sa_wqkv_ref, sa_bqkv_ref, sa_wo_ref, sa_bo_ref,
                   ca_wq_ref, ca_bq_ref, ca_wkv_ref, ca_bkv_ref,
                   ca_wo_ref, ca_bo_ref,
                   w1_ref, b1_ref, w2_ref, b2_ref,
                   ln_g_ref, ln_b_ref,
                   out_ref,
                   *, nhead, num_layers, s_tgt, s_mem, d_real, d_pad, hd_p):
    f32, bf16 = jnp.float32, jnp.bfloat16

    # ---- weights: loaded once, resident across the whole layer loop ----
    sa_wqkv, sa_bqkv = sa_wqkv_ref[...], sa_bqkv_ref[...]
    sa_wo, sa_bo = sa_wo_ref[...], sa_bo_ref[...]
    ca_wq, ca_bq = ca_wq_ref[...], ca_bq_ref[...]
    ca_wkv, ca_bkv = ca_wkv_ref[...], ca_bkv_ref[...]
    ca_wo, ca_bo = ca_wo_ref[...], ca_bo_ref[...]
    w1, b1, w2, b2 = w1_ref[...], b1_ref[...], w2_ref[...], b2_ref[...]
    ln_g, ln_b = ln_g_ref[...], ln_b_ref[...]

    # ---- layer-invariant prep, hoisted out of the layer loop ----
    g1, g2, g3, g4 = ln_g[0:1, :], ln_g[1:2, :], ln_g[2:3, :], ln_g[3:4, :]
    e1, e2, e3, e4 = ln_b[0:1, :], ln_b[1:2, :], ln_b[2:3, :], ln_b[3:4, :]

    def to_heads(x2, s):
        # (s, d_pad) -> (nhead, s, hd_p); minor dim preserved.
        return jnp.transpose(x2.reshape(s, nhead, hd_p), (1, 0, 2))

    def from_heads(x3, s):
        # (nhead, s, hd_p) -> (s, d_pad)
        return jnp.transpose(x3, (1, 0, 2)).reshape(s, d_pad)

    x = tgt_ref[...].astype(f32)      # (s_tgt, d_pad) residual stream, f32
    mem = mem_ref[...].astype(f32)    # (s_mem, d_pad)

    # Cross-attention K/V of memory are identical for every layer (shared
    # weights, memory never changes) -> compute, cast and re-layout them once.
    kv_mem = jnp.dot(mem.astype(bf16), ca_wkv,
                     preferred_element_type=f32) + ca_bkv
    k_mem_h = to_heads(kv_mem[:, :d_pad], s_mem).astype(bf16)
    v_mem_h = to_heads(kv_mem[:, d_pad:], s_mem).astype(bf16)

    ln = functools.partial(_layernorm, d_real=d_real, d_pad=d_pad)

    def mha(q, k_h, v_h, wo, bo, s_q):
        # q: (s_q, d_pad) f32 (1/sqrt(hd) already folded into its projection),
        # k_h / v_h: (nhead, s_kv, hd_p) bf16.  Returns (s_q, d_pad) f32.
        q_h = to_heads(q, s_q).astype(bf16)
        s = jnp.einsum('hqd,hkd->hqk', q_h, k_h, preferred_element_type=f32)
        s = s - jnp.max(s, axis=-1, keepdims=True)
        p = jnp.exp(s)
        p = p * pl.reciprocal(jnp.sum(p, axis=-1, keepdims=True), approx=True)
        ctx = jnp.einsum('hqk,hkd->hqd', p.astype(bf16), v_h,
                         preferred_element_type=f32)
        # ONE (d_pad, d_pad) output projection over all heads.
        return jnp.dot(from_heads(ctx, s_q).astype(bf16), wo,
                       preferred_element_type=f32) + bo

    def layer(_, x):
        # --- self attention + residual + norm1 ---
        xb = x.astype(bf16)                       # one cast, reused for q/k/v
        qkv = jnp.dot(xb, sa_wqkv, preferred_element_type=f32) + sa_bqkv
        k_h = to_heads(qkv[:, d_pad:2 * d_pad], s_tgt).astype(bf16)
        v_h = to_heads(qkv[:, 2 * d_pad:], s_tgt).astype(bf16)
        x = ln(x + mha(qkv[:, :d_pad], k_h, v_h, sa_wo, sa_bo, s_tgt), g1, e1)
        # --- cross attention (q from tgt, K/V precomputed) + residual + norm2 ---
        qc = jnp.dot(x.astype(bf16), ca_wq, preferred_element_type=f32) + ca_bq
        x = ln(x + mha(qc, k_mem_h, v_mem_h, ca_wo, ca_bo, s_tgt), g2, e2)
        # --- feed-forward (ReLU) + residual + norm3 ---
        h = jnp.maximum(
            jnp.dot(x.astype(bf16), w1, preferred_element_type=f32) + b1, 0.0)
        ff = jnp.dot(h.astype(bf16), w2, preferred_element_type=f32) + b2
        return ln(x + ff, g3, e3)

    # Shared-weight layer stack; unrolled (small static depth) so the LLO
    # scheduler can overlap MXU pushes with VPU/XLU work across layer bounds.
    x = lax.fori_loop(0, num_layers, layer, x, unroll=True)

    # Final Decoder LayerNorm, fused into the same kernel.
    out_ref[...] = ln(x, g4, e4).astype(out_ref.dtype)


def decoder_call(tgt2, mem2, kp, *, nhead, num_layers, batch, s_tgt, s_mem,
                 d_real, d_pad):
    hd_p = d_pad // nhead
    n_rows = batch * s_tgt

    args = (tgt2, mem2,
            kp["sa_wqkv"], kp["sa_bqkv"], kp["sa_wo"], kp["sa_bo"],
            kp["ca_wq"], kp["ca_bq"], kp["ca_wkv"], kp["ca_bkv"],
            kp["ca_wo"], kp["ca_bo"],
            kp["w1"], kp["b1"], kp["w2"], kp["b2"],
            kp["ln_g"], kp["ln_b"])

    def weight_spec(a):
        # Full-array block, block index constant -> fetched once, stays resident.
        return pl.BlockSpec(a.shape, lambda b: (0, 0))

    in_specs = ([pl.BlockSpec((s_tgt, d_pad), lambda b: (b, 0)),
                 pl.BlockSpec((s_mem, d_pad), lambda b: (b, 0))]
                + [weight_spec(a) for a in args[2:]])
    out_specs = pl.BlockSpec((s_tgt, d_pad), lambda b: (b, 0))

    kernel = functools.partial(decoder_kernel, nhead=nhead,
                               num_layers=num_layers, s_tgt=s_tgt,
                               s_mem=s_mem, d_real=d_real, d_pad=d_pad,
                               hd_p=hd_p)
    # Everything fits easily in VMEM at these sizes; grid over batch gives the
    # two v7x TensorCores independent work (neutral on v5e/v6e single-TC chips).
    return pl.pallas_call(
        kernel,
        out_shape=jax.ShapeDtypeStruct((n_rows, d_pad), jnp.float32),
        grid=(batch,),
        in_specs=in_specs,
        out_specs=out_specs,
        compiler_params=pltpu.CompilerParams(
            dimension_semantics=("parallel",)),
    )(*args)


def init_params(key, d_model, nhead, dim_ff):
    """Raw parameters in the PyTorch-like layout (packed in-projections),
    pre-transposed so the kernel computes x @ W."""
    ks = jax.random.split(key, 12)
    sc = lambda fan_in: 1.0 / math.sqrt(fan_in)
    u = lambda k, shape, s: jax.random.uniform(k, shape, jnp.float32, -s, s)
    return {
        "sa_in_w": u(ks[0], (d_model, 3 * d_model), sc(d_model)),
        "sa_in_b": u(ks[1], (1, 3 * d_model), sc(d_model)),
        "sa_out_w": u(ks[2], (d_model, d_model), sc(d_model)),
        "sa_out_b": u(ks[3], (1, d_model), sc(d_model)),
        "ca_in_w": u(ks[4], (d_model, 3 * d_model), sc(d_model)),
        "ca_in_b": u(ks[5], (1, 3 * d_model), sc(d_model)),
        "ca_out_w": u(ks[6], (d_model, d_model), sc(d_model)),
        "ca_out_b": u(ks[7], (1, d_model), sc(d_model)),
        "w1": u(ks[8], (d_model, dim_ff), sc(d_model)),
        "b1": u(ks[9], (1, dim_ff), sc(d_model)),
        "w2": u(ks[10], (dim_ff, d_model), sc(dim_ff)),
        "b2": u(ks[11], (1, d_model), sc(dim_ff)),
        "ln_g": jnp.ones((3, d_model), jnp.float32),   # norm1/2/3 gammas
        "ln_b": jnp.zeros((3, d_model), jnp.float32),  # norm1/2/3 betas
        "final_g": jnp.ones((1, d_model), jnp.float32),
        "final_b": jnp.zeros((1, d_model), jnp.float32),
    }


def prepare_params(p, d_model, nhead):
    """Kernel-ready params: lane-dense zero-padding (d_model -> d_pad, dim_ff ->
    f_pad, per-head padding of q/k/v/ctx features), packed q/k/v weight with the
    1/sqrt(head_dim) scale folded into the q third, matmul weights in bf16,
    biases / LayerNorm params in f32, all four LayerNorms stacked."""
    D = d_model
    hd = D // nhead
    dim_ff = p["w1"].shape[1]

    d_pad = _round_up(D, LANE)
    while d_pad % nhead != 0 or d_pad // nhead < hd:
        d_pad += LANE
    hd_p = d_pad // nhead
    f_pad = _round_up(dim_ff, LANE)

    scale = 1.0 / math.sqrt(hd)
    bf, f32 = jnp.bfloat16, jnp.float32

    def pad_cols_end(a, n):
        return jnp.pad(a, ((0, 0), (0, n - a.shape[1])))

    def pad_rows_end(a, n):
        return jnp.pad(a, ((0, n - a.shape[0]), (0, 0)))

    def pad_cols_heads(a):
        # (r, D) -> (r, d_pad): each head's hd columns padded to hd_p.
        r = a.shape[0]
        a3 = jnp.pad(a.reshape(r, nhead, hd), ((0, 0), (0, 0), (0, hd_p - hd)))
        return a3.reshape(r, nhead * hd_p)

    def pad_rows_heads(a):
        # (D, c) -> (d_pad, c): head-concatenated input rows padded per head.
        c = a.shape[1]
        a3 = jnp.pad(a.reshape(nhead, hd, c), ((0, 0), (0, hd_p - hd), (0, 0)))
        return a3.reshape(nhead * hd_p, c)

    def in_proj(w, b, n_chunks, fold_scale_into_q):
        ws, bs = [], []
        for i in range(n_chunks):
            wi = w[:, i * D:(i + 1) * D]
            bi = b[:, i * D:(i + 1) * D]
            if fold_scale_into_q and i == 0:
                wi = wi * scale
                bi = bi * scale
            ws.append(pad_rows_end(pad_cols_heads(wi), d_pad))
            bs.append(pad_cols_heads(bi))
        return (jnp.concatenate(ws, axis=1).astype(bf),
                jnp.concatenate(bs, axis=1).astype(f32))

    def out_proj(w, b):
        return (pad_cols_end(pad_rows_heads(w), d_pad).astype(bf),
                pad_cols_end(b, d_pad).astype(f32))

    sa_wqkv, sa_bqkv = in_proj(p["sa_in_w"], p["sa_in_b"], 3, True)
    sa_wo, sa_bo = out_proj(p["sa_out_w"], p["sa_out_b"])
    ca_wq, ca_bq = in_proj(p["ca_in_w"][:, :D], p["ca_in_b"][:, :D], 1, True)
    ca_wkv, ca_bkv = in_proj(p["ca_in_w"][:, D:], p["ca_in_b"][:, D:], 2, False)
    ca_wo, ca_bo = out_proj(p["ca_out_w"], p["ca_out_b"])

    kp = {
        "sa_wqkv": sa_wqkv, "sa_bqkv": sa_bqkv, "sa_wo": sa_wo, "sa_bo": sa_bo,
        "ca_wq": ca_wq, "ca_bq": ca_bq, "ca_wkv": ca_wkv, "ca_bkv": ca_bkv,
        "ca_wo": ca_wo, "ca_bo": ca_bo,
        "w1": pad_cols_end(pad_rows_end(p["w1"], d_pad), f_pad).astype(bf),
        "b1": pad_cols_end(p["b1"], f_pad).astype(f32),
        "w2": pad_cols_end(pad_rows_end(p["w2"], f_pad), d_pad).astype(bf),
        "b2": pad_cols_end(p["b2"], d_pad).astype(f32),
        "ln_g": pad_cols_end(jnp.concatenate([p["ln_g"], p["final_g"]], 0),
                             d_pad).astype(f32),
        "ln_b": pad_cols_end(jnp.concatenate([p["ln_b"], p["final_b"]], 0),
                             d_pad).astype(f32),
    }
    return kp, d_pad


def decoder_forward(tgt, memory, params, num_layers, nhead):
    B, S, D = tgt.shape
    _, M, _ = memory.shape
    kp, d_pad = prepare_params(params, D, nhead)
    tgt2 = jnp.pad(tgt.reshape(B * S, D).astype(jnp.float32),
                   ((0, 0), (0, d_pad - D)))
    mem2 = jnp.pad(memory.reshape(B * M, D).astype(jnp.float32),
                   ((0, 0), (0, d_pad - D)))
    out = decoder_call(tgt2, mem2, kp, nhead=nhead, num_layers=num_layers,
                       batch=B, s_tgt=S, s_mem=M, d_real=D, d_pad=d_pad)
    return out[:, :D].reshape(B, S, D)


if __name__ == "__main__":
    B, S_TGT, S_MEM = 2, 8, 8
    D_MODEL, NHEAD, DIM_FF = 32, 4, 64
    NUM_LAYERS = 2

    root = jax.random.PRNGKey(0)
    k_tgt, k_mem, k_par = jax.random.split(root, 3)

    tgt = jax.random.normal(k_tgt, (B, S_TGT, D_MODEL), jnp.float32)
    memory = jax.random.normal(k_mem, (B, S_MEM, D_MODEL), jnp.float32)
    params = init_params(k_par, D_MODEL, NHEAD, DIM_FF)

    out = decoder_forward(tgt, memory, params, NUM_LAYERS, NHEAD)
    out = jax.block_until_ready(out)

    assert out.shape == (B, S_TGT, D_MODEL)
    assert bool(jnp.all(jnp.isfinite(out)))
    print("KERNEL_OK")
</pallas_src>

<mosaic_0001>
module attributes {stable_mosaic.version = 11 : i64} {
  func.func @decoder_kernel(%arg0: i32, %arg1: memref<8x128xf32, #tpu.memory_space<vmem>>, %arg2: memref<8x128xf32, #tpu.memory_space<vmem>>, %arg3: memref<128x384xbf16, #tpu.memory_space<vmem>>, %arg4: memref<1x384xf32, #tpu.memory_space<vmem>>, %arg5: memref<128x128xbf16, #tpu.memory_space<vmem>>, %arg6: memref<1x128xf32, #tpu.memory_space<vmem>>, %arg7: memref<128x128xbf16, #tpu.memory_space<vmem>>, %arg8: memref<1x128xf32, #tpu.memory_space<vmem>>, %arg9: memref<128x256xbf16, #tpu.memory_space<vmem>>, %arg10: memref<1x256xf32, #tpu.memory_space<vmem>>, %arg11: memref<128x128xbf16, #tpu.memory_space<vmem>>, %arg12: memref<1x128xf32, #tpu.memory_space<vmem>>, %arg13: memref<128x128xbf16, #tpu.memory_space<vmem>>, %arg14: memref<1x128xf32, #tpu.memory_space<vmem>>, %arg15: memref<128x128xbf16, #tpu.memory_space<vmem>>, %arg16: memref<1x128xf32, #tpu.memory_space<vmem>>, %arg17: memref<4x128xf32, #tpu.memory_space<vmem>>, %arg18: memref<4x128xf32, #tpu.memory_space<vmem>>, %arg19: memref<8x128xf32, #tpu.memory_space<vmem>>) attributes {dimension_semantics = [#tpu.dimension_semantics<parallel>], iteration_bounds = array<i64: 2>, scalar_prefetch = 0 : i64, scratch_operands = 0 : i64, tpu.core_type = #tpu.core_type<tc>, window_params = [{transform_indices = @transform_0, window_bounds = array<i64: 8, 128>}, {transform_indices = @transform_1, window_bounds = array<i64: 8, 128>}, {pipeline_mode = #tpu.pipeline_mode<synchronous>, transform_indices = @transform_2, window_bounds = array<i64: 128, 384>}, {pipeline_mode = #tpu.pipeline_mode<synchronous>, transform_indices = @transform_3, window_bounds = array<i64: 1, 384>}, {pipeline_mode = #tpu.pipeline_mode<synchronous>, transform_indices = @transform_4, window_bounds = array<i64: 128, 128>}, {pipeline_mode = #tpu.pipeline_mode<synchronous>, transform_indices = @transform_5, window_bounds = array<i64: 1, 128>}, {pipeline_mode = #tpu.pipeline_mode<synchronous>, transform_indices = @transform_6, window_bounds = array<i64: 128, 128>}, {pipeline_mode = #tpu.pipeline_mode<synchronous>, transform_indices = @transform_7, window_bounds = array<i64: 1, 128>}, {pipeline_mode = #tpu.pipeline_mode<synchronous>, transform_indices = @transform_8, window_bounds = array<i64: 128, 256>}, {pipeline_mode = #tpu.pipeline_mode<synchronous>, transform_indices = @transform_9, window_bounds = array<i64: 1, 256>}, {pipeline_mode = #tpu.pipeline_mode<synchronous>, transform_indices = @transform_10, window_bounds = array<i64: 128, 128>}, {pipeline_mode = #tpu.pipeline_mode<synchronous>, transform_indices = @transform_11, window_bounds = array<i64: 1, 128>}, {pipeline_mode = #tpu.pipeline_mode<synchronous>, transform_indices = @transform_12, window_bounds = array<i64: 128, 128>}, {pipeline_mode = #tpu.pipeline_mode<synchronous>, transform_indices = @transform_13, window_bounds = array<i64: 1, 128>}, {pipeline_mode = #tpu.pipeline_mode<synchronous>, transform_indices = @transform_14, window_bounds = array<i64: 128, 128>}, {pipeline_mode = #tpu.pipeline_mode<synchronous>, transform_indices = @transform_15, window_bounds = array<i64: 1, 128>}, {pipeline_mode = #tpu.pipeline_mode<synchronous>, transform_indices = @transform_16, window_bounds = array<i64: 4, 128>}, {pipeline_mode = #tpu.pipeline_mode<synchronous>, transform_indices = @transform_17, window_bounds = array<i64: 4, 128>}, {transform_indices = @transform_18, window_bounds = array<i64: 8, 128>}]} {
    %c0 = arith.constant 0 : index
    %c0_0 = arith.constant 0 : index
    %0 = vector.load %arg3[%c0, %c0_0] : memref<128x384xbf16, #tpu.memory_space<vmem>>, vector<128x384xbf16>
    %c0_1 = arith.constant 0 : index
    %c0_2 = arith.constant 0 : index
    %1 = vector.load %arg4[%c0_1, %c0_2] : memref<1x384xf32, #tpu.memory_space<vmem>>, vector<1x384xf32>
    %c0_3 = arith.constant 0 : index
    %c0_4 = arith.constant 0 : index
    %2 = vector.load %arg5[%c0_3, %c0_4] : memref<128x128xbf16, #tpu.memory_space<vmem>>, vector<128x128xbf16>
    %c0_5 = arith.constant 0 : index
    %c0_6 = arith.constant 0 : index
    %3 = vector.load %arg6[%c0_5, %c0_6] : memref<1x128xf32, #tpu.memory_space<vmem>>, vector<1x128xf32>
    %c0_7 = arith.constant 0 : index
    %c0_8 = arith.constant 0 : index
    %4 = vector.load %arg7[%c0_7, %c0_8] : memref<128x128xbf16, #tpu.memory_space<vmem>>, vector<128x128xbf16>
    %c0_9 = arith.constant 0 : index
    %c0_10 = arith.constant 0 : index
    %5 = vector.load %arg8[%c0_9, %c0_10] : memref<1x128xf32, #tpu.memory_space<vmem>>, vector<1x128xf32>
    %c0_11 = arith.constant 0 : index
    %c0_12 = arith.constant 0 : index
    %6 = vector.load %arg9[%c0_11, %c0_12] : memref<128x256xbf16, #tpu.memory_space<vmem>>, vector<128x256xbf16>
    %c0_13 = arith.constant 0 : index
    %c0_14 = arith.constant 0 : index
    %7 = vector.load %arg10[%c0_13, %c0_14] : memref<1x256xf32, #tpu.memory_space<vmem>>, vector<1x256xf32>
    %c0_15 = arith.constant 0 : index
    %c0_16 = arith.constant 0 : index
    %8 = vector.load %arg11[%c0_15, %c0_16] : memref<128x128xbf16, #tpu.memory_space<vmem>>, vector<128x128xbf16>
    %c0_17 = arith.constant 0 : index
    %c0_18 = arith.constant 0 : index
    %9 = vector.load %arg12[%c0_17, %c0_18] : memref<1x128xf32, #tpu.memory_space<vmem>>, vector<1x128xf32>
    %c0_19 = arith.constant 0 : index
    %c0_20 = arith.constant 0 : index
    %10 = vector.load %arg13[%c0_19, %c0_20] : memref<128x128xbf16, #tpu.memory_space<vmem>>, vector<128x128xbf16>
    %c0_21 = arith.constant 0 : index
    %c0_22 = arith.constant 0 : index
    %11 = vector.load %arg14[%c0_21, %c0_22] : memref<1x128xf32, #tpu.memory_space<vmem>>, vector<1x128xf32>
    %c0_23 = arith.constant 0 : index
    %c0_24 = arith.constant 0 : index
    %12 = vector.load %arg15[%c0_23, %c0_24] : memref<128x128xbf16, #tpu.memory_space<vmem>>, vector<128x128xbf16>
    %c0_25 = arith.constant 0 : index
    %c0_26 = arith.constant 0 : index
    %13 = vector.load %arg16[%c0_25, %c0_26] : memref<1x128xf32, #tpu.memory_space<vmem>>, vector<1x128xf32>
    %c0_27 = arith.constant 0 : index
    %c0_28 = arith.constant 0 : index
    %14 = vector.load %arg17[%c0_27, %c0_28] : memref<4x128xf32, #tpu.memory_space<vmem>>, vector<4x128xf32>
    %c0_29 = arith.constant 0 : index
    %c0_30 = arith.constant 0 : index
    %15 = vector.load %arg18[%c0_29, %c0_30] : memref<4x128xf32, #tpu.memory_space<vmem>>, vector<4x128xf32>
    %16 = vector.extract_strided_slice %14 {offsets = [0, 0], sizes = [1, 128], strides = [1, 1]} : vector<4x128xf32> to vector<1x128xf32>
    %17 = vector.extract_strided_slice %14 {offsets = [1, 0], sizes = [1, 128], strides = [1, 1]} : vector<4x128xf32> to vector<1x128xf32>
    %18 = vector.extract_strided_slice %14 {offsets = [2, 0], sizes = [1, 128], strides = [1, 1]} : vector<4x128xf32> to vector<1x128xf32>
    %19 = vector.extract_strided_slice %14 {offsets = [3, 0], sizes = [1, 128], strides = [1, 1]} : vector<4x128xf32> to vector<1x128xf32>
    %20 = vector.extract_strided_slice %15 {offsets = [0, 0], sizes = [1, 128], strides = [1, 1]} : vector<4x128xf32> to vector<1x128xf32>
    %21 = vector.extract_strided_slice %15 {offsets = [1, 0], sizes = [1, 128], strides = [1, 1]} : vector<4x128xf32> to vector<1x128xf32>
    %22 = vector.extract_strided_slice %15 {offsets = [2, 0], sizes = [1, 128], strides = [1, 1]} : vector<4x128xf32> to vector<1x128xf32>
    %23 = vector.extract_strided_slice %15 {offsets = [3, 0], sizes = [1, 128], strides = [1, 1]} : vector<4x128xf32> to vector<1x128xf32>
    %c0_31 = arith.constant 0 : index
    %c0_32 = arith.constant 0 : index
    %24 = vector.load %arg1[%c0_31, %c0_32] : memref<8x128xf32, #tpu.memory_space<vmem>>, vector<8x128xf32>
    %c0_33 = arith.constant 0 : index
    %c0_34 = arith.constant 0 : index
    %25 = vector.load %arg2[%c0_33, %c0_34] : memref<8x128xf32, #tpu.memory_space<vmem>>, vector<8x128xf32>
    %26 = arith.truncf %25 : vector<8x128xf32> to vector<8x128xbf16>
    %cst = arith.constant dense<0.000000e+00> : vector<8x256xf32>
    %27 = tpu.matmul %26, %6, %cst {dimension_numbers = #tpu.dot_dimension_numbers<[1], [0], [0], [1], [0, 0, 1, 1], [], []>} : vector<8x128xbf16>, vector<128x256xbf16>, vector<8x256xf32> -> vector<8x256xf32>
    %28 = vector.broadcast %7 : vector<1x256xf32> to vector<8x256xf32>
    %29 = arith.addf %27, %28 : vector<8x256xf32>
    %30 = vector.extract_strided_slice %29 {offsets = [0, 0], sizes = [8, 128], strides = [1, 1]} : vector<8x256xf32> to vector<8x128xf32>
    %31 = vector.shape_cast %30 : vector<8x128xf32> to vector<8x4x32xf32>
    %32 = tpu.transpose %31, [1, 0, 2] : vector<8x4x32xf32> -> vector<4x8x32xf32>
    %33 = arith.truncf %32 : vector<4x8x32xf32> to vector<4x8x32xbf16>
    %34 = vector.extract_strided_slice %29 {offsets = [0, 128], sizes = [8, 128], strides = [1, 1]} : vector<8x256xf32> to vector<8x128xf32>
    %35 = vector.shape_cast %34 : vector<8x128xf32> to vector<8x4x32xf32>
    %36 = tpu.transpose %35, [1, 0, 2] : vector<8x4x32xf32> -> vector<4x8x32xf32>
    %37 = arith.truncf %36 : vector<4x8x32xf32> to vector<4x8x32xbf16>
    %c0_i32 = arith.constant 0 : i32
    %38 = arith.truncf %24 : vector<8x128xf32> to vector<8x128xbf16>
    %cst_35 = arith.constant dense<0.000000e+00> : vector<8x384xf32>
    %39 = tpu.matmul %38, %0, %cst_35 {dimension_numbers = #tpu.dot_dimension_numbers<[1], [0], [0], [1], [0, 0, 1, 1], [], []>} : vector<8x128xbf16>, vector<128x384xbf16>, vector<8x384xf32> -> vector<8x384xf32>
    %40 = vector.broadcast %1 : vector<1x384xf32> to vector<8x384xf32>
    %41 = arith.addf %39, %40 : vector<8x384xf32>
    %42 = vector.extract_strided_slice %41 {offsets = [0, 128], sizes = [8, 128], strides = [1, 1]} : vector<8x384xf32> to vector<8x128xf32>
    %43 = vector.shape_cast %42 : vector<8x128xf32> to vector<8x4x32xf32>
    %44 = tpu.transpose %43, [1, 0, 2] : vector<8x4x32xf32> -> vector<4x8x32xf32>
    %45 = arith.truncf %44 : vector<4x8x32xf32> to vector<4x8x32xbf16>
    %46 = vector.extract_strided_slice %41 {offsets = [0, 256], sizes = [8, 128], strides = [1, 1]} : vector<8x384xf32> to vector<8x128xf32>
    %47 = vector.shape_cast %46 : vector<8x128xf32> to vector<8x4x32xf32>
    %48 = tpu.transpose %47, [1, 0, 2] : vector<8x4x32xf32> -> vector<4x8x32xf32>
    %49 = arith.truncf %48 : vector<4x8x32xf32> to vector<4x8x32xbf16>
    %50 = vector.extract_strided_slice %41 {offsets = [0, 0], sizes = [8, 128], strides = [1, 1]} : vector<8x384xf32> to vector<8x128xf32>
    %51 = vector.shape_cast %50 : vector<8x128xf32> to vector<8x4x32xf32>
    %52 = tpu.transpose %51, [1, 0, 2] : vector<8x4x32xf32> -> vector<4x8x32xf32>
    %53 = arith.truncf %52 : vector<4x8x32xf32> to vector<4x8x32xbf16>
    "tpu.trace_start"() <{level = 10 : i32, message = "hqd,hkd->hqk"}> : () -> ()
    %cst_36 = arith.constant dense<0.000000e+00> : vector<4x8x8xf32>
    %54 = tpu.matmul %53, %45, %cst_36 {dimension_numbers = #tpu.dot_dimension_numbers<[2], [2], [1], [1], [0, 0, 0, 1, 1, 1], [0], [0]>} : vector<4x8x32xbf16>, vector<4x8x32xbf16>, vector<4x8x8xf32> -> vector<4x8x8xf32>
    "tpu.trace_stop"() : () -> ()
    %cst_37 = arith.constant dense<0xFF800000> : vector<4x8xf32>
    %55 = vector.multi_reduction <maximumf>, %54, %cst_37 [2] : vector<4x8x8xf32> to vector<4x8xf32>
    %56 = vector.shape_cast %55 : vector<4x8xf32> to vector<4x8x1xf32>
    %57 = vector.broadcast %56 : vector<4x8x1xf32> to vector<4x8x8xf32>
    %58 = arith.subf %54, %57 : vector<4x8x8xf32>
    %59 = math.exp %58 : vector<4x8x8xf32>
    %cst_38 = arith.constant dense<0.000000e+00> : vector<4x8xf32>
    %60 = vector.multi_reduction <add>, %59, %cst_38 [2] : vector<4x8x8xf32> to vector<4x8xf32>
    %61 = vector.shape_cast %60 : vector<4x8xf32> to vector<4x8x1xf32>
    %62 = tpu.reciprocal %61 {approx = true} : vector<4x8x1xf32> -> vector<4x8x1xf32>
    %63 = vector.broadcast %62 : vector<4x8x1xf32> to vector<4x8x8xf32>
    %64 = arith.mulf %59, %63 : vector<4x8x8xf32>
    %65 = arith.truncf %64 : vector<4x8x8xf32> to vector<4x8x8xbf16>
    "tpu.trace_start"() <{level = 10 : i32, message = "hqk,hkd->hqd"}> : () -> ()
    %cst_39 = arith.constant dense<0.000000e+00> : vector<4x8x32xf32>
    %66 = tpu.matmul %65, %49, %cst_39 {dimension_numbers = #tpu.dot_dimension_numbers<[2], [1], [1], [2], [0, 0, 0, 1, 1, 2], [0], [0]>} : vector<4x8x8xbf16>, vector<4x8x32xbf16>, vector<4x8x32xf32> -> vector<4x8x32xf32>
    "tpu.trace_stop"() : () -> ()
    %67 = tpu.transpose %66, [1, 0, 2] : vector<4x8x32xf32> -> vector<8x4x32xf32>
    %68 = vector.shape_cast %67 : vector<8x4x32xf32> to vector<8x128xf32>
    %69 = arith.truncf %68 : vector<8x128xf32> to vector<8x128xbf16>
    %cst_40 = arith.constant dense<0.000000e+00> : vector<8x128xf32>
    %70 = tpu.matmul %69, %2, %cst_40 {dimension_numbers = #tpu.dot_dimension_numbers<[1], [0], [0], [1], [0, 0, 1, 1], [], []>} : vector<8x128xbf16>, vector<128x128xbf16>, vector<8x128xf32> -> vector<8x128xf32>
    %71 = vector.broadcast %3 : vector<1x128xf32> to vector<8x128xf32>
    %72 = arith.addf %70, %71 : vector<8x128xf32>
    %73 = arith.addf %24, %72 : vector<8x128xf32>
    %cst_41 = arith.constant dense<0.000000e+00> : vector<8xf32>
    %74 = vector.multi_reduction <add>, %73, %cst_41 [1] : vector<8x128xf32> to vector<8xf32>
    %75 = vector.shape_cast %74 : vector<8xf32> to vector<8x1xf32>
    %cst_42 = arith.constant 3.125000e-02 : f32
    %76 = vector.broadcast %cst_42 : f32 to vector<8x1xf32>
    %77 = arith.mulf %75, %76 : vector<8x1xf32>
    %78 = vector.broadcast %77 : vector<8x1xf32> to vector<8x128xf32>
    %79 = arith.subf %73, %78 : vector<8x128xf32>
    %80 = arith.mulf %79, %79 : vector<8x128xf32>
    %cst_43 = arith.constant dense<0.000000e+00> : vector<8xf32>
    %81 = vector.multi_reduction <add>, %80, %cst_43 [1] : vector<8x128xf32> to vector<8xf32>
    %82 = vector.shape_cast %81 : vector<8xf32> to vector<8x1xf32>
    %cst_44 = arith.constant 9.600000e+01 : f32
    %83 = vector.broadcast %cst_44 : f32 to vector<8x1xf32>
    %84 = arith.mulf %83, %77 : vector<8x1xf32>
    %85 = arith.mulf %84, %77 : vector<8x1xf32>
    %86 = arith.subf %82, %85 : vector<8x1xf32>
    %cst_45 = arith.constant 3.125000e-02 : f32
    %87 = vector.broadcast %cst_45 : f32 to vector<8x1xf32>
    %88 = arith.mulf %86, %87 : vector<8x1xf32>
    %cst_46 = arith.constant 9.99999974E-6 : f32
    %89 = vector.broadcast %cst_46 : f32 to vector<8x1xf32>
    %90 = arith.addf %88, %89 : vector<8x1xf32>
    %91 = math.rsqrt %90 : vector<8x1xf32>
    %92 = vector.broadcast %91 : vector<8x1xf32> to vector<8x128xf32>
    %93 = arith.mulf %79, %92 : vector<8x128xf32>
    %94 = vector.broadcast %16 : vector<1x128xf32> to vector<8x128xf32>
    %95 = arith.mulf %93, %94 : vector<8x128xf32>
    %96 = vector.broadcast %20 : vector<1x128xf32> to vector<8x128xf32>
    %97 = arith.addf %95, %96 : vector<8x128xf32>
    %98 = arith.truncf %97 : vector<8x128xf32> to vector<8x128xbf16>
    %cst_47 = arith.constant dense<0.000000e+00> : vector<8x128xf32>
    %99 = tpu.matmul %98, %4, %cst_47 {dimension_numbers = #tpu.dot_dimension_numbers<[1], [0], [0], [1], [0, 0, 1, 1], [], []>} : vector<8x128xbf16>, vector<128x128xbf16>, vector<8x128xf32> -> vector<8x128xf32>
    %100 = vector.broadcast %5 : vector<1x128xf32> to vector<8x128xf32>
    %101 = arith.addf %99, %100 : vector<8x128xf32>
    %102 = vector.shape_cast %101 : vector<8x128xf32> to vector<8x4x32xf32>
    %103 = tpu.transpose %102, [1, 0, 2] : vector<8x4x32xf32> -> vector<4x8x32xf32>
    %104 = arith.truncf %103 : vector<4x8x32xf32> to vector<4x8x32xbf16>
    "tpu.trace_start"() <{level = 10 : i32, message = "hqd,hkd->hqk"}> : () -> ()
    %cst_48 = arith.constant dense<0.000000e+00> : vector<4x8x8xf32>
    %105 = tpu.matmul %104, %33, %cst_48 {dimension_numbers = #tpu.dot_dimension_numbers<[2], [2], [1], [1], [0, 0, 0, 1, 1, 1], [0], [0]>} : vector<4x8x32xbf16>, vector<4x8x32xbf16>, vector<4x8x8xf32> -> vector<4x8x8xf32>
    "tpu.trace_stop"() : () -> ()
    %cst_49 = arith.constant dense<0xFF800000> : vector<4x8xf32>
    %106 = vector.multi_reduction <maximumf>, %105, %cst_49 [2] : vector<4x8x8xf32> to vector<4x8xf32>
    %107 = vector.shape_cast %106 : vector<4x8xf32> to vector<4x8x1xf32>
    %108 = vector.broadcast %107 : vector<4x8x1xf32> to vector<4x8x8xf32>
    %109 = arith.subf %105, %108 : vector<4x8x8xf32>
    %110 = math.exp %109 : vector<4x8x8xf32>
    %cst_50 = arith.constant dense<0.000000e+00> : vector<4x8xf32>
    %111 = vector.multi_reduction <add>, %110, %cst_50 [2] : vector<4x8x8xf32> to vector<4x8xf32>
    %112 = vector.shape_cast %111 : vector<4x8xf32> to vector<4x8x1xf32>
    %113 = tpu.reciprocal %112 {approx = true} : vector<4x8x1xf32> -> vector<4x8x1xf32>
    %114 = vector.broadcast %113 : vector<4x8x1xf32> to vector<4x8x8xf32>
    %115 = arith.mulf %110, %114 : vector<4x8x8xf32>
    %116 = arith.truncf %115 : vector<4x8x8xf32> to vector<4x8x8xbf16>
    "tpu.trace_start"() <{level = 10 : i32, message = "hqk,hkd->hqd"}> : () -> ()
    %cst_51 = arith.constant dense<0.000000e+00> : vector<4x8x32xf32>
    %117 = tpu.matmul %116, %37, %cst_51 {dimension_numbers = #tpu.dot_dimension_numbers<[2], [1], [1], [2], [0, 0, 0, 1, 1, 2], [0], [0]>} : vector<4x8x8xbf16>, vector<4x8x32xbf16>, vector<4x8x32xf32> -> vector<4x8x32xf32>
    "tpu.trace_stop"() : () -> ()
    %118 = tpu.transpose %117, [1, 0, 2] : vector<4x8x32xf32> -> vector<8x4x32xf32>
    %119 = vector.shape_cast %118 : vector<8x4x32xf32> to vector<8x128xf32>
    %120 = arith.truncf %119 : vector<8x128xf32> to vector<8x128xbf16>
    %cst_52 = arith.constant dense<0.000000e+00> : vector<8x128xf32>
    %121 = tpu.matmul %120, %8, %cst_52 {dimension_numbers = #tpu.dot_dimension_numbers<[1], [0], [0], [1], [0, 0, 1, 1], [], []>} : vector<8x128xbf16>, vector<128x128xbf16>, vector<8x128xf32> -> vector<8x128xf32>
    %122 = vector.broadcast %9 : vector<1x128xf32> to vector<8x128xf32>
    %123 = arith.addf %121, %122 : vector<8x128xf32>
    %124 = arith.addf %97, %123 : vector<8x128xf32>
    %cst_53 = arith.constant dense<0.000000e+00> : vector<8xf32>
    %125 = vector.multi_reduction <add>, %124, %cst_53 [1] : vector<8x128xf32> to vector<8xf32>
    %126 = vector.shape_cast %125 : vector<8xf32> to vector<8x1xf32>
    %cst_54 = arith.constant 3.125000e-02 : f32
    %127 = vector.broadcast %cst_54 : f32 to vector<8x1xf32>
    %128 = arith.mulf %126, %127 : vector<8x1xf32>
    %129 = vector.broadcast %128 : vector<8x1xf32> to vector<8x128xf32>
    %130 = arith.subf %124, %129 : vector<8x128xf32>
    %131 = arith.mulf %130, %130 : vector<8x128xf32>
    %cst_55 = arith.constant dense<0.000000e+00> : vector<8xf32>
    %132 = vector.multi_reduction <add>, %131, %cst_55 [1] : vector<8x128xf32> to vector<8xf32>
    %133 = vector.shape_cast %132 : vector<8xf32> to vector<8x1xf32>
    %cst_56 = arith.constant 9.600000e+01 : f32
    %134 = vector.broadcast %cst_56 : f32 to vector<8x1xf32>
    %135 = arith.mulf %134, %128 : vector<8x1xf32>
    %136 = arith.mulf %135, %128 : vector<8x1xf32>
    %137 = arith.subf %133, %136 : vector<8x1xf32>
    %cst_57 = arith.constant 3.125000e-02 : f32
    %138 = vector.broadcast %cst_57 : f32 to vector<8x1xf32>
    %139 = arith.mulf %137, %138 : vector<8x1xf32>
    %cst_58 = arith.constant 9.99999974E-6 : f32
    %140 = vector.broadcast %cst_58 : f32 to vector<8x1xf32>
    %141 = arith.addf %139, %140 : vector<8x1xf32>
    %142 = math.rsqrt %141 : vector<8x1xf32>
    %143 = vector.broadcast %142 : vector<8x1xf32> to vector<8x128xf32>
    %144 = arith.mulf %130, %143 : vector<8x128xf32>
    %145 = vector.broadcast %17 : vector<1x128xf32> to vector<8x128xf32>
    %146 = arith.mulf %144, %145 : vector<8x128xf32>
    %147 = vector.broadcast %21 : vector<1x128xf32> to vector<8x128xf32>
    %148 = arith.addf %146, %147 : vector<8x128xf32>
    %149 = arith.truncf %148 : vector<8x128xf32> to vector<8x128xbf16>
    %cst_59 = arith.constant dense<0.000000e+00> : vector<8x128xf32>
    %150 = tpu.matmul %149, %10, %cst_59 {dimension_numbers = #tpu.dot_dimension_numbers<[1], [0], [0], [1], [0, 0, 1, 1], [], []>} : vector<8x128xbf16>, vector<128x128xbf16>, vector<8x128xf32> -> vector<8x128xf32>
    %151 = vector.broadcast %11 : vector<1x128xf32> to vector<8x128xf32>
    %152 = arith.addf %150, %151 : vector<8x128xf32>
    %cst_60 = arith.constant 0.000000e+00 : f32
    %153 = vector.broadcast %cst_60 : f32 to vector<8x128xf32>
    %154 = arith.maximumf %152, %153 : vector<8x128xf32>
    %155 = arith.truncf %154 : vector<8x128xf32> to vector<8x128xbf16>
    %cst_61 = arith.constant dense<0.000000e+00> : vector<8x128xf32>
    %156 = tpu.matmul %155, %12, %cst_61 {dimension_numbers = #tpu.dot_dimension_numbers<[1], [0], [0], [1], [0, 0, 1, 1], [], []>} : vector<8x128xbf16>, vector<128x128xbf16>, vector<8x128xf32> -> vector<8x128xf32>
    %157 = vector.broadcast %13 : vector<1x128xf32> to vector<8x128xf32>
    %158 = arith.addf %156, %157 : vector<8x128xf32>
    %159 = arith.addf %148, %158 : vector<8x128xf32>
    %cst_62 = arith.constant dense<0.000000e+00> : vector<8xf32>
    %160 = vector.multi_reduction <add>, %159, %cst_62 [1] : vector<8x128xf32> to vector<8xf32>
    %161 = vector.shape_cast %160 : vector<8xf32> to vector<8x1xf32>
    %cst_63 = arith.constant 3.125000e-02 : f32
    %162 = vector.broadcast %cst_63 : f32 to vector<8x1xf32>
    %163 = arith.mulf %161, %162 : vector<8x1xf32>
    %164 = vector.broadcast %163 : vector<8x1xf32> to vector<8x128xf32>
    %165 = arith.subf %159, %164 : vector<8x128xf32>
    %166 = arith.mulf %165, %165 : vector<8x128xf32>
    %cst_64 = arith.constant dense<0.000000e+00> : vector<8xf32>
    %167 = vector.multi_reduction <add>, %166, %cst_64 [1] : vector<8x128xf32> to vector<8xf32>
    %168 = vector.shape_cast %167 : vector<8xf32> to vector<8x1xf32>
    %cst_65 = arith.constant 9.600000e+01 : f32
    %169 = vector.broadcast %cst_65 : f32 to vector<8x1xf32>
    %170 = arith.mulf %169, %163 : vector<8x1xf32>
    %171 = arith.mulf %170, %163 : vector<8x1xf32>
    %172 = arith.subf %168, %171 : vector<8x1xf32>
    %cst_66 = arith.constant 3.125000e-02 : f32
    %173 = vector.broadcast %cst_66 : f32 to vector<8x1xf32>
    %174 = arith.mulf %172, %173 : vector<8x1xf32>
    %cst_67 = arith.constant 9.99999974E-6 : f32
    %175 = vector.broadcast %cst_67 : f32 to vector<8x1xf32>
    %176 = arith.addf %174, %175 : vector<8x1xf32>
    %177 = math.rsqrt %176 : vector<8x1xf32>
    %178 = vector.broadcast %177 : vector<8x1xf32> to vector<8x128xf32>
    %179 = arith.mulf %165, %178 : vector<8x128xf32>
    %180 = vector.broadcast %18 : vector<1x128xf32> to vector<8x128xf32>
    %181 = arith.mulf %179, %180 : vector<8x128xf32>
    %182 = vector.broadcast %22 : vector<1x128xf32> to vector<8x128xf32>
    %183 = arith.addf %181, %182 : vector<8x128xf32>
    %c1_i32 = arith.constant 1 : i32
    %184 = arith.truncf %183 : vector<8x128xf32> to vector<8x128xbf16>
    %cst_68 = arith.constant dense<0.000000e+00> : vector<8x384xf32>
    %185 = tpu.matmul %184, %0, %cst_68 {dimension_numbers = #tpu.dot_dimension_numbers<[1], [0], [0], [1], [0, 0, 1, 1], [], []>} : vector<8x128xbf16>, vector<128x384xbf16>, vector<8x384xf32> -> vector<8x384xf32>
    %186 = vector.broadcast %1 : vector<1x384xf32> to vector<8x384xf32>
    %187 = arith.addf %185, %186 : vector<8x384xf32>
    %188 = vector.extract_strided_slice %187 {offsets = [0, 128], sizes = [8, 128], strides = [1, 1]} : vector<8x384xf32> to vector<8x128xf32>
    %189 = vector.shape_cast %188 : vector<8x128xf32> to vector<8x4x32xf32>
    %190 = tpu.transpose %189, [1, 0, 2] : vector<8x4x32xf32> -> vector<4x8x32xf32>
    %191 = arith.truncf %190 : vector<4x8x32xf32> to vector<4x8x32xbf16>
    %192 = vector.extract_strided_slice %187 {offsets = [0, 256], sizes = [8, 128], strides = [1, 1]} : vector<8x384xf32> to vector<8x128xf32>
    %193 = vector.shape_cast %192 : vector<8x128xf32> to vector<8x4x32xf32>
    %194 = tpu.transpose %193, [1, 0, 2] : vector<8x4x32xf32> -> vector<4x8x32xf32>
    %195 = arith.truncf %194 : vector<4x8x32xf32> to vector<4x8x32xbf16>
    %196 = vector.extract_strided_slice %187 {offsets = [0, 0], sizes = [8, 128], strides = [1, 1]} : vector<8x384xf32> to vector<8x128xf32>
    %197 = vector.shape_cast %196 : vector<8x128xf32> to vector<8x4x32xf32>
    %198 = tpu.transpose %197, [1, 0, 2] : vector<8x4x32xf32> -> vector<4x8x32xf32>
    %199 = arith.truncf %198 : vector<4x8x32xf32> to vector<4x8x32xbf16>
    "tpu.trace_start"() <{level = 10 : i32, message = "hqd,hkd->hqk"}> : () -> ()
    %cst_69 = arith.constant dense<0.000000e+00> : vector<4x8x8xf32>
    %200 = tpu.matmul %199, %191, %cst_69 {dimension_numbers = #tpu.dot_dimension_numbers<[2], [2], [1], [1], [0, 0, 0, 1, 1, 1], [0], [0]>} : vector<4x8x32xbf16>, vector<4x8x32xbf16>, vector<4x8x8xf32> -> vector<4x8x8xf32>
    "tpu.trace_stop"() : () -> ()
    %cst_70 = arith.constant dense<0xFF800000> : vector<4x8xf32>
    %201 = vector.multi_reduction <maximumf>, %200, %cst_70 [2] : vector<4x8x8xf32> to vector<4x8xf32>
    %202 = vector.shape_cast %201 : vector<4x8xf32> to vector<4x8x1xf32>
    %203 = vector.broadcast %202 : vector<4x8x1xf32> to vector<4x8x8xf32>
    %204 = arith.subf %200, %203 : vector<4x8x8xf32>
    %205 = math.exp %204 : vector<4x8x8xf32>
    %cst_71 = arith.constant dense<0.000000e+00> : vector<4x8xf32>
    %206 = vector.multi_reduction <add>, %205, %cst_71 [2] : vector<4x8x8xf32> to vector<4x8xf32>
    %207 = vector.shape_cast %206 : vector<4x8xf32> to vector<4x8x1xf32>
    %208 = tpu.reciprocal %207 {approx = true} : vector<4x8x1xf32> -> vector<4x8x1xf32>
    %209 = vector.broadcast %208 : vector<4x8x1xf32> to vector<4x8x8xf32>
    %210 = arith.mulf %205, %209 : vector<4x8x8xf32>
    %211 = arith.truncf %210 : vector<4x8x8xf32> to vector<4x8x8xbf16>
    "tpu.trace_start"() <{level = 10 : i32, message = "hqk,hkd->hqd"}> : () -> ()
    %cst_72 = arith.constant dense<0.000000e+00> : vector<4x8x32xf32>
    %212 = tpu.matmul %211, %195, %cst_72 {dimension_numbers = #tpu.dot_dimension_numbers<[2], [1], [1], [2], [0, 0, 0, 1, 1, 2], [0], [0]>} : vector<4x8x8xbf16>, vector<4x8x32xbf16>, vector<4x8x32xf32> -> vector<4x8x32xf32>
    "tpu.trace_stop"() : () -> ()
    %213 = tpu.transpose %212, [1, 0, 2] : vector<4x8x32xf32> -> vector<8x4x32xf32>
    %214 = vector.shape_cast %213 : vector<8x4x32xf32> to vector<8x128xf32>
    %215 = arith.truncf %214 : vector<8x128xf32> to vector<8x128xbf16>
    %cst_73 = arith.constant dense<0.000000e+00> : vector<8x128xf32>
    %216 = tpu.matmul %215, %2, %cst_73 {dimension_numbers = #tpu.dot_dimension_numbers<[1], [0], [0], [1], [0, 0, 1, 1], [], []>} : vector<8x128xbf16>, vector<128x128xbf16>, vector<8x128xf32> -> vector<8x128xf32>
    %217 = vector.broadcast %3 : vector<1x128xf32> to vector<8x128xf32>
    %218 = arith.addf %216, %217 : vector<8x128xf32>
    %219 = arith.addf %183, %218 : vector<8x128xf32>
    %cst_74 = arith.constant dense<0.000000e+00> : vector<8xf32>
    %220 = vector.multi_reduction <add>, %219, %cst_74 [1] : vector<8x128xf32> to vector<8xf32>
    %221 = vector.shape_cast %220 : vector<8xf32> to vector<8x1xf32>
    %cst_75 = arith.constant 3.125000e-02 : f32
    %222 = vector.broadcast %cst_75 : f32 to vector<8x1xf32>
    %223 = arith.mulf %221, %222 : vector<8x1xf32>
    %224 = vector.broadcast %223 : vector<8x1xf32> to vector<8x128xf32>
    %225 = arith.subf %219, %224 : vector<8x128xf32>
    %226 = arith.mulf %225, %225 : vector<8x128xf32>
    %cst_76 = arith.constant dense<0.000000e+00> : vector<8xf32>
    %227 = vector.multi_reduction <add>, %226, %cst_76 [1] : vector<8x128xf32> to vector<8xf32>
    %228 = vector.shape_cast %227 : vector<8xf32> to vector<8x1xf32>
    %cst_77 = arith.constant 9.600000e+01 : f32
    %229 = vector.broadcast %cst_77 : f32 to vector<8x1xf32>
    %230 = arith.mulf %229, %223 : vector<8x1xf32>
    %231 = arith.mulf %230, %223 : vector<8x1xf32>
    %232 = arith.subf %228, %231 : vector<8x1xf32>
    %cst_78 = arith.constant 3.125000e-02 : f32
    %233 = vector.broadcast %cst_78 : f32 to vector<8x1xf32>
    %234 = arith.mulf %232, %233 : vector<8x1xf32>
    %cst_79 = arith.constant 9.99999974E-6 : f32
    %235 = vector.broadcast %cst_79 : f32 to vector<8x1xf32>
    %236 = arith.addf %234, %235 : vector<8x1xf32>
    %237 = math.rsqrt %236 : vector<8x1xf32>
    %238 = vector.broadcast %237 : vector<8x1xf32> to vector<8x128xf32>
    %239 = arith.mulf %225, %238 : vector<8x128xf32>
    %240 = vector.broadcast %16 : vector<1x128xf32> to vector<8x128xf32>
    %241 = arith.mulf %239, %240 : vector<8x128xf32>
    %242 = vector.broadcast %20 : vector<1x128xf32> to vector<8x128xf32>
    %243 = arith.addf %241, %242 : vector<8x128xf32>
    %244 = arith.truncf %243 : vector<8x128xf32> to vector<8x128xbf16>
    %cst_80 = arith.constant dense<0.000000e+00> : vector<8x128xf32>
    %245 = tpu.matmul %244, %4, %cst_80 {dimension_numbers = #tpu.dot_dimension_numbers<[1], [0], [0], [1], [0, 0, 1, 1], [], []>} : vector<8x128xbf16>, vector<128x128xbf16>, vector<8x128xf32> -> vector<8x128xf32>
    %246 = vector.broadcast %5 : vector<1x128xf32> to vector<8x128xf32>
    %247 = arith.addf %245, %246 : vector<8x128xf32>
    %248 = vector.shape_cast %247 : vector<8x128xf32> to vector<8x4x32xf32>
    %249 = tpu.transpose %248, [1, 0, 2] : vector<8x4x32xf32> -> vector<4x8x32xf32>
    %250 = arith.truncf %249 : vector<4x8x32xf32> to vector<4x8x32xbf16>
    "tpu.trace_start"() <{level = 10 : i32, message = "hqd,hkd->hqk"}> : () -> ()
    %cst_81 = arith.constant dense<0.000000e+00> : vector<4x8x8xf32>
    %251 = tpu.matmul %250, %33, %cst_81 {dimension_numbers = #tpu.dot_dimension_numbers<[2], [2], [1], [1], [0, 0, 0, 1, 1, 1], [0], [0]>} : vector<4x8x32xbf16>, vector<4x8x32xbf16>, vector<4x8x8xf32> -> vector<4x8x8xf32>
    "tpu.trace_stop"() : () -> ()
    %cst_82 = arith.constant dense<0xFF800000> : vector<4x8xf32>
    %252 = vector.multi_reduction <maximumf>, %251, %cst_82 [2] : vector<4x8x8xf32> to vector<4x8xf32>
    %253 = vector.shape_cast %252 : vector<4x8xf32> to vector<4x8x1xf32>
    %254 = vector.broadcast %253 : vector<4x8x1xf32> to vector<4x8x8xf32>
    %255 = arith.subf %251, %254 : vector<4x8x8xf32>
    %256 = math.exp %255 : vector<4x8x8xf32>
    %cst_83 = arith.constant dense<0.000000e+00> : vector<4x8xf32>
    %257 = vector.multi_reduction <add>, %256, %cst_83 [2] : vector<4x8x8xf32> to vector<4x8xf32>
    %258 = vector.shape_cast %257 : vector<4x8xf32> to vector<4x8x1xf32>
    %259 = tpu.reciprocal %258 {approx = true} : vector<4x8x1xf32> -> vector<4x8x1xf32>
    %260 = vector.broadcast %259 : vector<4x8x1xf32> to vector<4x8x8xf32>
    %261 = arith.mulf %256, %260 : vector<4x8x8xf32>
    %262 = arith.truncf %261 : vector<4x8x8xf32> to vector<4x8x8xbf16>
    "tpu.trace_start"() <{level = 10 : i32, message = "hqk,hkd->hqd"}> : () -> ()
    %cst_84 = arith.constant dense<0.000000e+00> : vector<4x8x32xf32>
    %263 = tpu.matmul %262, %37, %cst_84 {dimension_numbers = #tpu.dot_dimension_numbers<[2], [1], [1], [2], [0, 0, 0, 1, 1, 2], [0], [0]>} : vector<4x8x8xbf16>, vector<4x8x32xbf16>, vector<4x8x32xf32> -> vector<4x8x32xf32>
    "tpu.trace_stop"() : () -> ()
    %264 = tpu.transpose %263, [1, 0, 2] : vector<4x8x32xf32> -> vector<8x4x32xf32>
    %265 = vector.shape_cast %264 : vector<8x4x32xf32> to vector<8x128xf32>
    %266 = arith.truncf %265 : vector<8x128xf32> to vector<8x128xbf16>
    %cst_85 = arith.constant dense<0.000000e+00> : vector<8x128xf32>
    %267 = tpu.matmul %266, %8, %cst_85 {dimension_numbers = #tpu.dot_dimension_numbers<[1], [0], [0], [1], [0, 0, 1, 1], [], []>} : vector<8x128xbf16>, vector<128x128xbf16>, vector<8x128xf32> -> vector<8x128xf32>
    %268 = vector.broadcast %9 : vector<1x128xf32> to vector<8x128xf32>
    %269 = arith.addf %267, %268 : vector<8x128xf32>
    %270 = arith.addf %243, %269 : vector<8x128xf32>
    %cst_86 = arith.constant dense<0.000000e+00> : vector<8xf32>
    %271 = vector.multi_reduction <add>, %270, %cst_86 [1] : vector<8x128xf32> to vector<8xf32>
    %272 = vector.shape_cast %271 : vector<8xf32> to vector<8x1xf32>
    %cst_87 = arith.constant 3.125000e-02 : f32
    %273 = vector.broadcast %cst_87 : f32 to vector<8x1xf32>
    %274 = arith.mulf %272, %273 : vector<8x1xf32>
    %275 = vector.broadcast %274 : vector<8x1xf32> to vector<8x128xf32>
    %276 = arith.subf %270, %275 : vector<8x128xf32>
    %277 = arith.mulf %276, %276 : vector<8x128xf32>
    %cst_88 = arith.constant dense<0.000000e+00> : vector<8xf32>
    %278 = vector.multi_reduction <add>, %277, %cst_88 [1] : vector<8x128xf32> to vector<8xf32>
    %279 = vector.shape_cast %278 : vector<8xf32> to vector<8x1xf32>
    %cst_89 = arith.constant 9.600000e+01 : f32
    %280 = vector.broadcast %cst_89 : f32 to vector<8x1xf32>
    %281 = arith.mulf %280, %274 : vector<8x1xf32>
    %282 = arith.mulf %281, %274 : vector<8x1xf32>
    %283 = arith.subf %279, %282 : vector<8x1xf32>
    %cst_90 = arith.constant 3.125000e-02 : f32
    %284 = vector.broadcast %cst_90 : f32 to vector<8x1xf32>
    %285 = arith.mulf %283, %284 : vector<8x1xf32>
    %cst_91 = arith.constant 9.99999974E-6 : f32
    %286 = vector.broadcast %cst_91 : f32 to vector<8x1xf32>
    %287 = arith.addf %285, %286 : vector<8x1xf32>
    %288 = math.rsqrt %287 : vector<8x1xf32>
    %289 = vector.broadcast %288 : vector<8x1xf32> to vector<8x128xf32>
    %290 = arith.mulf %276, %289 : vector<8x128xf32>
    %291 = vector.broadcast %17 : vector<1x128xf32> to vector<8x128xf32>
    %292 = arith.mulf %290, %291 : vector<8x128xf32>
    %293 = vector.broadcast %21 : vector<1x128xf32> to vector<8x128xf32>
    %294 = arith.addf %292, %293 : vector<8x128xf32>
    %295 = arith.truncf %294 : vector<8x128xf32> to vector<8x128xbf16>
    %cst_92 = arith.constant dense<0.000000e+00> : vector<8x128xf32>
    %296 = tpu.matmul %295, %10, %cst_92 {dimension_numbers = #tpu.dot_dimension_numbers<[1], [0], [0], [1], [0, 0, 1, 1], [], []>} : vector<8x128xbf16>, vector<128x128xbf16>, vector<8x128xf32> -> vector<8x128xf32>
    %297 = vector.broadcast %11 : vector<1x128xf32> to vector<8x128xf32>
    %298 = arith.addf %296, %297 : vector<8x128xf32>
    %cst_93 = arith.constant 0.000000e+00 : f32
    %299 = vector.broadcast %cst_93 : f32 to vector<8x128xf32>
    %300 = arith.maximumf %298, %299 : vector<8x128xf32>
    %301 = arith.truncf %300 : vector<8x128xf32> to vector<8x128xbf16>
    %cst_94 = arith.constant dense<0.000000e+00> : vector<8x128xf32>
    %302 = tpu.matmul %301, %12, %cst_94 {dimension_numbers = #tpu.dot_dimension_numbers<[1], [0], [0], [1], [0, 0, 1, 1], [], []>} : vector<8x128xbf16>, vector<128x128xbf16>, vector<8x128xf32> -> vector<8x128xf32>
    %303 = vector.broadcast %13 : vector<1x128xf32> to vector<8x128xf32>
    %304 = arith.addf %302, %303 : vector<8x128xf32>
    %305 = arith.addf %294, %304 : vector<8x128xf32>
    %cst_95 = arith.constant dense<0.000000e+00> : vector<8xf32>
    %306 = vector.multi_reduction <add>, %305, %cst_95 [1] : vector<8x128xf32> to vector<8xf32>
    %307 = vector.shape_cast %306 : vector<8xf32> to vector<8x1xf32>
    %cst_96 = arith.constant 3.125000e-02 : f32
    %308 = vector.broadcast %cst_96 : f32 to vector<8x1xf32>
    %309 = arith.mulf %307, %308 : vector<8x1xf32>
    %310 = vector.broadcast %309 : vector<8x1xf32> to vector<8x128xf32>
    %311 = arith.subf %305, %310 : vector<8x128xf32>
    %312 = arith.mulf %311, %311 : vector<8x128xf32>
    %cst_97 = arith.constant dense<0.000000e+00> : vector<8xf32>
    %313 = vector.multi_reduction <add>, %312, %cst_97 [1] : vector<8x128xf32> to vector<8xf32>
    %314 = vector.shape_cast %313 : vector<8xf32> to vector<8x1xf32>
    %cst_98 = arith.constant 9.600000e+01 : f32
    %315 = vector.broadcast %cst_98 : f32 to vector<8x1xf32>
    %316 = arith.mulf %315, %309 : vector<8x1xf32>
    %317 = arith.mulf %316, %309 : vector<8x1xf32>
    %318 = arith.subf %314, %317 : vector<8x1xf32>
    %cst_99 = arith.constant 3.125000e-02 : f32
    %319 = vector.broadcast %cst_99 : f32 to vector<8x1xf32>
    %320 = arith.mulf %318, %319 : vector<8x1xf32>
    %cst_100 = arith.constant 9.99999974E-6 : f32
    %321 = vector.broadcast %cst_100 : f32 to vector<8x1xf32>
    %322 = arith.addf %320, %321 : vector<8x1xf32>
    %323 = math.rsqrt %322 : vector<8x1xf32>
    %324 = vector.broadcast %323 : vector<8x1xf32> to vector<8x128xf32>
    %325 = arith.mulf %311, %324 : vector<8x128xf32>
    %326 = vector.broadcast %18 : vector<1x128xf32> to vector<8x128xf32>
    %327 = arith.mulf %325, %326 : vector<8x128xf32>
    %328 = vector.broadcast %22 : vector<1x128xf32> to vector<8x128xf32>
    %329 = arith.addf %327, %328 : vector<8x128xf32>
    %cst_101 = arith.constant dense<0.000000e+00> : vector<8xf32>
    %330 = vector.multi_reduction <add>, %329, %cst_101 [1] : vector<8x128xf32> to vector<8xf32>
    %331 = vector.shape_cast %330 : vector<8xf32> to vector<8x1xf32>
    %cst_102 = arith.constant 3.125000e-02 : f32
    %332 = vector.broadcast %cst_102 : f32 to vector<8x1xf32>
    %333 = arith.mulf %331, %332 : vector<8x1xf32>
    %334 = vector.broadcast %333 : vector<8x1xf32> to vector<8x128xf32>
    %335 = arith.subf %329, %334 : vector<8x128xf32>
    %336 = arith.mulf %335, %335 : vector<8x128xf32>
    %cst_103 = arith.constant dense<0.000000e+00> : vector<8xf32>
    %337 = vector.multi_reduction <add>, %336, %cst_103 [1] : vector<8x128xf32> to vector<8xf32>
    %338 = vector.shape_cast %337 : vector<8xf32> to vector<8x1xf32>
    %cst_104 = arith.constant 9.600000e+01 : f32
    %339 = vector.broadcast %cst_104 : f32 to vector<8x1xf32>
    %340 = arith.mulf %339, %333 : vector<8x1xf32>
    %341 = arith.mulf %340, %333 : vector<8x1xf32>
    %342 = arith.subf %338, %341 : vector<8x1xf32>
    %cst_105 = arith.constant 3.125000e-02 : f32
    %343 = vector.broadcast %cst_105 : f32 to vector<8x1xf32>
    %344 = arith.mulf %342, %343 : vector<8x1xf32>
    %cst_106 = arith.constant 9.99999974E-6 : f32
    %345 = vector.broadcast %cst_106 : f32 to vector<8x1xf32>
    %346 = arith.addf %344, %345 : vector<8x1xf32>
    %347 = math.rsqrt %346 : vector<8x1xf32>
    %348 = vector.broadcast %347 : vector<8x1xf32> to vector<8x128xf32>
    %349 = arith.mulf %335, %348 : vector<8x128xf32>
    %350 = vector.broadcast %19 : vector<1x128xf32> to vector<8x128xf32>
    %351 = arith.mulf %349, %350 : vector<8x128xf32>
    %352 = vector.broadcast %23 : vector<1x128xf32> to vector<8x128xf32>
    %353 = arith.addf %351, %352 : vector<8x128xf32>
    %c0_107 = arith.constant 0 : index
    %c0_108 = arith.constant 0 : index
    %354 = vector.load %arg19[%c0_107, %c0_108] : memref<8x128xf32, #tpu.memory_space<vmem>>, vector<8x128xf32>
    tpu.vector_store %arg19[%c0_107, %c0_108], %353 {strides = array<i32>} : memref<8x128xf32, #tpu.memory_space<vmem>>, vector<8x128xf32>,
    return
  }
  func.func @transform_0(%arg0: i32) -> (i32, i32) {
    %c0_i32 = arith.constant 0 : i32
    %c0_i32_0 = arith.constant 0 : i32
    return %arg0, %c0_i32 : i32, i32
  }
  func.func @transform_1(%arg0: i32) -> (i32, i32) {
    %c0_i32 = arith.constant 0 : i32
    %c0_i32_0 = arith.constant 0 : i32
    return %arg0, %c0_i32 : i32, i32
  }
  func.func @transform_2(%arg0: i32) -> (i32, i32) {
    %c0_i32 = arith.constant 0 : i32
    %c0_i32_0 = arith.constant 0 : i32
    %c0_i32_1 = arith.constant 0 : i32
    return %c0_i32, %c0_i32_0 : i32, i32
  }
  func.func @transform_3(%arg0: i32) -> (i32, i32) {
    %c0_i32 = arith.constant 0 : i32
    %c0_i32_0 = arith.constant 0 : i32
    %c0_i32_1 = arith.constant 0 : i32
    return %c0_i32, %c0_i32_0 : i32, i32
  }
  func.func @transform_4(%arg0: i32) -> (i32, i32) {
    %c0_i32 = arith.constant 0 : i32
    %c0_i32_0 = arith.constant 0 : i32
    %c0_i32_1 = arith.constant 0 : i32
    return %c0_i32, %c0_i32_0 : i32, i32
  }
  func.func @transform_5(%arg0: i32) -> (i32, i32) {
    %c0_i32 = arith.constant 0 : i32
    %c0_i32_0 = arith.constant 0 : i32
    %c0_i32_1 = arith.constant 0 : i32
    return %c0_i32, %c0_i32_0 : i32, i32
  }
  func.func @transform_6(%arg0: i32) -> (i32, i32) {
    %c0_i32 = arith.constant 0 : i32
    %c0_i32_0 = arith.constant 0 : i32
    %c0_i32_1 = arith.constant 0 : i32
    return %c0_i32, %c0_i32_0 : i32, i32
  }
  func.func @transform_7(%arg0: i32) -> (i32, i32) {
    %c0_i32 = arith.constant 0 : i32
    %c0_i32_0 = arith.constant 0 : i32
    %c0_i32_1 = arith.constant 0 : i32
    return %c0_i32, %c0_i32_0 : i32, i32
  }
  func.func @transform_8(%arg0: i32) -> (i32, i32) {
    %c0_i32 = arith.constant 0 : i32
    %c0_i32_0 = arith.constant 0 : i32
    %c0_i32_1 = arith.constant 0 : i32
    return %c0_i32, %c0_i32_0 : i32, i32
  }
  func.func @transform_9(%arg0: i32) -> (i32, i32) {
    %c0_i32 = arith.constant 0 : i32
    %c0_i32_0 = arith.constant 0 : i32
    %c0_i32_1 = arith.constant 0 : i32
    return %c0_i32, %c0_i32_0 : i32, i32
  }
  func.func @transform_10(%arg0: i32) -> (i32, i32) {
    %c0_i32 = arith.constant 0 : i32
    %c0_i32_0 = arith.constant 0 : i32
    %c0_i32_1 = arith.constant 0 : i32
    return %c0_i32, %c0_i32_0 : i32, i32
  }
  func.func @transform_11(%arg0: i32) -> (i32, i32) {
    %c0_i32 = arith.constant 0 : i32
    %c0_i32_0 = arith.constant 0 : i32
    %c0_i32_1 = arith.constant 0 : i32
    return %c0_i32, %c0_i32_0 : i32, i32
  }
  func.func @transform_12(%arg0: i32) -> (i32, i32) {
    %c0_i32 = arith.constant 0 : i32
    %c0_i32_0 = arith.constant 0 : i32
    %c0_i32_1 = arith.constant 0 : i32
    return %c0_i32, %c0_i32_0 : i32, i32
  }
  func.func @transform_13(%arg0: i32) -> (i32, i32) {
    %c0_i32 = arith.constant 0 : i32
    %c0_i32_0 = arith.constant 0 : i32
    %c0_i32_1 = arith.constant 0 : i32
    return %c0_i32, %c0_i32_0 : i32, i32
  }
  func.func @transform_14(%arg0: i32) -> (i32, i32) {
    %c0_i32 = arith.constant 0 : i32
    %c0_i32_0 = arith.constant 0 : i32
    %c0_i32_1 = arith.constant 0 : i32
    return %c0_i32, %c0_i32_0 : i32, i32
  }
  func.func @transform_15(%arg0: i32) -> (i32, i32) {
    %c0_i32 = arith.constant 0 : i32
    %c0_i32_0 = arith.constant 0 : i32
    %c0_i32_1 = arith.constant 0 : i32
    return %c0_i32, %c0_i32_0 : i32, i32
  }
  func.func @transform_16(%arg0: i32) -> (i32, i32) {
    %c0_i32 = arith.constant 0 : i32
    %c0_i32_0 = arith.constant 0 : i32
    %c0_i32_1 = arith.constant 0 : i32
    return %c0_i32, %c0_i32_0 : i32, i32
  }
  func.func @transform_17(%arg0: i32) -> (i32, i32) {
    %c0_i32 = arith.constant 0 : i32
    %c0_i32_0 = arith.constant 0 : i32
    %c0_i32_1 = arith.constant 0 : i32
    return %c0_i32, %c0_i32_0 : i32, i32
  }
  func.func @transform_18(%arg0: i32) -> (i32, i32) {
    %c0_i32 = arith.constant 0 : i32
    %c0_i32_0 = arith.constant 0 : i32
    return %arg0, %c0_i32 : i32, i32
  }
}

</mosaic_0001>

<bundles_post_ra>
// kernel: tpu_custom_call.1
= control target key start
LH: loop header
LB: loop body
LE: loop exit
PB: predicated region body
PF: predicated region fallthrough
CT: control target
= control target key end

     0   :  { %s8949_s0 = inlined_call_operand.hbm [shape: f32[16,128], index: 0, kind: input, shape index: {}]   ;;  %s8950_s1 = inlined_call_operand.hbm [shape: f32[16,128], index: 1, kind: input, shape index: {}]   ;;  %s8951_s2 = inlined_call_operand.hbm [shape: bf16[128,384], index: 2, kind: input, shape index: {}]   ;;  %s8952_s3 = inlined_call_operand.hbm [shape: f32[1,384], index: 3, kind: input, shape index: {}]   ;;  %s8953_s4 = inlined_call_operand.hbm [shape: bf16[128,128], index: 4, kind: input, shape index: {}]   ;;  %s8954_s5 = inlined_call_operand.hbm [shape: f32[1,128], index: 5, kind: input, shape index: {}]   ;;  %s8955_s6 = inlined_call_operand.hbm [shape: bf16[128,128], index: 6, kind: input, shape index: {}]   ;;  %s8956_s7 = inlined_call_operand.vmem [shape: f32[1,128], index: 7, kind: input, shape index: {}]   ;;  %s8957_s8 = inlined_call_operand.hbm [shape: bf16[128,256], index: 8, kind: input, shape index: {}]   ;;  %s8958_s9 = inlined_call_operand.vmem [shape: f32[1,256], index: 9, kind: input, shape index: {}]   ;;  %s8959_s10 = inlined_call_operand.hbm [shape: bf16[128,128], index: 10, kind: input, shape index: {}]   ;;  %s8960_s11 = inlined_call_operand.vmem [shape: f32[1,128], index: 11, kind: input, shape index: {}]   ;;  %s8961_s12 = inlined_call_operand.hbm [shape: bf16[128,128], index: 12, kind: input, shape index: {}]   ;;  %s8962_s13 = inlined_call_operand.vmem [shape: f32[1,128], index: 13, kind: input, shape index: {}]   ;;  %s8963_s14 = inlined_call_operand.hbm [shape: bf16[128,128], index: 14, kind: input, shape index: {}]   ;;  %s8964_s15 = inlined_call_operand.vmem [shape: f32[1,128], index: 15, kind: input, shape index: {}]   ;;  %s8965_s16 = inlined_call_operand.vmem [shape: f32[4,128], index: 16, kind: input, shape index: {}]   ;;  %s8966_s17 = inlined_call_operand.vmem [shape: f32[4,128], index: 17, kind: input, shape index: {}]   ;;  %s8967_s18 = inlined_call_operand.hbm [shape: f32[16,128], index: 18, kind: output, shape index: {}]  }
   0x1   :  { %8979 = sst [smem:[#allocation30_spill]] %s8949_s0 }
   0x2   :  { %8980 = sst [smem:[#allocation31_spill]] %s8950_s1 }
   0x3   :  { %8981 = sst [smem:[#allocation32_spill]] %s8951_s2 }
   0x4   :  { %8982 = sst [smem:[#allocation33_spill]] %s8952_s3 }
   0x5   :  { %8983 = sst [smem:[#allocation34_spill]] %s8953_s4 }
   0x6   :  { %8984 = sst [smem:[#allocation35_spill]] %s8954_s5 }
   0x7   :  { %8985 = sst [smem:[#allocation36_spill]] %s8955_s6 }
   0x8   :  { %8986 = sst [smem:[#allocation37_spill]] %s8956_s7 }
   0x9   :  { %8987 = sst [smem:[#allocation38_spill]] %s8957_s8 }
   0xa   :  { %8988 = sst [smem:[#allocation39_spill]] %s8959_s10 }
   0xb   :  { %8989 = sst [smem:[#allocation40_spill]] %s8960_s11 }
   0xc   :  { %8990 = sst [smem:[#allocation41_spill]] %s8961_s12 }
   0xd   :  { %8991 = sst [smem:[#allocation42_spill]] %s8962_s13 }
   0xe   :  { %8992 = sst [smem:[#allocation43_spill]] %s8963_s14 }
   0xf   :  { %8993 = sst [smem:[#allocation44_spill]] %s8964_s15 }
  0x10   :  { %8994 = sst [smem:[#allocation45_spill]] %s8967_s18 }
  0x11   :  { %23 = vsyncpa [#allocation3], 0 }
  0x12   :  { %25 = vsyncpa [#allocation3 + $0x1], 0 }
  0x13   :  { %26 = vsyncpa [#allocation6], 0 }
  0x14   :  { %28 = vsyncpa [#allocation6 + $0x1], 0 }
  0x15   :  { %29 = vsyncpa [#allocation9], 0 }
  0x16   :  { %30 = vsyncpa [#allocation12], 0 }
  0x17   :  { %31 = vsyncpa [#allocation15], 0 }
  0x18   :  { %32 = vsyncpa [#allocation18], 0 }
  0x19   :  { %33 = vsyncpa [#allocation4], 0 }
  0x1a   :  { %35 = vsyncpa [#allocation4 + $0x1], 0  ;;  %s7794_s27 = smov 0   ;;  %s7796_s28 = smov 0  }
  0x1b   :  { %s7798_s29 = smov 0   ;;  %s7800_s30 = smov 0  }
  0x1c LB: > { %s7673_s0 = smov [#allocation7]   ;;  %s7815_s1 = sadd.s32 4294967295, %s7671_s30   ;;  %s7671_s30 = sphi %s7800_s30, %s9038_s30   ;;  %s7667_s29 = sphi %s7798_s29, %s9037_s29   ;;  %s7663_s28 = sphi %s7796_s28, %s9036_s28   ;;  %s7659_s27 = sphi %s7794_s27, %s9035_s27  }
  0x1d   : > { %s472_s19 = sshll.u32 %s7673_s0, 4  ;;  %p6110_p0 = scmp.ge.s32.totalorder %s7671_s30, 1  ;;  %s473_s19 = int_to_ptr.vmem [resolvable:$true] %s472_s19 }
  0x1e   : > { %p8975_p1 = scmp.eq.s32.totalorder %s7815_s1, 0  ;;  %p460_p2 = scmp.lt.s32.totalorder %s7671_s30, 3 }
  0x1f   : > { %s7674_s21 = smov [#allocation8]   ;;  %s7675_s23 = smov [#allocation11]  }
  0x20   : > { %p7820_p3 = pnand %p6110_p0, %p460_p2  ;;  %s486_s22 = sshll.u32 %s7674_s21, 4  ;;  %s487_s22 = int_to_ptr.vmem [resolvable:$true] %s486_s22 }
  0x21   : > { %s510_s24 = sshll.u32 %s7675_s23, 4  ;;  %s7304_s26 = scalar_lea.vmem %s473_s19, 3072  ;;  %s7833_s24 = int_to_ptr.vmem [resolvable:$true] %s510_s24 }
  0x22   : > { %s8995_s20 = scalar_select %p7820_p3, 1, 0 }
  0x23   : > { %p6933_p5 = pneg %p7820_p3  ;;  %p7305_p8 = scmp.ne.s32.totalorder %s473_s19, %s7304_s26 }
  0x24   : > { %p7312_p11 = scmp.lt.s32.totalorder %s473_s19, %s473_s19  ;;  %p7313_p12 = scmp.lt.s32.totalorder %s7304_s26, %s7304_s26 }
  0x25   : > { %p7829_p6 = pnand %p6933_p5, %p8975_p1 }
  0x26   : > { %p7314_p13 = por %p7313_p12, %p7312_p11 }
  0x27   : > { %p7837_p7 = pneg %p7829_p6 }
  0x29   : > { %p7307_p9 = pnand %p7305_p8, %p7837_p7 }
  0x2b   : > { %p7308_p10 = pneg %p7307_p9 }
  0x2d   : > { %p7315_p0 = pnand %p7314_p13, %p7308_p10 }
  0x2f   : > { %7318 = shalt.err (!%p7315_p0)
}
  0x30   : > { %s7676_s0 = smov 192   ;;  %s7677_s21 = smov 12  }
  0x31   : > { %s8998_s15 = sld [smem:[#allocation32_spill]]  ;;  %s7330_s13 = scalar_lea.vmem %s487_s22, 48 }
  0x32   : > { %p7331_p2 = scmp.ne.s32.totalorder %s487_s22, %s7330_s13  ;;  %s7337_s11 = scalar_lea.vmem %s487_s22, 64 }
  0x33   : > { %p7338_p9 = scmp.lt.s32.totalorder %s487_s22, %s487_s22  ;;  %p7339_p4 = scmp.lt.s32.totalorder %s7337_s11, %s7330_s13 }
  0x34   : > { %p7333_p5 = pnand %p7331_p2, %p7837_p7 }
  0x35   : > { %p7340_p11 = por %p7339_p4, %p7338_p9 }
  0x36   : > { %p7334_p8 = pneg %p7333_p5 }
  0x37   : > { %6936 = dma.hbm_to_vmem [thread:$0]  (!%p7829_p6), %s8998_s15, 3072, %s473_s19, [#allocation6], %s7676_s0, %s7676_s0, %s7677_s21  }
  0x38   : > { %p7341_p10 = pnand %p7340_p11, %p7334_p8 }
  0x3a   : > { %7344 = shalt.err (!%p7341_p10)
}
  0x3b   : > { %s8999_s3 = sld [smem:[#allocation33_spill]]  ;;  %s7356_s15 = scalar_lea.vmem %s7833_s24, 16 }
  0x3c   : > { %p7357_p12 = scmp.ne.s32.totalorder %s7833_s24, %s7356_s15  ;;  %s7363_s11 = scalar_lea.vmem %s7833_s24, 32 }
  0x3d   : > { %p7364_p4 = scmp.lt.s32.totalorder %s7833_s24, %s7833_s24  ;;  %p7365_p2 = scmp.lt.s32.totalorder %s7363_s11, %s7356_s15 }
  0x3e   : > { %p7359_p13 = pnand %p7357_p12, %p7837_p7 }
  0x3f   : > { %p7366_p5 = por %p7365_p2, %p7364_p4 }
  0x40   : > { %p7360_p0 = pneg %p7359_p13 }
  0x41   : > { %6939 = dma.hbm_to_vmem [thread:$0]  (!%p7829_p6), %s8999_s3, 48, %s487_s22, [#allocation9]  }
  0x42   : > { %p7367_p8 = pnand %p7366_p5, %p7360_p0 }
  0x44   : > { %7370 = shalt.err (!%p7367_p8)
}
  0x45   : > { %s9000_s5 = sld [smem:[#allocation35_spill]]  ;;  %s7678_s18 = smov [#allocation14]  }
  0x46   : > { %s536_s19 = sshll.u32 %s7678_s18, 4  ;;  %s537_s19 = int_to_ptr.vmem [resolvable:$true] %s536_s19 }
  0x47   : > { %s7382_s22 = scalar_lea.vmem %s537_s19, 2048  ;;  %p7390_p12 = scmp.lt.s32.totalorder %s537_s19, %s537_s19 }
  0x48   : > { %p7383_p9 = scmp.ne.s32.totalorder %s537_s19, %s7382_s22  ;;  %p7391_p13 = scmp.lt.s32.totalorder %s7382_s22, %s7382_s22 }
  0x4a   : > { %p7385_p11 = pnand %p7383_p9, %p7837_p7  ;;  %p7392_p0 = por %p7391_p13, %p7390_p12 }
  0x4b   : > { %6945 = dma.hbm_to_vmem [thread:$0]  (!%p7829_p6), %s9000_s5, 16, %s7833_s24, [#allocation12]  }
  0x4c   : > { %p7386_p10 = pneg %p7385_p11 }
  0x4e   : > { %p7393_p4 = pnand %p7392_p0, %p7386_p10 }
  0x50   : > { %7396 = shalt.err (!%p7393_p4)
}
  0x51   : > { %s7679_s0 = smov 128   ;;  %s7680_s21 = smov 8  }
  0x52   : > { %s9001_s8 = sld [smem:[#allocation38_spill]]  ;;  %s7681_s26 = smov [#allocation17]  }
  0x53   : > { %s568_s15 = sshll.u32 %s7681_s26, 4  ;;  %s7682_s11 = smov [#allocation10]   ;;  %s569_s15 = int_to_ptr.vmem [resolvable:$true] %s568_s15 }
  0x54   : > { %s496_s7 = sshll.u32 %s7682_s11, 4  ;;  %s7408_s13 = scalar_lea.vmem %s569_s15, 1024  ;;  %s497_s7 = int_to_ptr.vmem [resolvable:$true] %s496_s7 }
  0x55   : > { %p7409_p2 = scmp.ne.s32.totalorder %s569_s15, %s7408_s13  ;;  %p7416_p9 = scmp.lt.s32.totalorder %s569_s15, %s569_s15 }
  0x56   : > { %p7417_p11 = scmp.lt.s32.totalorder %s7408_s13, %s7408_s13 }
  0x57   : > { %p7411_p5 = pnand %p7409_p2, %p7837_p7 }
  0x58   : > { %6951 = dma.hbm_to_vmem [thread:$0]  (!%p7829_p6), %s9001_s8, 2048, %s537_s19, [#allocation15], %s7679_s0, %s7679_s0, %s7680_s21  }
  0x59   : > { %p7412_p8 = pneg %p7411_p5  ;;  %p7418_p10 = por %p7417_p11, %p7416_p9 }
  0x5b   : > { %p7419_p12 = pnand %p7418_p10, %p7412_p8 }
  0x5d   : > { %7422 = shalt.err (!%p7419_p12)
}
  0x5e   : > { %s7683_s18 = smov 64   ;;  %s7684_s19 = smov 4  }
  0x5f   : > { %s9002_s12 = sld [smem:[#allocation41_spill]]  ;;  %s7434_s21 = scalar_lea.vmem %s497_s7, 1024 }
  0x60   : > { %p7435_p13 = scmp.ne.s32.totalorder %s497_s7, %s7434_s21  ;;  %p7442_p2 = scmp.lt.s32.totalorder %s497_s7, %s497_s7 }
  0x61   : > { %p7443_p5 = scmp.lt.s32.totalorder %s7434_s21, %s7434_s21 }
  0x62   : > { %p7437_p0 = pnand %p7435_p13, %p7837_p7 }
  0x63   : > { %p7444_p8 = por %p7443_p5, %p7442_p2 }
  0x64   : > { %p7438_p4 = pneg %p7437_p0 }
  0x65   : > { %6957 = dma.hbm_to_vmem [thread:$0]  (!%p7829_p6), %s9002_s12, 1024, %s569_s15, [#allocation18], %s7683_s18, %s7683_s18, %s7684_s19  }
  0x66   : > { %p7445_p9 = pnand %p7444_p8, %p7438_p4 }
  0x68   : > { %7448 = shalt.err (!%p7445_p9)
}
  0x69   : > { %s9003_s4 = sld [smem:[#allocation34_spill]]  ;;  %s7685_s26 = smov [#allocation13]  }
  0x6a   : > { %s520_s15 = sshll.u32 %s7685_s26, 4  ;;  %s7686_s11 = smov [#allocation16]   ;;  %s521_s15 = int_to_ptr.vmem [resolvable:$true] %s520_s15 }
  0x6b   : > { %s552_s13 = sshll.u32 %s7686_s11, 4  ;;  %s7460_s22 = scalar_lea.vmem %s521_s15, 1024  ;;  %s553_s13 = int_to_ptr.vmem [resolvable:$true] %s552_s13 }
  0x6c   : > { %p7461_p11 = scmp.ne.s32.totalorder %s521_s15, %s7460_s22  ;;  %p7468_p13 = scmp.lt.s32.totalorder %s521_s15, %s521_s15 }
  0x6d   : > { %p7469_p0 = scmp.lt.s32.totalorder %s7460_s22, %s7460_s22 }
  0x6e   : > { %p7463_p10 = pnand %p7461_p11, %p7837_p7 }
  0x6f   : > { %6942 = dma.hbm_to_vmem [thread:$0]  (!%p7829_p6), %s9003_s4, 1024, %s497_s7, [#allocation9], %s7683_s18, %s7683_s18, %s7684_s19  }
  0x70   : > { %p7464_p12 = pneg %p7463_p10  ;;  %p7470_p4 = por %p7469_p0, %p7468_p13 }
  0x72   : > { %p7471_p2 = pnand %p7470_p4, %p7464_p12 }
  0x74   : > { %7474 = shalt.err (!%p7471_p2)
}
  0x75   : > { %s9004_s6 = sld [smem:[#allocation36_spill]]  ;;  %s7486_s21 = scalar_lea.vmem %s553_s13, 1024 }
  0x76   : > { %p7487_p5 = scmp.ne.s32.totalorder %s553_s13, %s7486_s21  ;;  %p7494_p11 = scmp.lt.s32.totalorder %s553_s13, %s553_s13 }
  0x77   : > { %p7495_p10 = scmp.lt.s32.totalorder %s7486_s21, %s7486_s21 }
  0x78   : > { %p7489_p8 = pnand %p7487_p5, %p7837_p7 }
  0x79   : > { %p7496_p13 = por %p7495_p10, %p7494_p11 }
  0x7a   : > { %p7490_p9 = pneg %p7489_p8 }
  0x7b   : > { %6948 = dma.hbm_to_vmem [thread:$0]  (!%p7829_p6), %s9004_s6, 1024, %s521_s15, [#allocation12], %s7683_s18, %s7683_s18, %s7684_s19  }
  0x7c   : > { %p7497_p12 = pnand %p7496_p13, %p7490_p9 }
  0x7e   : > { %7500 = shalt.err (!%p7497_p12)
}
  0x7f   : > { %s9005_s10 = sld [smem:[#allocation39_spill]]  ;;  %s7687_s26 = smov [#allocation19]  }
  0x80   : > { %s584_s15 = sshll.u32 %s7687_s26, 4  ;;  %s585_s15 = int_to_ptr.vmem [resolvable:$true] %s584_s15 }
  0x81   : > { %s7512_s11 = scalar_lea.vmem %s585_s15, 1024  ;;  %p7520_p5 = scmp.lt.s32.totalorder %s585_s15, %s585_s15 }
  0x82   : > { %p7513_p0 = scmp.ne.s32.totalorder %s585_s15, %s7512_s11  ;;  %p7521_p8 = scmp.lt.s32.totalorder %s7512_s11, %s7512_s11 }
  0x84   : > { %p7515_p4 = pnand %p7513_p0, %p7837_p7  ;;  %p7522_p9 = por %p7521_p8, %p7520_p5 }
  0x85   : > { %6954 = dma.hbm_to_vmem [thread:$0]  (!%p7829_p6), %s9005_s10, 1024, %s553_s13, [#allocation15], %s7683_s18, %s7683_s18, %s7684_s19  }
  0x86   : > { %p7516_p2 = pneg %p7515_p4 }
  0x88   : > { %p7523_p11 = pnand %p7522_p9, %p7516_p2 }
  0x8a   : > { %7526 = shalt.err (!%p7523_p11)
}
  0x8b   : > { %s9006_s14 = sld [smem:[#allocation43_spill]]  ;;  %s6109_s2 = sadd.s32 4294967294, %s7671_s30  }
  0x8c   : > { %s7927_s25 = sadd.s32 1, %s7671_s30   ;;  %s48_s7 = sadd.s32 1, %s7667_s29 }
  0x8d   : > { %s45_s0 = ssub.s32 %s7671_s30, %s7927_s25  ;;  %p55_p7 = scmp.ne.s32.totalorder %s7667_s29, %s7663_s28 }
  0x8e   : > { %p46_p10 = scmp.eq.s32.totalorder %s45_s0, 0  ;;  %p56_p13 = scmp.eq.s32.totalorder %s7671_s30, 0 }
  0x8f   : > { %p61_p12 = scmp.ne.s32.totalorder %s7663_s28, %s7659_s27  ;;  %p447_p0 = scmp.eq.s32.totalorder %s7815_s1, 1 }
  0x90   : > { %s7939_s21 = scalar_select %p46_p10, %s7667_s29, %s48_s7  }
  0x91   : > { %6960 = dma.hbm_to_vmem [thread:$0]  (!%p7829_p6), %s9006_s14, 1024, %s585_s15, [#allocation18], %s7683_s18, %s7683_s18, %s7684_s19  }
  0x92   : > { %9007 = sst [smem:[#allocation29_spill]] %s7939_s21  ;;  %p57_p4 = por %p56_p13, %p55_p7 }
  0x93   : > { %p7943_p2 = por %p8975_p1, %p61_p12  ;;  %p7947_p6 = por %p447_p0, %p55_p7 }
  0x94   : > { %p453_p5 = scmp.eq.s32.totalorder %s6109_s2, 1  ;;  %p6981_p8 = scmp.lt.s32.totalorder %s7671_s30, 2 }
  0x95   : > { %s9008_s23 = scalar_select %p7943_p2, 1, 0 }
  0x96   : > { %s9009_s18 = scalar_select %p7947_p6, 1, 0 }
  0x97   : > { %s607_s19 = sand.u32 1, %s7667_s29   ;;  %p7953_p9 = por %p453_p5, %p61_p12 }
  0x98   : > { %s7957_s26 = sshll.u32 %s607_s19, 3  ;;  %s6122_s15 = sshll.u32 %s7671_s30, 7 }
  0x99   : > { %s9010_s24 = scalar_select %p7953_p9, 1, 0 }
  0x9a   : > { %s9011_s13 = sld [smem:[#allocation30_spill]]  ;;  %s611_s0 = scalar_lea.vmem [#allocation2], %s7957_s26 }
  0x9b   : > { %s618_s2 = sshll.u32 %s611_s0, 4  ;;  %p7966_p11 = pnand %p6981_p8, %p57_p4  ;;  %s619_s2 = int_to_ptr.vmem [resolvable:$true] %s618_s2 }
  0x9c   : > { %s9013_s6 = sld [smem:[#allocation31_spill]]  ;;  %s608_s11 = scalar_lea.sflag [#allocation3], %s607_s19 }
  0x9d   : > { %p7529_p10 = pneg %p7966_p11 }
  0xa0   : > { %s7963_s7 = scalar_lea.hbm %s9011_s13, %s6122_s15  ;;  %s7532_s12 = scalar_lea.hbm %s9011_s13, 256 }
  0xa1   : > { %s7527_s22 = scalar_lea.hbm %s7963_s7, 128  ;;  %p7533_p0 = scmp.lt.s32.totalorder %s7963_s7, %s9011_s13 }
  0xa2   : > { %s7973_s8 = scalar_lea.hbm %s9013_s6, %s6122_s15  ;;  %p7528_p7 = scmp.ne.s32.totalorder %s7963_s7, %s7527_s22 }
  0xa3   : > { %p7534_p4 = scmp.lt.s32.totalorder %s7532_s12, %s7527_s22 }
  0xa4   : > { %p7530_p13 = pnand %p7529_p10, %p7528_p7 }
  0xa5   : > { %p7535_p5 = por %p7534_p4, %p7533_p0 }
  0xa6   : > { %p7531_p12 = pneg %p7530_p13 }
  0xa8   : > { %p7536_p8 = pnand %p7535_p5, %p7531_p12 }
  0xaa   : > { %7539 = shalt.err (!%p7536_p8)
}
  0xab   : > { %s7540_s4 = scalar_lea.vmem %s619_s2, 128  ;;  %s7688_s5 = smov [#allocation2]  }
  0xac   : > { %p7541_p1 = scmp.ne.s32.totalorder %s619_s2, %s7540_s4  ;;  %s7545_s19 = sshll.u32 %s7688_s5, 4  ;;  %s7546_s19 = int_to_ptr.vmem [resolvable:$false] %s7545_s19 }
  0xad   : > { %s7547_s10 = scalar_lea.vmem %s7546_s19, 256  ;;  %p7548_p13 = scmp.lt.s32.totalorder %s619_s2, %s7546_s19 }
  0xae   : > { %p7543_p9 = pnand %p7541_p1, %p7529_p10  ;;  %p7549_p6 = scmp.lt.s32.totalorder %s7547_s10, %s7540_s4 }
  0xb0   : > { %p7544_p7 = pneg %p7543_p9  ;;  %p7550_p2 = por %p7549_p6, %p7548_p13 }
  0xb2   : > { %p7551_p3 = pnand %p7550_p2, %p7544_p7 }
  0xb4   : > { %7554 = shalt.err (!%p7551_p3)
}
  0xb5   : > { %6964 = dma.hbm_to_vmem [thread:$0]  (!%p7966_p11), %s7963_s7, 128, %s619_s2, %s608_s11  }
  0xb6   : > { %s625_s12 = sand.u32 1, %s7671_s30   ;;  %s629_s14 = scalar_lea.vmem [#allocation5], %s7957_s26 }
  0xb7   : > { %s636_s21 = sshll.u32 %s629_s14, 4  ;;  %s626_s15 = scalar_lea.sflag [#allocation6], %s625_s12  ;;  %s637_s21 = int_to_ptr.vmem [resolvable:$true] %s636_s21 }
  0xb8   : > { %s7555_s22 = scalar_lea.hbm %s7973_s8, 128  ;;  %s7560_s5 = scalar_lea.hbm %s9013_s6, 256 }
  0xb9   : > { %p7556_p1 = scmp.ne.s32.totalorder %s7973_s8, %s7555_s22  ;;  %p7561_p6 = scmp.lt.s32.totalorder %s7973_s8, %s9013_s6 }
  0xba   : > { %p7562_p9 = scmp.lt.s32.totalorder %s7560_s5, %s7555_s22 }
  0xbb   : > { %p7558_p3 = pnand %p7556_p1, %p7529_p10 }
  0xbc   : > { %p7563_p12 = por %p7562_p9, %p7561_p6 }
  0xbd   : > { %p7559_p2 = pneg %p7558_p3 }
  0xbf   : > { %p7564_p0 = pnand %p7563_p12, %p7559_p2 }
  0xc1   : > { %7567 = shalt.err (!%p7564_p0)
}
  0xc2   : > { %s7568_s26 = scalar_lea.vmem %s637_s21, 128  ;;  %s7689_s7 = smov [#allocation5]  }
  0xc3   : > { %p7569_p4 = scmp.ne.s32.totalorder %s637_s21, %s7568_s26  ;;  %s7573_s2 = sshll.u32 %s7689_s7, 4  ;;  %s7574_s2 = int_to_ptr.vmem [resolvable:$false] %s7573_s2 }
  0xc4   : > { %s7575_s11 = scalar_lea.vmem %s7574_s2, 256  ;;  %p7576_p7 = scmp.lt.s32.totalorder %s637_s21, %s7574_s2 }
  0xc5   : > { %p7571_p5 = pnand %p7569_p4, %p7529_p10  ;;  %p7577_p13 = scmp.lt.s32.totalorder %s7575_s11, %s7568_s26 }
  0xc7   : > { %p7572_p8 = pneg %p7571_p5  ;;  %p7578_p1 = por %p7577_p13, %p7576_p7 }
  0xc9   : > { %p7579_p3 = pnand %p7578_p1, %p7572_p8 }
  0xcb   : > { %7582 = shalt.err (!%p7579_p3)
}
  0xcc   : > { %6967 = dma.hbm_to_vmem [thread:$0]  (!%p7966_p11), %s7973_s8, 128, %s637_s21, %s626_s15  }
  0xcd   : > { %p9014_p2 = scmp.ne.s32.totalorder %s8995_s20, 0 }
  0xce   : > { %s8018_s12 = sand.u32 (!%p9014_p2), 1, %s7663_s28   ;;  %p9015_p10 = scmp.ne.s32.totalorder (!%p9014_p2), %s9008_s23, 0 }
  0xcf   : > { %645 = sbr.rel (%p9014_p2) target bundleno = 8927 (0x22df), region = 92  ;;  %s8021_s14 = sshll.u32 (!%p9014_p2), %s8018_s12, 3 }
  0xd0   : > { %s648_s22 = scalar_lea.sflag (!%p9014_p2), [#allocation3], %s8018_s12  ;;  %s651_s0 = scalar_lea.vmem (!%p9014_p2), [#allocation2], %s8021_s14 }
  0xd4   : > { %7626 = dma.done.wait (%p9015_p10), %s648_s22, 128  }
  0xd5   : > { %7628 = vsyncadd (%p9015_p10), %s648_s22, 4294967168  ;;  %s656_s3 = sand.u32 1, %s7815_s1   ;;  %s660_s20 = scalar_lea.vmem [#allocation5], %s8021_s14 }
  0xd6   : > { %s657_s8 = scalar_lea.sflag [#allocation6], %s656_s3 }
  0xd7   : > { %7630 = dma.done.wait (%p9015_p10), %s657_s8, 128  }
  0xd8   : > { %7632 = vsyncadd (%p9015_p10), %s657_s8, 4294967168  ;;  %p9016_p11 = scmp.eq.s32.totalorder %s7815_s1, 0 }
  0xda   : > { %7634 = dma.done.wait (%p9016_p11), [#allocation6], 3072   ;;  %p9017_p6 = pmov %p9016_p11 }
  0xdc   : > { %7636 = vsyncadd (%p9017_p6), [#allocation6], 4294964224  ;;  %p9018_p9 = pmov %p9017_p6 }
  0xdd   : > { %p9019_p12 = pmov %p9017_p6 }
  0xde   : > { %7638 = dma.done.wait (%p9018_p9), [#allocation9], 1072  }
  0xdf   : > { %7640 = vsyncadd (%p9019_p12), [#allocation9], 4294966224  ;;  %p9020_p0 = pmov %p9017_p6 }
  0xe1   : > { %7642 = dma.done.wait (%p9020_p0), [#allocation12], 1040   ;;  %p9021_p4 = pmov %p9020_p0 }
  0xe2   : > { %p9022_p5 = pmov %p9020_p0 }
  0xe3   : > { %7644 = vsyncadd (%p9021_p4), [#allocation12], 4294966256 }
  0xe4   : > { %7646 = dma.done.wait (%p9022_p5), [#allocation15], 3072   ;;  %p9023_p8 = pmov %p9020_p0 }
  0xe5   : > { %p9024_p7 = pmov %p9020_p0 }
  0xe6   : > { %7648 = vsyncadd (%p9023_p8), [#allocation15], 4294964224 }
  0xe7   : > { %7650 = dma.done.wait (%p9024_p7), [#allocation18], 2048   ;;  %p9025_p13 = pmov %p9020_p0 }
  0xe8   : > { %v7690_v0 = vmov 0   ;;  %v7047_v1 = vld [vmem:[#allocation7 + $0xac] ss:$12 sps:$4 sm:$0xff]   ;;  %v7049_v2 = vld [vmem:[#allocation7 + $0xa8] ss:$12 sps:$4 sm:$0xff]   ;;  %v896_v19 = vlaneseq  ;;  %s7691_s23 = smov 32  }
  0xe9   : > { %7652 = vsyncadd (%p9025_p13), [#allocation18], 4294965248  ;;  %1504 = vmatprep.mubr.bf16.mxu1 %v7690_v0  ;;  %1018 = vmatprep.mubr.bf16.mxu0 %v7690_v0  ;;  %v7050_v3 = vld [vmem:[#allocation7 + $0x94] ss:$12 sps:$4 sm:$0xff]   ;;  %v7052_v4 = vld [vmem:[#allocation7 + $0x90] ss:$12 sps:$4 sm:$0xff]  }
  0xea   : > { %1472 = vmatprep.subr.bf16.mxu1 %v7047_v1  ;;  %v7053_v5 = vld [vmem:[#allocation7 + $0x7c] ss:$12 sps:$4 sm:$0xff]   ;;  %v7055_v6 = vld [vmem:[#allocation7 + $0x78] ss:$12 sps:$4 sm:$0xff]   ;;  %v7058_v8 = vld [vmem:[#allocation7 + $0x60] ss:$12 sps:$4 sm:$0xff]  }
  0xeb   : > { %1473 = vmatpush1.bf16.msra.mxu1 %v7049_v2  ;;  %v7056_v7 = vld [vmem:[#allocation7 + $0x64] ss:$12 sps:$4 sm:$0xff]   ;;  %v7059_v9 = vld [vmem:[#allocation7 + $0x4c] ss:$12 sps:$4 sm:$0xff]   ;;  %v7061_v10 = vld [vmem:[#allocation7 + $0x48] ss:$12 sps:$4 sm:$0xff]  }
  0xec   : > { %1474 = vmatprep.subr.bf16.mxu1 %v7050_v3  ;;  %v7062_v11 = vld [vmem:[#allocation7 + $0x34] ss:$12 sps:$4 sm:$0xff]   ;;  %v7064_v12 = vld [vmem:[#allocation7 + $0x30] ss:$12 sps:$4 sm:$0xff]   ;;  %v7067_v14 = vld [vmem:[#allocation7 + $0x18] ss:$12 sps:$4 sm:$0xff]  }
  0xed   : > { %v7065_v13 = vld [vmem:[#allocation7 + $0x1c] ss:$12 sps:$4 sm:$0xff]   ;;  %v7068_v15 = vld [vmem:[#allocation7 + $0x4] ss:$12 sps:$4 sm:$0xff]   ;;  %v7070_v16 = vld [vmem:[#allocation7] ss:$12 sps:$4 sm:$0xff]  }
  0xee   : > { %v892_v17 = vld [vmem:[%s651_s0] sm:$0xff]  ;;  %v8062_v21 = vshrl.u32 %v896_v19, 7  ;;  %s7692_s21 = smov 96   ;;  %s7693_s15 = smov 64   ;;  %v7694_v44 = vmov 0.0   ;;  %vm7695_vm0 = vmmov 0  }
  0xef   : > { %1475 = vmatpush1.bf16.msra.mxu1 %v7052_v4  ;;  %v8059_v18 = vpack.c.bf16 %v892_v17, %v892_v17  ;;  %v7071_v20 = vld [vmem:[#allocation14 + $0x74] ss:$8 sps:$4 sm:$0xff]   ;;  %v7073_v22 = vld [vmem:[#allocation14 + $0x70] ss:$8 sps:$4 sm:$0xff]   ;;  %v7074_v24 = vld [vmem:[#allocation14 + $0x64] ss:$8 sps:$4 sm:$0xff]  }
  0xf0   : > { %1476 = vmatprep.subr.bf16.mxu1 %v7053_v5  ;;  %986 = vmatprep.subr.bf16.mxu0 %v7071_v20  ;;  %v8065_v23 = vsub.s32 1, %v8062_v21  ;;  %v7076_v25 = vld [vmem:[#allocation14 + $0x60] ss:$8 sps:$4 sm:$0xff]   ;;  %v8067_v26 = vld [vmem:[#allocation8] sm:$0x7]  ;;  %v8070_v27 = vsub.s32 0, %v8062_v21 }
  0xf1   : > { %987 = vmatpush1.bf16.msra.mxu0 %v7073_v22  ;;  %v7077_v30 = vld [vmem:[#allocation14 + $0x54] ss:$8 sps:$4 sm:$0xff]   ;;  %v7079_v32 = vld [vmem:[#allocation14 + $0x50] ss:$8 sps:$4 sm:$0xff]   ;;  %v7080_v36 = vld [vmem:[#allocation14 + $0x44] ss:$8 sps:$4 sm:$0xff]  }
  0xf2   : > { %988 = vmatprep.subr.bf16.mxu0 %v7074_v24  ;;  %v8074_v28 = vrot.slane %v8067_v26, %v8065_v23  ;;  %v8078_v33 = vrot.slane %v8067_v26, %v8070_v27  ;;  %v7082_v38 = vld [vmem:[#allocation14 + $0x40] ss:$8 sps:$4 sm:$0xff]   ;;  %v7083_v40 = vld [vmem:[#allocation14 + $0x34] ss:$8 sps:$4 sm:$0xff]   ;;  %v7085_v41 = vld [vmem:[#allocation14 + $0x30] ss:$8 sps:$4 sm:$0xff]  }
  0xf3   : > { %1477 = vmatpush1.bf16.msra.mxu1 %v7055_v6  ;;  %v7086_v42 = vld [vmem:[#allocation14 + $0x24] ss:$8 sps:$4 sm:$0xff]   ;;  %v7088_v43 = vld [vmem:[#allocation14 + $0x20] ss:$8 sps:$4 sm:$0xff]   ;;  %v7089_v45 = vld [vmem:[#allocation14 + $0x14] ss:$8 sps:$4 sm:$0xff]  }
  0xf4   : > { %1478 = vmatprep.subr.bf16.mxu1 %v7056_v7  ;;  %v7091_v46 = vld [vmem:[#allocation14 + $0x10] ss:$8 sps:$4 sm:$0xff]   ;;  %v7092_v47 = vld [vmem:[#allocation14 + $0x4] ss:$8 sps:$4 sm:$0xff]   ;;  %v7094_v48 = vld [vmem:[#allocation14] ss:$8 sps:$4 sm:$0xff]  }
  0xf5   : > { %989 = vmatpush1.bf16.msra.mxu0 %v7076_v25  ;;  %v893_v49 = vld [vmem:[%s660_s20] sm:$0xff]  ;;  %v7097_v53 = vld [vmem:[#allocation7 + $0x80] ss:$12 sps:$4 sm:$0xff]   ;;  %v7696_v59 = vmov 1983009808   ;;  %vm2003_vm1 = vcmask 261120  }
  0xf6   : > { %990 = vmatprep.subr.bf16.mxu0 %v7077_v30  ;;  %v7095_v50 = vld [vmem:[#allocation7 + $0xb0] ss:$12 sps:$4 sm:$0xff]   ;;  %v894_v51 = vpack.c.bf16 %v893_v49, %v893_v49  ;;  %v7096_v52 = vld [vmem:[#allocation7 + $0x98] ss:$12 sps:$4 sm:$0xff]   ;;  %v7098_v54 = vld [vmem:[#allocation7 + $0x68] ss:$12 sps:$4 sm:$0xff]   ;;  %v1040_v60 = vunpack.c.l.s4 %v7696_v59 }
  0xf7   : > { %1479 = vmatpush1.bf16.msra.mxu1 %v7058_v8  ;;  %v7099_v55 = vld [vmem:[#allocation7 + $0x50] ss:$12 sps:$4 sm:$0xff]   ;;  %v7100_v56 = vld [vmem:[#allocation7 + $0x38] ss:$12 sps:$4 sm:$0xff]   ;;  %v7101_v57 = vld [vmem:[#allocation7 + $0x20] ss:$12 sps:$4 sm:$0xff]  }
  0xf8   : > { %1480 = vmatprep.subr.bf16.mxu1 %v7059_v9  ;;  %v7102_v58 = vld [vmem:[#allocation7 + $0x8] ss:$12 sps:$4 sm:$0xff]   ;;  %v7697_v61 = vmov 1934713408   ;;  %v1041_v63 = vunpack.c.0.s8 %v1040_v60  ;;  %vm2188_vm2 = vcmask 64512   ;;  %vm2240_vm3 = vcmask 1043456  }
  0xf9   : > { %991 = vmatpush1.bf16.msra.mxu0 %v7079_v32  ;;  %v1072_v62 = vunpack.c.l.s4 %v7697_v61  ;;  %vm2571_vm4 = vcmask 523264   ;;  %vm2573_vm5 = vcmask 785408   ;;  %s9026_s22 = sld [smem:[#allocation37_spill]]  ;;  %s6284_s7 = sshll.u32 %s7815_s1, 7 }
  0xfa   : > { %992 = vmatprep.subr.bf16.mxu0 %v7080_v36  ;;  %v8118_v4 = vsub.s32 %v1041_v63, %v8062_v21  ;;  %s9027_s8 = sld [smem:[#allocation40_spill]]  ;;  %s753_s2 = scalar_lea.vmem [#allocation20], %s8021_s14 }
  0xfb   : > { %1481 = vmatpush1.bf16.msra.mxu1 %v7061_v10  ;;  %v1073_v3 = vunpack.c.0.s8 %v1072_v62  ;;  %s9028_s5 = sld [smem:[#allocation42_spill]]  ;;  %s5918_s3 = scalar_lea.sflag [#allocation4], %s8018_s12 }
  0xfc   : > { %1482 = vmatprep.subr.bf16.mxu1 %v7062_v11  ;;  %s9029_s26 = sld [smem:[#allocation44_spill]]  ;;  %p9031_p3 = scmp.ne.s32.totalorder %s9009_s18, 0 }
  0xfd   : > { %993 = vmatpush1.bf16.msra.mxu0 %v7082_v38  ;;  %v8123_v11 = vsub.s32 %v1073_v3, %v8062_v21  ;;  %s9030_s11 = sld [smem:[#allocation45_spill]]  ;;  %s7698_s4 = smov [#allocation20]  }
  0xfe   : > { %994 = vmatprep.subr.bf16.mxu0 %v7083_v40  ;;  %s7587_s19 = sshll.u32 %s7698_s4, 4  ;;  %s7588_s19 = int_to_ptr.vmem [resolvable:$false] %s7587_s19 }
  0xff   : > { %1483 = vmatpush1.bf16.msra.mxu1 %v7064_v12  ;;  %s7589_s1 = scalar_lea.vmem %s7588_s19, 256 }
 0x100   : > { %1484 = vmatprep.subr.bf16.mxu1 %v7065_v13 }
 0x101   : > { %995 = vmatpush1.bf16.msra.mxu0 %v7085_v41 }
 0x102   : > { %996 = vmatprep.subr.bf16.mxu0 %v7086_v42 }
 0x103   : > { %1485 = vmatpush1.bf16.msra.mxu1 %v7067_v14 }
 0x104   : > { %1486 = vmatprep.subr.bf16.mxu1 %v7068_v15 }
 0x105   : > { %997 = vmatpush1.bf16.msra.mxu0 %v7088_v43 }
 0x106   : > { %998 = vmatprep.subr.bf16.mxu0 %v7089_v45 }
 0x107   : > { %1487 = vmatpush1.bf16.msra.mxu1 %v7070_v16 }
 0x108   : > { %6479 = vmatprep.subr.bf16.mxu1 %v7694_v44 }
 0x109   : > { %999 = vmatpush1.bf16.msra.mxu0 %v7091_v46 }
 0x10a   : > { %1505 = vmatmul.mubr.bf16.vlgmr.msra.gmra.mxu1 %v8059_v18  ;;  %1000 = vmatprep.subr.bf16.mxu0 %v7092_v47 }
 0x10b   : > { %6481 = vmatprep.mubr.msk.bf16.mxu1 %vm7695_vm0, %v7694_v44 }
 0x10d   : > { %1001 = vmatpush1.bf16.msra.mxu0 %v7094_v48 }
 0x10e   : > { %6459 = vmatprep.subr.bf16.mxu0 %v7694_v44 }
 0x110   : > { %1019 = vmatmul.mubr.bf16.vlgmr.msra.gmra.mxu0 %v894_v51 }
 0x111   : > { %6460 = vmatpush3.bf16.msra.mxu0 %v7095_v50  ;;  %6475 = vmatprep.mubr.msk.bf16.mxu0 %vm7695_vm0, %v7694_v44 }
 0x112   : > { %6461 = vmatprep.subr.bf16.mxu0 %v7694_v44 }
 0x115   : > { %6462 = vmatpush3.bf16.msra.mxu0 %v7096_v52 }
 0x116   : > { %6463 = vmatprep.subr.bf16.mxu0 %v7694_v44 }
 0x119   : > { %6464 = vmatpush3.bf16.msra.mxu0 %v7097_v53 }
 0x11a   : > { %6465 = vmatprep.subr.bf16.mxu0 %v7694_v44 }
 0x11d   : > { %6466 = vmatpush3.bf16.msra.mxu0 %v7098_v54 }
 0x11e   : > { %6467 = vmatprep.subr.bf16.mxu0 %v7694_v44 }
 0x121   : > { %6468 = vmatpush3.bf16.msra.mxu0 %v7099_v55 }
 0x122   : > { %6469 = vmatprep.subr.bf16.mxu0 %v7694_v44 }
 0x125   : > { %6470 = vmatpush3.bf16.msra.mxu0 %v7100_v56 }
 0x126   : > { %6471 = vmatprep.subr.bf16.mxu0 %v7694_v44 }
 0x129   : > { %6472 = vmatpush3.bf16.msra.mxu0 %v7101_v57 }
 0x12a   : > { %6473 = vmatprep.subr.bf16.mxu0 %v7694_v44 }
 0x12d   : > { %6474 = vmatpush3.bf16.msra.mxu0 %v7102_v58 }
 0x12e   : > { %6527 = vmatprep.subr.bf16.mxu0 %v7694_v44 }
 0x130   : > { %6476 = vmatmul.mubr.bf16.vlgmr.msra.gmra.mxu0 %v8059_v18 }
 0x131   : > { %6543 = vmatprep.mubr.msk.bf16.mxu0 %vm7695_vm0, %v7694_v44 }
 0x1ca   : > { %v1506_v29 = vpop.f32.mrf.mxu1 }
 0x1cb   : > { %v8088_v39 = vadd.f32 %v1506_v29, %v8078_v33 }
 0x1cc   : > { %v1508_v31 = vpop.f32.mrf.mxu1 }
 0x1cd   : > { %v8081_v34 = vadd.f32 %v1508_v31, %v8074_v28 }
 0x1ce   : > { %v1510_v35 = vpop.f32.mrf.mxu1 }
 0x1cf   : > { %1560 = vrot.lane.b32.xlu1 %v8081_v34, %s7691_s23  ;;  %1554 = vrot.lane.b32.xlu0 %v8081_v34, %s7692_s21 }
 0x1d0   : > { %v1511_v37 = vpop.f32.mrf.mxu1 }
 0x1d3   : > { %1557 = vrot.lane.b32.xlu0 %v8081_v34, %s7693_s15  ;;  %1854 = vrot.lane.b32.xlu1 %v8088_v39, %s7692_s21 }
 0x1d7   : > { %1857 = vrot.lane.b32.xlu0 %v8088_v39, %s7693_s15  ;;  %1860 = vrot.lane.b32.xlu1 %v8088_v39, %s7691_s23 }
 0x241   : > { %v1561_v1 = vpop.permute.xlu1 %1560  ;;  %v1555_v2 = vpop.permute.xlu0 %1554 }
 0x242   : > { %v1579_v5 = vcombine.low %v1555_v2, %v1561_v1  ;;  %v1580_v6 = vcombine.high %v1555_v2, %v1561_v1 }
 0x244   : > { %v1587_v12 = vrot.slane %v1579_v5, %v8118_v4  ;;  %v1594_v13 = vrot.slane %v1580_v6, %v8118_v4 }
 0x245   : > { %v1558_v7 = vpop.permute.xlu0 %1557  ;;  %v1855_v8 = vpop.permute.xlu1 %1854 }
 0x246   : > { %v1563_v9 = vcombine.low %v8081_v34, %v1558_v7  ;;  %v1564_v10 = vcombine.high %v8081_v34, %v1558_v7 }
 0x248   : > { %v1571_v14 = vrot.slane %v1563_v9, %v8118_v4  ;;  %v1578_v15 = vrot.slane %v1564_v10, %v8118_v4 }
 0x249   : > { %v1858_v16 = vpop.permute.xlu0 %1857  ;;  %v1861_v17 = vpop.permute.xlu1 %1860 }
 0x24a   : > { %v1595_v18 = vcombine.low %v1571_v14, %v1587_v12  ;;  %v1596_v19 = vcombine.high %v1571_v14, %v1587_v12  ;;  %v1611_v20 = vcombine.low %v1578_v15, %v1594_v13  ;;  %v1612_v22 = vcombine.high %v1578_v15, %v1594_v13 }
 0x24b   : > { %v1863_v24 = vcombine.low %v8088_v39, %v1858_v16  ;;  %v1864_v25 = vcombine.high %v8088_v39, %v1858_v16  ;;  %v1879_v29 = vcombine.low %v1855_v8, %v1861_v17  ;;  %v1880_v30 = vcombine.high %v1855_v8, %v1861_v17 }
 0x24c   : > { %v1603_v31 = vrot.slane %v1595_v18, %v8123_v11  ;;  %v1610_v32 = vrot.slane %v1596_v19, %v8123_v11  ;;  %v1619_v34 = vrot.slane %v1611_v20, %v8123_v11  ;;  %v1626_v35 = vrot.slane %v1612_v22, %v8123_v11 }
 0x24d   : > { %v1871_v36 = vrot.slane %v1863_v24, %v8118_v4  ;;  %v1878_v37 = vrot.slane %v1864_v25, %v8118_v4  ;;  %v1887_v38 = vrot.slane %v1879_v29, %v8118_v4  ;;  %v1894_v40 = vrot.slane %v1880_v30, %v8118_v4 }
 0x24e   : > { %v1631_v41 = vcombine.low %v1603_v31, %v1610_v32  ;;  %v6182_v39 = vcombine.high %v1603_v31, %v1610_v32  ;;  %v1647_v42 = vcombine.low %v1619_v34, %v1626_v35  ;;  %v6183_v43 = vcombine.high %v1619_v34, %v1626_v35 }
 0x24f   : > { %v1895_v45 = vcombine.low %v1871_v36, %v1887_v38  ;;  %v1896_v46 = vcombine.high %v1871_v36, %v1887_v38  ;;  %v1911_v47 = vcombine.low %v1878_v37, %v1894_v40  ;;  %v1912_v48 = vcombine.high %v1878_v37, %v1894_v40 }
 0x250   : > { %v1638_v49 = vrot.slane %v1631_v41, %v8118_v4  ;;  %v1646_v50 = vrot.slane %v6182_v39, %v8118_v4  ;;  %v1654_v51 = vrot.slane %v1647_v42, %v8118_v4  ;;  %v1662_v52 = vrot.slane %v6183_v43, %v8118_v4 }
 0x251   : > { %v1903_v53 = vrot.slane %v1895_v45, %v8123_v11  ;;  %v1910_v54 = vrot.slane %v1896_v46, %v8123_v11  ;;  %v1919_v55 = vrot.slane %v1911_v47, %v8123_v11  ;;  %v1926_v56 = vrot.slane %v1912_v48, %v8123_v11  ;;  %v8182_v47 = vld [vmem:[%s8958_s9] sm:$0x3]  ;;  %v8184_v48 = vpop.f32.mrf.mxu0 }
 0x252   : > { %v1663_v57 = vcombine.low %v1638_v49, %v1646_v50  ;;  %v1679_v58 = vcombine.low %v1654_v51, %v1662_v52  ;;  %v1664_v16 = vcombine.high %v1638_v49, %v1646_v50  ;;  %v1680_v17 = vcombine.high %v1654_v51, %v1662_v52 }
 0x253   : > { %v1931_v59 = vcombine.low %v1903_v53, %v1910_v54  ;;  %v6186_v60 = vcombine.high %v1903_v53, %v1910_v54  ;;  %v1947_v61 = vcombine.low %v1919_v55, %v1926_v56  ;;  %v6187_v62 = vcombine.high %v1919_v55, %v1926_v56  ;;  %v1022_v50 = vpop.f32.mrf.mxu0 }
 0x254   : > { %v1671_v63 = vrot.slane %v1663_v57, %v8123_v11  ;;  %v1687_v1 = vrot.slane %v1679_v58, %v8123_v11  ;;  %v1678_v20 = vrot.slane %v1664_v16, %v8123_v11  ;;  %v1694_v22 = vrot.slane %v1680_v17, %v8123_v11 }
 0x255   : > { %v1938_v2 = vrot.slane %v1931_v59, %v8118_v4  ;;  %v1946_v3 = vrot.slane %v6186_v60, %v8118_v4  ;;  %v1954_v5 = vrot.slane %v1947_v61, %v8118_v4  ;;  %v1962_v6 = vrot.slane %v6187_v62, %v8118_v4  ;;  %v1024_v52 = vpop.f32.mrf.mxu0 }
 0x256   : > { %v1695_v7 = vcombine.low %v1671_v63, %v1687_v1  ;;  %v1696_v15 = vcombine.high %v1671_v63, %v1687_v1  ;;  %v1697_v29 = vcombine.low %v1678_v20, %v1694_v22  ;;  %v1698_v40 = vcombine.high %v1678_v20, %v1694_v22 }
 0x257   : > { %v1963_v8 = vcombine.low %v1938_v2, %v1946_v3  ;;  %v1979_v9 = vcombine.low %v1954_v5, %v1962_v6  ;;  %v1964_v30 = vcombine.high %v1938_v2, %v1946_v3  ;;  %v1980_v31 = vcombine.high %v1954_v5, %v1962_v6  ;;  %v1025_v53 = vpop.f32.mrf.mxu0 }
 0x258   : > { %v1699_v10 = vpack.c.bf16 %v1695_v7, %v1695_v7  ;;  %v1700_v19 = vpack.c.bf16 %v1696_v15, %v1696_v15  ;;  %v1701_v34 = vpack.c.bf16 %v1697_v29, %v1697_v29  ;;  %v1702_v39 = vpack.c.bf16 %v1698_v40, %v1698_v40 }
 0x259   : > { %v1971_v12 = vrot.slane %v1963_v8, %v8123_v11  ;;  %v1987_v13 = vrot.slane %v1979_v9, %v8123_v11  ;;  %v1978_v36 = vrot.slane %v1964_v30, %v8123_v11  ;;  %v1994_v37 = vrot.slane %v1980_v31, %v8123_v11  ;;  %v1547_v54 = vpop.f32.mrf.mxu0 }
 0x25a   : > { %v2008_v14 = vsel %vm2003_vm1, %v1699_v10, 0  ;;  %v2054_v25 = vsel %vm2003_vm1, %v1700_v19, 0  ;;  %v2100_v38 = vsel %vm2003_vm1, %v1701_v34, 0  ;;  %v2146_v43 = vsel %vm2003_vm1, %v1702_v39, 0 }
 0x25b   : > { %6480 = vmatpush3.bf16.xpose.msra.mxu1 %v2008_v14  ;;  %v1995_v18 = vcombine.low %v1971_v12, %v1987_v13  ;;  %v1996_v32 = vcombine.high %v1971_v12, %v1987_v13  ;;  %v1997_v41 = vcombine.low %v1978_v36, %v1994_v37  ;;  %v1998_v45 = vcombine.high %v1978_v36, %v1994_v37  ;;  %v6477_v55 = vpop.f32.mrf.mxu0 }
 0x25c   : > { %6485 = vmatprep.subr.bf16.mxu1 %v7694_v44  ;;  %v903_v49 = vrot.slane %v8182_v47, %v8065_v23  ;;  %v8193_v6 = vsub.s32 2, %v8062_v21 }
 0x25d   : > { %v1999_v24 = vpack.c.bf16 %v1995_v18, %v1995_v18  ;;  %v2000_v35 = vpack.c.bf16 %v1996_v32, %v1996_v32  ;;  %v2001_v42 = vpack.c.bf16 %v1997_v41, %v1997_v41  ;;  %v2002_v46 = vpack.c.bf16 %v1998_v45, %v1998_v45  ;;  %v1550_v56 = vpop.f32.mrf.mxu0 }
 0x25e   : > { %v8188_v51 = vadd.f32 %v1022_v50, %v903_v49  ;;  %v8198_v10 = vrot.slane %v8067_v26, %v8193_v6 }
 0x25f   : > { %v6478_v57 = vpop.f32.mrf.mxu0 }
 0x260   : > { %v1548_v14 = vadd.f32 %v1547_v54, %v8198_v10 }
 0x262   : > { %6482 = vmatmul.mubr.msk.bf16.vlgmr.msra.gmra.mxu1 %vm2003_vm1, %v1999_v24 }
 0x263   : > { %6486 = vmatpush3.bf16.xpose.msra.mxu1 %v2054_v25  ;;  %6487 = vmatprep.mubr.msk.bf16.mxu1 %vm7695_vm0, %v7694_v44 }
 0x264   : > { %6491 = vmatprep.subr.bf16.mxu1 %v7694_v44 }
 0x26a   : > { %6488 = vmatmul.mubr.msk.bf16.vlgmr.msra.gmra.mxu1 %vm2003_vm1, %v2000_v35 }
 0x26b   : > { %6492 = vmatpush3.bf16.xpose.msra.mxu1 %v2100_v38  ;;  %6493 = vmatprep.mubr.msk.bf16.mxu1 %vm7695_vm0, %v7694_v44 }
 0x26c   : > { %6497 = vmatprep.subr.bf16.mxu1 %v7694_v44 }
 0x272   : > { %6494 = vmatmul.mubr.msk.bf16.vlgmr.msra.gmra.mxu1 %vm2003_vm1, %v2001_v42 }
 0x273   : > { %6498 = vmatpush3.bf16.xpose.msra.mxu1 %v2146_v43  ;;  %6499 = vmatprep.mubr.msk.bf16.mxu1 %vm7695_vm0, %v7694_v44 }
 0x274   : > { %6503 = vmatprep.subr.bf16.mxu1 %v7694_v44 }
 0x27a   : > { %6500 = vmatmul.mubr.msk.bf16.vlgmr.msra.gmra.mxu1 %vm2003_vm1, %v2002_v46 }
 0x27b   : > { %6505 = vmatprep.mubr.msk.bf16.mxu1 %vm7695_vm0, %v7694_v44 }
 0x322   : > { %v2044_v58 = vpop.f32.mrf.mxu1 }
 0x323   : > { %v2189_v59 = vsel %vm2188_vm2, %v2044_v58, -inf }
 0x324   : > { %2190 = vmax.xlane.f32.xlu0 %v2189_v59  ;;  %v6483_v60 = vpop.f32.mrf.mxu1 }
 0x326   : > { %v2047_v61 = vpop.f32.mrf.mxu1 }
 0x328   : > { %v6484_v62 = vpop.f32.mrf.mxu1 }
 0x32a   : > { %v2090_v63 = vpop.f32.mrf.mxu1 }
 0x32b   : > { %v2192_v1 = vsel %vm2188_vm2, %v2090_v63, -inf }
 0x32c   : > { %2193 = vmax.xlane.f32.xlu1 %v2192_v1  ;;  %v6489_v2 = vpop.f32.mrf.mxu1 }
 0x32e   : > { %v2093_v3 = vpop.f32.mrf.mxu1 }
 0x330   : > { %v6490_v5 = vpop.f32.mrf.mxu1 }
 0x332   : > { %v2136_v7 = vpop.f32.mrf.mxu1 }
 0x333   : > { %v2195_v8 = vsel %vm2188_vm2, %v2136_v7, -inf }
 0x334   : > { %2196 = vmax.xlane.f32.xlu0 %v2195_v8  ;;  %v6495_v9 = vpop.f32.mrf.mxu1 }
 0x336   : > { %v2139_v12 = vpop.f32.mrf.mxu1 }
 0x338   : > { %v6496_v13 = vpop.f32.mrf.mxu1 }
 0x33a   : > { %v2182_v15 = vpop.f32.mrf.mxu1 }
 0x33b   : > { %v2198_v16 = vsel %vm2188_vm2, %v2182_v15, -inf }
 0x33c   : > { %2199 = vmax.xlane.f32.xlu0 %v2198_v16  ;;  %v6501_v17 = vpop.f32.mrf.mxu1 }
 0x33d   : > { %1707 = vrot.lane.b32.xlu1 %v1548_v14, %s7693_s15 }
 0x33e   : > { %v2185_v18 = vpop.f32.mrf.mxu1 }
 0x340   : > { %v6502_v19 = vpop.f32.mrf.mxu1 }
 0x352   : > { %1704 = vrot.lane.b32.xlu0 %v1548_v14, %s7692_s21 }
 0x3ad   : > { %v2191_v20 = vpop.xlane.xlu0 %2190 }
 0x3ae   : > { %v2201_v22 = vsub.f32 %v2044_v58, %v2191_v20 }
 0x3b0   : > { %v2205_v24 = vmul.f32 1.442695, %v2201_v22 }
 0x3b2   : > { %7143 = vpow2.f32 %v2205_v24 }
 0x3b5   : > { %v2194_v26 = vpop.xlane.xlu1 %2193 }
 0x3b6   : > { %v2202_v25 = vsub.f32 %v2090_v63, %v2194_v26 }
 0x3b8   : > { %v2207_v29 = vmul.f32 1.442695, %v2202_v25 }
 0x3b9   : > { %v1708_v46 = vpop.permute.xlu1 %1707 }
 0x3ba   : > { %7145 = vpow2.f32 %v2207_v29  ;;  %v1713_v50 = vcombine.low %v1548_v14, %v1708_v46  ;;  %v1714_v52 = vcombine.high %v1548_v14, %v1708_v46 }
 0x3bc   : > { %v1721_v57 = vrot.slane %v1713_v50, %v8118_v4  ;;  %v1728_v58 = vrot.slane %v1714_v52, %v8118_v4 }
 0x3bd   : > { %v2197_v32 = vpop.xlane.xlu0 %2196 }
 0x3be   : > { %v2203_v39 = vsub.f32 %v2136_v7, %v2197_v32 }
 0x3bf   : > { %v8204_v30 = vpop.eup %7143 }
 0x3c0   : > { %v2213_v31 = vsel %vm2188_vm2, %v8204_v30, 0.0  ;;  %v2209_v42 = vmul.f32 1.442695, %v2203_v39 }
 0x3c1   : > { %2214 = vadd.xlane.f32.xlu1 %v2213_v31 }
 0x3c5   : > { %v2200_v34 = vpop.xlane.xlu0 %2199 }
 0x3c6   : > { %v2204_v35 = vsub.f32 %v2182_v15, %v2200_v34 }
 0x3c7   : > { %v8208_v36 = vpop.eup %7145 }
 0x3c8   : > { %v2211_v37 = vmul.f32 1.442695, %v2204_v35  ;;  %v2216_v38 = vsel %vm2188_vm2, %v8208_v36, 0.0 }
 0x3c9   : > { %2217 = vadd.xlane.f32.xlu0 %v2216_v38  ;;  %v1705_v53 = vpop.permute.xlu0 %1704 }
 0x3ca   : > { %7147 = vpow2.f32 %v2211_v37 }
 0x3cb   : > { %7149 = vpow2.f32 %v2209_v42 }
 0x3d2   : > { %1710 = vrot.lane.b32.xlu1 %v1548_v14, %s7691_s23 }
 0x3d7   : > { %v8213_v40 = vpop.eup %7147 }
 0x3d8   : > { %v2222_v41 = vsel %vm2188_vm2, %v8213_v40, 0.0  ;;  %v8217_v43 = vpop.eup %7149 }
 0x3d9   : > { %2223 = vadd.xlane.f32.xlu0 %v2222_v41  ;;  %v2219_v45 = vsel %vm2188_vm2, %v8217_v43, 0.0 }
 0x3f6   : > { %2220 = vadd.xlane.f32.xlu1 %v2219_v45 }
 0x44a   : > { %v2215_v49 = vpop.xlane.xlu1 %2214 }
 0x44b   : > { %7151 = vrcp.f32 %v2215_v49 }
 0x44e   : > { %v1711_v54 = vpop.permute.xlu1 %1710 }
 0x44f   : > { %v1729_v55 = vcombine.low %v1705_v53, %v1711_v54  ;;  %v1730_v56 = vcombine.high %v1705_v53, %v1711_v54 }
 0x451   : > { %v1737_v59 = vrot.slane %v1729_v55, %v8118_v4  ;;  %v1744_v60 = vrot.slane %v1730_v56, %v8118_v4 }
 0x452   : > { %v2218_v8 = vpop.xlane.xlu0 %2217 }
 0x453   : > { %v1745_v61 = vcombine.low %v1721_v57, %v1737_v59  ;;  %v1746_v62 = vcombine.high %v1721_v57, %v1737_v59  ;;  %v1761_v63 = vcombine.low %v1728_v58, %v1744_v60  ;;  %v1762_v1 = vcombine.high %v1728_v58, %v1744_v60 }
 0x454   : > { %7153 = vrcp.f32 %v2218_v8 }
 0x455   : > { %v1753_v2 = vrot.slane %v1745_v61, %v8123_v11  ;;  %v1760_v3 = vrot.slane %v1746_v62, %v8123_v11  ;;  %v1769_v5 = vrot.slane %v1761_v63, %v8123_v11  ;;  %v1776_v7 = vrot.slane %v1762_v1, %v8123_v11  ;;  %v7104_v1 = vld [vmem:[#allocation10 + $0x30] sm:$0xff]  }
 0x457   : > { %v1781_v9 = vcombine.low %v1753_v2, %v1760_v3  ;;  %v6184_v12 = vcombine.high %v1753_v2, %v1760_v3  ;;  %v1797_v13 = vcombine.low %v1769_v5, %v1776_v7  ;;  %v6185_v14 = vcombine.high %v1769_v5, %v1776_v7  ;;  %v7105_v2 = vld [vmem:[#allocation10 + $0x28] sm:$0xff]   ;;  %v7106_v3 = vld [vmem:[#allocation10 + $0x20] sm:$0xff]   ;;  %v7108_v5 = vld [vmem:[#allocation10 + $0x10] sm:$0xff]  }
 0x458   : > { %v7152_v26 = vpop.eup %7151 }
 0x459   : > { %v1788_v15 = vrot.slane %v1781_v9, %v8118_v4  ;;  %v1796_v16 = vrot.slane %v6184_v12, %v8118_v4  ;;  %v1804_v17 = vrot.slane %v1797_v13, %v8118_v4  ;;  %v1812_v18 = vrot.slane %v6185_v14, %v8118_v4 }
 0x45a   : > { %v2229_v35 = vmul.f32 %v7152_v26, %v8204_v30 }
 0x45b   : > { %v1813_v19 = vcombine.low %v1788_v15, %v1796_v16  ;;  %v1829_v20 = vcombine.low %v1804_v17, %v1812_v18  ;;  %v1814_v31 = vcombine.high %v1788_v15, %v1796_v16  ;;  %v1830_v32 = vcombine.high %v1804_v17, %v1812_v18 }
 0x45c   : > { %v2233_v45 = vpack.c.bf16 %v2229_v35, %v2229_v35 }
 0x45d   : > { %v1821_v22 = vrot.slane %v1813_v19, %v8123_v11  ;;  %v1837_v24 = vrot.slane %v1829_v20, %v8123_v11  ;;  %v1828_v41 = vrot.slane %v1814_v31, %v8123_v11  ;;  %v1844_v39 = vrot.slane %v1830_v32, %v8123_v11 }
 0x45f   : > { %v1845_v25 = vcombine.low %v1821_v22, %v1837_v24  ;;  %v1846_v29 = vcombine.high %v1821_v22, %v1837_v24  ;;  %v1847_v49 = vcombine.low %v1828_v41, %v1844_v39  ;;  %v1848_v56 = vcombine.high %v1828_v41, %v1844_v39 }
 0x461   : > { %v1849_v34 = vpack.c.bf16 %v1845_v25, %v1845_v25  ;;  %v1850_v38 = vpack.c.bf16 %v1846_v29, %v1846_v29  ;;  %v7154_v42 = vpop.eup %7153  ;;  %v1851_v50 = vpack.c.bf16 %v1847_v49, %v1847_v49  ;;  %v1852_v58 = vpack.c.bf16 %v1848_v56, %v1848_v56 }
 0x462   : > { %v2230_v30 = vmul.f32 %v7154_v42, %v8208_v36  ;;  %v2224_v55 = vpop.xlane.xlu0 %2223 }
 0x463   : > { %v2242_v37 = vsel %vm2240_vm3, %v1849_v34, 0  ;;  %v2288_v46 = vsel %vm2240_vm3, %v1850_v38, 0  ;;  %v2334_v53 = vsel %vm2240_vm3, %v1851_v50, 0  ;;  %v2380_v61 = vsel %vm2240_vm3, %v1852_v58, 0 }
 0x464   : > { %6504 = vmatpush3.bf16.msra.mxu1 %v2242_v37  ;;  %v2234_v52 = vpack.c.bf16 %v2230_v30, %v2230_v30 }
 0x465   : > { %6509 = vmatprep.subr.bf16.mxu1 %v7694_v44 }
 0x467   : > { %6506 = vmatmul.mubr.msk.bf16.vlgmr.msra.gmra.mxu1 %vm2188_vm2, %v2233_v45 }
 0x468   : > { %6510 = vmatpush3.bf16.msra.mxu1 %v2288_v46  ;;  %6511 = vmatprep.mubr.msk.bf16.mxu1 %vm7695_vm0, %v7694_v44  ;;  %v7109_v46 = vld [vmem:[#allocation10 + $0x8] sm:$0xff]  }
 0x469   : > { %6515 = vmatprep.subr.bf16.mxu1 %v7694_v44 }
 0x46f   : > { %6512 = vmatmul.mubr.msk.bf16.vlgmr.msra.gmra.mxu1 %vm2188_vm2, %v2234_v52 }
 0x470   : > { %6516 = vmatpush3.bf16.msra.mxu1 %v2334_v53  ;;  %6517 = vmatprep.mubr.msk.bf16.mxu1 %vm7695_vm0, %v7694_v44 }
 0x471   : > { %6521 = vmatprep.subr.bf16.mxu1 %v7694_v44 }
 0x47f   : > { %v2221_v54 = vpop.xlane.xlu1 %2220 }
 0x480   : > { %7155 = vrcp.f32 %v2221_v54 }
 0x481   : > { %7157 = vrcp.f32 %v2224_v55 }
 0x48d   : > { %v7156_v57 = vpop.eup %7155 }
 0x48e   : > { %v2231_v36 = vmul.f32 %v7156_v57, %v8217_v43  ;;  %v7158_v60 = vpop.eup %7157  ;;  %v7103_v43 = vld [vmem:[#allocation10 + $0x38] sm:$0xff]  }
 0x48f   : > { %v2232_v62 = vmul.f32 %v7158_v60, %v8213_v40  ;;  %6528 = vmatpush3.bf16.msra.mxu0 %v7103_v43  ;;  %v7107_v40 = vld [vmem:[#allocation10 + $0x18] sm:$0xff]  }
 0x490   : > { %v2235_v59 = vpack.c.bf16 %v2231_v36, %v2231_v36  ;;  %6529 = vmatprep.subr.bf16.mxu0 %v7694_v44  ;;  %v7110_v36 = vld [vmem:[#allocation10] sm:$0xff]  }
 0x491   : > { %v2236_v63 = vpack.c.bf16 %v2232_v62, %v2232_v62 }
 0x492   : > { %6518 = vmatmul.mubr.msk.bf16.vlgmr.msra.gmra.mxu1 %vm2188_vm2, %v2235_v59 }
 0x493   : > { %6522 = vmatpush3.bf16.msra.mxu1 %v2380_v61  ;;  %6523 = vmatprep.mubr.msk.bf16.mxu1 %vm7695_vm0, %v7694_v44 }
 0x494   : > { %6547 = vmatprep.subr.bf16.mxu1 %v7694_v44  ;;  %6530 = vmatpush3.bf16.msra.mxu0 %v7104_v1 }
 0x495   : > { %6531 = vmatprep.subr.bf16.mxu0 %v7694_v44 }
 0x498   : > { %6532 = vmatpush3.bf16.msra.mxu0 %v7105_v2 }
 0x499   : > { %6533 = vmatprep.subr.bf16.mxu0 %v7694_v44 }
 0x49a   : > { %6524 = vmatmul.mubr.msk.bf16.vlgmr.msra.gmra.mxu1 %vm2188_vm2, %v2236_v63 }
 0x49b   : > { %6563 = vmatprep.mubr.msk.bf16.mxu1 %vm7695_vm0, %v7694_v44 }
 0x49c   : > { %6534 = vmatpush3.bf16.msra.mxu0 %v7106_v3 }
 0x49d   : > { %6535 = vmatprep.subr.bf16.mxu0 %v7694_v44 }
 0x4a0   : > { %6536 = vmatpush3.bf16.msra.mxu0 %v7107_v40 }
 0x4a1   : > { %6537 = vmatprep.subr.bf16.mxu0 %v7694_v44 }
 0x4a4   : > { %6538 = vmatpush3.bf16.msra.mxu0 %v7108_v5 }
 0x4a5   : > { %6539 = vmatprep.subr.bf16.mxu0 %v7694_v44 }
 0x4a8   : > { %6540 = vmatpush3.bf16.msra.mxu0 %v7109_v46  ;;  %v7115_v46 = vld [vmem:[#allocation13 + $0x18] sm:$0xff]  }
 0x4a9   : > { %6541 = vmatprep.subr.bf16.mxu0 %v7694_v44 }
 0x4ac   : > { %6542 = vmatpush3.bf16.msra.mxu0 %v7110_v36 }
 0x4ad   : > { %6567 = vmatprep.subr.bf16.mxu0 %v7694_v44 }
 0x527   : > { %v2278_v7 = vpop.f32.mrf.mxu1 }
 0x529   : > { %v6507_v8 = vpop.f32.mrf.mxu1 }
 0x52b   : > { %v2281_v9 = vpop.f32.mrf.mxu1 }
 0x52d   : > { %v6508_v12 = vpop.f32.mrf.mxu1 }
 0x52f   : > { %v2324_v13 = vpop.f32.mrf.mxu1 }
 0x531   : > { %v6513_v14 = vpop.f32.mrf.mxu1 }
 0x533   : > { %v2327_v15 = vpop.f32.mrf.mxu1 }
 0x535   : > { %v6514_v16 = vpop.f32.mrf.mxu1 }
 0x552   : > { %v2370_v17 = vpop.f32.mrf.mxu1 }
 0x553   : > { %v2422_v22 = vcombine.low %v2278_v7, %v2370_v17  ;;  %v2423_v24 = vcombine.high %v2278_v7, %v2370_v17 }
 0x554   : > { %v6519_v18 = vpop.f32.mrf.mxu1 }
 0x555   : > { %v2430_v32 = vrot.slane %v2422_v22, %v8118_v4  ;;  %v2437_v34 = vrot.slane %v2423_v24, %v8118_v4 }
 0x556   : > { %v2373_v19 = vpop.f32.mrf.mxu1 }
 0x558   : > { %v6520_v20 = vpop.f32.mrf.mxu1 }
 0x559   : > { %v6198_v20 = vld [vmem:[#allocation11] ss:$0 sm:$0xff] }
 0x55a   : > { %v2416_v26 = vpop.f32.mrf.mxu1 }
 0x55b   : > { %v2438_v25 = vcombine.low %v2324_v13, %v2416_v26  ;;  %v2439_v29 = vcombine.high %v2324_v13, %v2416_v26 }
 0x55c   : > { %v6525_v31 = vpop.f32.mrf.mxu1 }
 0x55d   : > { %v2446_v35 = vrot.slane %v2438_v25, %v8118_v4  ;;  %v2453_v37 = vrot.slane %v2439_v29, %v8118_v4  ;;  %v7221_v25 = vld [vmem:[%s651_s0] sm:$0xff]  ;;  %s5929_s0 = scalar_lea.hbm %s9030_s11, %s6284_s7 }
 0x55e   : > { %v2419_v38 = vpop.f32.mrf.mxu1 }
 0x55f   : > { %v2454_v41 = vcombine.low %v2430_v32, %v2446_v35  ;;  %v2455_v39 = vcombine.high %v2430_v32, %v2446_v35  ;;  %v2470_v42 = vcombine.low %v2437_v34, %v2453_v37  ;;  %v2471_v45 = vcombine.high %v2437_v34, %v2453_v37  ;;  %v7111_v37 = vld [vmem:[#allocation13 + $0x38] sm:$0xff]  }
 0x560   : > { %v6526_v49 = vpop.f32.mrf.mxu1  ;;  %v899_v34 = vrot.slane %v8182_v47, %v8070_v27  ;;  %6548 = vmatpush3.bf16.msra.mxu1 %v7111_v37  ;;  %v7113_v47 = vld [vmem:[#allocation13 + $0x28] sm:$0xff]  }
 0x561   : > { %v2462_v30 = vrot.slane %v2454_v41, %v8123_v11  ;;  %v2469_v50 = vrot.slane %v2455_v39, %v8123_v11  ;;  %v2478_v52 = vrot.slane %v2470_v42, %v8123_v11  ;;  %v2485_v53 = vrot.slane %v2471_v45, %v8123_v11  ;;  %6549 = vmatprep.subr.bf16.mxu1 %v7694_v44  ;;  %v7112_v45 = vld [vmem:[#allocation13 + $0x30] sm:$0xff]  }
 0x562   : > { %v1021_v35 = vadd.f32 %v8184_v48, %v899_v34  ;;  %v7114_v48 = vld [vmem:[#allocation13 + $0x20] sm:$0xff]   ;;  %v7116_v49 = vld [vmem:[#allocation13 + $0x10] sm:$0xff]  }
 0x563   : > { %v2490_v54 = vcombine.low %v2462_v30, %v2469_v50  ;;  %v6196_v55 = vcombine.high %v2462_v30, %v2469_v50  ;;  %v2506_v56 = vcombine.low %v2478_v52, %v2485_v53  ;;  %v6197_v57 = vcombine.high %v2478_v52, %v2485_v53  ;;  %v7117_v30 = vld [vmem:[#allocation13 + $0x8] sm:$0xff]   ;;  %v7118_v50 = vld [vmem:[#allocation13] sm:$0xff]  }
 0x564   : > { %6550 = vmatpush3.bf16.msra.mxu1 %v7112_v45 }
 0x565   : > { %v2497_v58 = vrot.slane %v2490_v54, %v8118_v4  ;;  %v2505_v59 = vrot.slane %v6196_v55, %v8118_v4  ;;  %v2513_v60 = vrot.slane %v2506_v56, %v8118_v4  ;;  %v2521_v61 = vrot.slane %v6197_v57, %v8118_v4  ;;  %6551 = vmatprep.subr.bf16.mxu1 %v7694_v44 }
 0x567   : > { %v2523_v62 = vcombine.high %v2497_v58, %v2505_v59  ;;  %v2539_v63 = vcombine.high %v2513_v60, %v2521_v61  ;;  %v2522_v43 = vcombine.low %v2497_v58, %v2505_v59  ;;  %v2538_v1 = vcombine.low %v2513_v60, %v2521_v61 }
 0x568   : > { %6552 = vmatpush3.bf16.msra.mxu1 %v7113_v47 }
 0x569   : > { %v2537_v2 = vrot.slane %v2523_v62, %v8123_v11  ;;  %v2553_v3 = vrot.slane %v2539_v63, %v8123_v11  ;;  %v2530_v40 = vrot.slane %v2522_v43, %v8123_v11  ;;  %v2546_v5 = vrot.slane %v2538_v1, %v8123_v11  ;;  %6553 = vmatprep.subr.bf16.mxu1 %v7694_v44 }
 0x56b   : > { %v2556_v7 = vcombine.low %v2537_v2, %v2553_v3  ;;  %v2555_v8 = vcombine.high %v2530_v40, %v2546_v5  ;;  %v2554_v9 = vcombine.low %v2530_v40, %v2546_v5  ;;  %v2557_v12 = vcombine.high %v2537_v2, %v2553_v3 }
 0x56c   : > { %6554 = vmatpush3.bf16.msra.mxu1 %v7114_v48 }
 0x56d   : > { %2563 = vrot.lane.b32.xlu1 %v2556_v7, %s7693_s15  ;;  %2559 = vrot.lane.b32.xlu0 %v2555_v8, %s7691_s23 }
 0x56e   : > { %6555 = vmatprep.subr.bf16.mxu1 %v7694_v44 }
 0x570   : > { %6556 = vmatpush3.bf16.msra.mxu1 %v7115_v46 }
 0x571   : > { %2567 = vrot.lane.b32.xlu1 %v2557_v12, %s7692_s21  ;;  %6557 = vmatprep.subr.bf16.mxu1 %v7694_v44 }
 0x574   : > { %6558 = vmatpush3.bf16.msra.mxu1 %v7116_v49 }
 0x575   : > { %6559 = vmatprep.subr.bf16.mxu1 %v7694_v44 }
 0x578   : > { %6560 = vmatpush3.bf16.msra.mxu1 %v7117_v30 }
 0x579   : > { %6561 = vmatprep.subr.bf16.mxu1 %v7694_v44 }
 0x57c   : > { %6562 = vmatpush3.bf16.msra.mxu1 %v7118_v50 }
 0x57d   : > { %6573 = vmatprep.subr.bf16.mxu1 %v7694_v44 }
 0x5df   : > { %v2564_v13 = vpop.permute.xlu1 %2563  ;;  %v2560_v14 = vpop.permute.xlu0 %2559 }
 0x5e0   : > { %v2570_v15 = vsel %vm2003_vm1, %v2554_v9, %v2560_v14 }
 0x5e1   : > { %v2572_v17 = vsel %vm2571_vm4, %v2570_v15, %v2564_v13 }
 0x5e3   : > { %v2568_v16 = vpop.permute.xlu1 %2567 }
 0x5e4   : > { %v2574_v18 = vsel %vm2573_vm5, %v2572_v17, %v2568_v16 }
 0x5e5   : > { %v2575_v19 = vpack.c.bf16 %v2574_v18, %v2574_v18 }
 0x5e7   : > { %6544 = vmatmul.mubr.bf16.vlgmr.msra.gmra.mxu0 %v2575_v19  ;;  %v8324_v19 = vld [vmem:[%s8965_s16] sm:$0xf] }
 0x5e8   : > { %6569 = vmatprep.mubr.msk.bf16.mxu0 %vm7695_vm0, %v7694_v44 }
 0x6a7   : > { %v2664_v22 = vpop.f32.mrf.mxu0 }
 0x6a8   : > { %v2665_v24 = vadd.f32 %v6198_v20, %v2664_v22 }
 0x6a9   : > { %v6545_v26 = vpop.f32.mrf.mxu0 }
 0x6aa   : > { %v2670_v29 = vadd.f32 %v7221_v25, %v2665_v24 }
 0x6ab   : > { %v2667_v31 = vpop.f32.mrf.mxu0 }
 0x6ac   : > { %2671 = vadd.xlane.f32.xlu0 %v2670_v29  ;;  %v8333_v31 = vld [vmem:[%s8966_s17] sm:$0xf] }
 0x6ad   : > { %v6546_v32 = vpop.f32.mrf.mxu0  ;;  %v8345_v47 = vrot.slane %v8333_v31, %v8070_v27 }
 0x6c2   : > { %1028 = vrot.lane.b32.xlu0 %v1021_v35, %s7692_s21 }
 0x6c6   : > { %1034 = vrot.lane.b32.xlu0 %v1021_v35, %s7691_s23 }
 0x735   : > { %v2672_v38 = vpop.xlane.xlu0 %2671 }
 0x736   : > { %v2673_v41 = vmul.f32 0.03125, %v2672_v38 }
 0x738   : > { %v8301_v39 = vsub.f32 %v2670_v29, %v2673_v41  ;;  %v2678_v53 = vmul.f32 96.0, %v2673_v41 }
 0x739   : > { %v1029_v52 = vpop.permute.xlu0 %1028 }
 0x73a   : > { %v2675_v42 = vmul.f32 %v8301_v39, %v8301_v39  ;;  %v2679_v55 = vmul.f32 %v2678_v53, %v2673_v41 }
 0x73c   : > { %2676 = vadd.xlane.f32.xlu1 %v2675_v42 }
 0x73d   : > { %v1035_v54 = vpop.permute.xlu0 %1034 }
 0x73e   : > { %v1053_v36 = vcombine.low %v1029_v52, %v1035_v54  ;;  %v1054_v58 = vcombine.high %v1029_v52, %v1035_v54 }
 0x740   : > { %v1061_v43 = vrot.slane %v1053_v36, %v8118_v4  ;;  %v1068_v1 = vrot.slane %v1054_v58, %v8118_v4 }
 0x74d   : > { %1031 = vrot.lane.b32.xlu1 %v1021_v35, %s7693_s15 }
 0x7c5   : > { %v2677_v56 = vpop.xlane.xlu1 %2676 }
 0x7c6   : > { %v2680_v57 = vsub.f32 %v2677_v56, %v2679_v55 }
 0x7c8   : > { %v2681_v59 = vmul.f32 0.03125, %v2680_v57  ;;  %v6207_v57 = vld [vmem:[%s9026_s22] ss:$0 sm:$0xff] }
 0x7c9   : > { %v1032_v60 = vpop.permute.xlu1 %1031 }
 0x7ca   : > { %v2682_v61 = vadd.f32 1e-05, %v2681_v59  ;;  %v1037_v62 = vcombine.low %v1021_v35, %v1032_v60  ;;  %v1038_v63 = vcombine.high %v1021_v35, %v1032_v60  ;;  %v8337_v35 = vrot.slane %v8324_v19, %v8070_v27 }
 0x7cc   : > { %7159 = vrsqrt.f32 %v2682_v61  ;;  %v1045_v2 = vrot.slane %v1037_v62, %v8118_v4  ;;  %v1052_v3 = vrot.slane %v1038_v63, %v8118_v4 }
 0x7ce   : > { %v1069_v40 = vcombine.low %v1045_v2, %v1061_v43  ;;  %v1070_v5 = vcombine.high %v1045_v2, %v1061_v43  ;;  %v1085_v7 = vcombine.low %v1052_v3, %v1068_v1  ;;  %v1086_v8 = vcombine.high %v1052_v3, %v1068_v1 }
 0x7d0   : > { %v1077_v9 = vrot.slane %v1069_v40, %v8123_v11  ;;  %v1084_v12 = vrot.slane %v1070_v5, %v8123_v11  ;;  %v1093_v13 = vrot.slane %v1085_v7, %v8123_v11  ;;  %v1100_v14 = vrot.slane %v1086_v8, %v8123_v11 }
 0x7d2   : > { %v1105_v15 = vcombine.low %v1077_v9, %v1084_v12  ;;  %v6154_v16 = vcombine.high %v1077_v9, %v1084_v12  ;;  %v1121_v17 = vcombine.low %v1093_v13, %v1100_v14  ;;  %v6155_v18 = vcombine.high %v1093_v13, %v1100_v14 }
 0x7d4   : > { %v1112_v20 = vrot.slane %v1105_v15, %v8118_v4  ;;  %v1120_v22 = vrot.slane %v6154_v16, %v8118_v4  ;;  %v1128_v24 = vrot.slane %v1121_v17, %v8118_v4  ;;  %v1136_v26 = vrot.slane %v6155_v18, %v8118_v4 }
 0x7d6   : > { %v1137_v25 = vcombine.low %v1112_v20, %v1120_v22  ;;  %v1153_v29 = vcombine.low %v1128_v24, %v1136_v26  ;;  %v1138_v32 = vcombine.high %v1112_v20, %v1120_v22  ;;  %v1154_v34 = vcombine.high %v1128_v24, %v1136_v26 }
 0x7d8   : > { %v1145_v37 = vrot.slane %v1137_v25, %v8123_v11  ;;  %v1161_v38 = vrot.slane %v1153_v29, %v8123_v11  ;;  %v1152_v41 = vrot.slane %v1138_v32, %v8123_v11  ;;  %v1168_v42 = vrot.slane %v1154_v34, %v8123_v11 }
 0x7d9   : > { %v7160_v45 = vpop.eup %7159 }
 0x7da   : > { %v1169_v48 = vcombine.low %v1145_v37, %v1161_v38  ;;  %v2684_v46 = vmul.f32 %v7160_v45, %v8301_v39  ;;  %v1170_v49 = vcombine.high %v1145_v37, %v1161_v38  ;;  %v8348_v30 = vcombine.low %v1152_v41, %v1168_v42 }
 0x7db   : > { %v8350_v50 = vcombine.high %v1152_v41, %v1168_v42 }
 0x7dc   : > { %v1173_v52 = vpack.c.bf16 %v1169_v48, %v1169_v48  ;;  %v2689_v53 = vmul.f32 %v8337_v35, %v2684_v46  ;;  %v1174_v56 = vpack.c.bf16 %v1170_v49, %v1170_v49 }
 0x7de   : > { %v8354_v54 = vsel %vm2003_vm1, %v1173_v52, 0  ;;  %v8357_v55 = vadd.f32 %v8345_v47, %v2689_v53  ;;  %v8364_v39 = vsel %vm2003_vm1, %v1174_v56, 0  ;;  %v1175_v53 = vpack.c.bf16 %v8348_v30, %v8348_v30 }
 0x7df   : > { %6568 = vmatpush3.bf16.xpose.msra.mxu0 %v8354_v54  ;;  %v1176_v56 = vpack.c.bf16 %v8350_v50, %v8350_v50 }
 0x7e0   : > { %v2695_v27 = vpack.c.bf16 %v8357_v55, %v8357_v55  ;;  %6579 = vmatprep.subr.bf16.mxu0 %v7694_v44 }
 0x7e2   : > { %6564 = vmatmul.mubr.bf16.vlgmr.msra.gmra.mxu1 %v2695_v27 }
 0x7e3   : > { %6574 = vmatpush3.bf16.xpose.msra.mxu1 %v8364_v39  ;;  %6575 = vmatprep.mubr.msk.bf16.mxu1 %vm7695_vm0, %v7694_v44 }
 0x7e4   : > { %6585 = vmatprep.subr.bf16.mxu1 %v7694_v44 }
 0x8a2   : > { %v2784_v36 = vpop.f32.mrf.mxu1 }
 0x8a3   : > { %v2785_v58 = vadd.f32 %v6207_v57, %v2784_v36 }
 0x8a4   : > { %v6565_v59 = vpop.f32.mrf.mxu1 }
 0x8a5   : > { %2794 = vrot.lane.b32.xlu0 %v2785_v58, %s7693_s15  ;;  %2791 = vrot.lane.b32.xlu1 %v2785_v58, %s7692_s21  ;;  %v8399_v59 = vsel %vm2003_vm1, %v1175_v53, 0 }
 0x8a6   : > { %v2787_v60 = vpop.f32.mrf.mxu1 }
 0x8a7   : > { %v8402_v60 = vsel %vm2003_vm1, %v1176_v56, 0 }
 0x8a8   : > { %v6566_v61 = vpop.f32.mrf.mxu1 }
 0x8a9   : > { %2797 = vrot.lane.b32.xlu1 %v2785_v58, %s7691_s23 }
 0x917   : > { %v2795_v62 = vpop.permute.xlu0 %2794  ;;  %v2792_v63 = vpop.permute.xlu1 %2791 }
 0x918   : > { %v2800_v43 = vcombine.low %v2785_v58, %v2795_v62  ;;  %v2801_v1 = vcombine.high %v2785_v58, %v2795_v62 }
 0x91a   : > { %v2808_v5 = vrot.slane %v2800_v43, %v8118_v4  ;;  %v2815_v7 = vrot.slane %v2801_v1, %v8118_v4 }
 0x91b   : > { %v2798_v2 = vpop.permute.xlu1 %2797 }
 0x91c   : > { %v2816_v3 = vcombine.low %v2792_v63, %v2798_v2  ;;  %v2817_v40 = vcombine.high %v2792_v63, %v2798_v2 }
 0x91e   : > { %v2824_v8 = vrot.slane %v2816_v3, %v8118_v4  ;;  %v2831_v9 = vrot.slane %v2817_v40, %v8118_v4 }
 0x920   : > { %v2832_v12 = vcombine.low %v2808_v5, %v2824_v8  ;;  %v2833_v13 = vcombine.high %v2808_v5, %v2824_v8  ;;  %v2848_v14 = vcombine.low %v2815_v7, %v2831_v9  ;;  %v2849_v15 = vcombine.high %v2815_v7, %v2831_v9 }
 0x922   : > { %v2840_v16 = vrot.slane %v2832_v12, %v8123_v11  ;;  %v2847_v17 = vrot.slane %v2833_v13, %v8123_v11  ;;  %v2856_v18 = vrot.slane %v2848_v14, %v8123_v11  ;;  %v2863_v20 = vrot.slane %v2849_v15, %v8123_v11 }
 0x924   : > { %v2868_v22 = vcombine.low %v2840_v16, %v2847_v17  ;;  %v6216_v24 = vcombine.high %v2840_v16, %v2847_v17  ;;  %v2884_v26 = vcombine.low %v2856_v18, %v2863_v20  ;;  %v6217_v25 = vcombine.high %v2856_v18, %v2863_v20 }
 0x926   : > { %v2875_v29 = vrot.slane %v2868_v22, %v8118_v4  ;;  %v2883_v32 = vrot.slane %v6216_v24, %v8118_v4  ;;  %v2891_v34 = vrot.slane %v2884_v26, %v8118_v4  ;;  %v2899_v37 = vrot.slane %v6217_v25, %v8118_v4 }
 0x928   : > { %v2900_v38 = vcombine.low %v2875_v29, %v2883_v32  ;;  %v2916_v41 = vcombine.low %v2891_v34, %v2899_v37  ;;  %v2901_v42 = vcombine.high %v2875_v29, %v2883_v32  ;;  %v2917_v45 = vcombine.high %v2891_v34, %v2899_v37 }
 0x92a   : > { %v2908_v48 = vrot.slane %v2900_v38, %v8123_v11  ;;  %v2924_v46 = vrot.slane %v2916_v41, %v8123_v11  ;;  %v2915_v36 = vrot.slane %v2901_v42, %v8123_v11  ;;  %v2931_v58 = vrot.slane %v2917_v45, %v8123_v11 }
 0x92c   : > { %v2932_v49 = vcombine.low %v2908_v48, %v2924_v46  ;;  %v2933_v52 = vcombine.high %v2908_v48, %v2924_v46  ;;  %v2934_v30 = vcombine.low %v2915_v36, %v2931_v58  ;;  %v2935_v50 = vcombine.high %v2915_v36, %v2931_v58 }
 0x92e   : > { %v2936_v27 = vpack.c.bf16 %v2932_v49, %v2932_v49  ;;  %v2937_v57 = vpack.c.bf16 %v2933_v52, %v2933_v52  ;;  %v2938_v61 = vpack.c.bf16 %v2934_v30, %v2934_v30  ;;  %v2939_v62 = vpack.c.bf16 %v2935_v50, %v2935_v50 }
 0x930   : > { %6570 = vmatmul.mubr.msk.bf16.vlgmr.msra.gmra.mxu0 %vm2003_vm1, %v2936_v27  ;;  %6576 = vmatmul.mubr.msk.bf16.vlgmr.msra.gmra.mxu1 %vm2003_vm1, %v2937_v57 }
 0x931   : > { %6580 = vmatpush3.bf16.xpose.msra.mxu0 %v8399_v59  ;;  %6586 = vmatpush3.bf16.xpose.msra.mxu1 %v8402_v60 }
 0x932   : > { %6581 = vmatprep.mubr.msk.bf16.mxu0 %vm7695_vm0, %v7694_v44  ;;  %6587 = vmatprep.mubr.msk.bf16.mxu1 %vm7695_vm0, %v7694_v44 }
 0x933   : > { %6591 = vmatprep.subr.bf16.mxu0 %v7694_v44  ;;  %6597 = vmatprep.subr.bf16.mxu1 %v7694_v44 }
 0x938   : > { %6582 = vmatmul.mubr.msk.bf16.vlgmr.msra.gmra.mxu0 %vm2003_vm1, %v2938_v61  ;;  %6588 = vmatmul.mubr.msk.bf16.vlgmr.msra.gmra.mxu1 %vm2003_vm1, %v2939_v62 }
 0x939   : > { %6593 = vmatprep.mubr.msk.bf16.mxu0 %vm7695_vm0, %v7694_v44  ;;  %6599 = vmatprep.mubr.msk.bf16.mxu1 %vm7695_vm0, %v7694_v44 }
 0x9f0   : > { %v2980_v63 = vpop.f32.mrf.mxu0  ;;  %v3026_v43 = vpop.f32.mrf.mxu1 }
 0x9f1   : > { %v3124_v1 = vsel %vm2188_vm2, %v2980_v63, -inf  ;;  %v3127_v2 = vsel %vm2188_vm2, %v3026_v43, -inf }
 0x9f2   : > { %3125 = vmax.xlane.f32.xlu0 %v3124_v1  ;;  %v6571_v3 = vpop.f32.mrf.mxu0  ;;  %3128 = vmax.xlane.f32.xlu1 %v3127_v2  ;;  %v6577_v40 = vpop.f32.mrf.mxu1 }
 0x9f4   : > { %v2983_v5 = vpop.f32.mrf.mxu0  ;;  %v3029_v7 = vpop.f32.mrf.mxu1 }
 0x9f6   : > { %v6572_v8 = vpop.f32.mrf.mxu0  ;;  %v6578_v9 = vpop.f32.mrf.mxu1 }
 0x9f8   : > { %v3072_v12 = vpop.f32.mrf.mxu0  ;;  %v3118_v13 = vpop.f32.mrf.mxu1 }
 0x9f9   : > { %v3130_v14 = vsel %vm2188_vm2, %v3072_v12, -inf  ;;  %v3133_v20 = vsel %vm2188_vm2, %v3118_v13, -inf }
 0x9fa   : > { %3131 = vmax.xlane.f32.xlu0 %v3130_v14  ;;  %v6583_v15 = vpop.f32.mrf.mxu0  ;;  %v6589_v16 = vpop.f32.mrf.mxu1 }
 0x9fc   : > { %v3075_v17 = vpop.f32.mrf.mxu0  ;;  %v3121_v18 = vpop.f32.mrf.mxu1 }
 0x9fe   : > { %v6584_v22 = vpop.f32.mrf.mxu0  ;;  %3134 = vmax.xlane.f32.xlu0 %v3133_v20  ;;  %v6590_v24 = vpop.f32.mrf.mxu1 }
 0xa03   : > { %1178 = vrot.lane.b32.xlu1 %v8188_v51, %s7692_s21 }
 0xa7b   : > { %v3126_v26 = vpop.xlane.xlu0 %3125  ;;  %v3129_v25 = vpop.xlane.xlu1 %3128 }
 0xa7c   : > { %v3136_v29 = vsub.f32 %v2980_v63, %v3126_v26  ;;  %v3137_v32 = vsub.f32 %v3026_v43, %v3129_v25 }
 0xa7e   : > { %v3140_v34 = vmul.f32 1.442695, %v3136_v29  ;;  %v3142_v37 = vmul.f32 1.442695, %v3137_v32 }
 0xa7f   : > { %v1179_v30 = vpop.permute.xlu1 %1178 }
 0xa80   : > { %7161 = vpow2.f32 %v3140_v34 }
 0xa81   : > { %7163 = vpow2.f32 %v3142_v37 }
 0xa83   : > { %v3132_v48 = vpop.xlane.xlu0 %3131 }
 0xa84   : > { %v3138_v49 = vsub.f32 %v3072_v12, %v3132_v48 }
 0xa86   : > { %v3144_v53 = vmul.f32 1.442695, %v3138_v49 }
 0xa87   : > { %v3135_v46 = vpop.xlane.xlu0 %3134 }
 0xa88   : > { %v3139_v52 = vsub.f32 %v3118_v13, %v3135_v46  ;;  %7165 = vpow2.f32 %v3144_v53 }
 0xa8a   : > { %v3146_v56 = vmul.f32 1.442695, %v3139_v52 }
 0xa8c   : > { %7167 = vpow2.f32 %v3146_v56 }
 0xa8d   : > { %v8424_v38 = vpop.eup %7161 }
 0xa8e   : > { %v8426_v41 = vpop.eup %7163  ;;  %v3148_v42 = vsel %vm2188_vm2, %v8424_v38, 0.0 }
 0xa8f   : > { %3149 = vadd.xlane.f32.xlu1 %v3148_v42  ;;  %v3151_v45 = vsel %vm2188_vm2, %v8426_v41, 0.0 }
 0xa90   : > { %3152 = vadd.xlane.f32.xlu0 %v3151_v45 }
 0xa95   : > { %v8436_v27 = vpop.eup %7165 }
 0xa96   : > { %v3154_v36 = vsel %vm2188_vm2, %v8436_v27, 0.0 }
 0xa99   : > { %v8438_v57 = vpop.eup %7167 }
 0xa9a   : > { %v3157_v58 = vsel %vm2188_vm2, %v8438_v57, 0.0 }
 0xaa0   : > { %1184 = vrot.lane.b32.xlu1 %v8188_v51, %s7691_s23 }
 0xaa6   : > { %1181 = vrot.lane.b32.xlu0 %v8188_v51, %s7693_s15 }
 0xac4   : > { %3155 = vadd.xlane.f32.xlu1 %v3154_v36 }
 0xac5   : > { %3158 = vadd.xlane.f32.xlu0 %v3157_v58 }
 0xb18   : > { %v3150_v50 = vpop.xlane.xlu1 %3149 }
 0xb19   : > { %v3153_v61 = vpop.xlane.xlu0 %3152  ;;  %7169 = vrcp.f32 %v3150_v50 }
 0xb1a   : > { %7171 = vrcp.f32 %v3153_v61 }
 0xb1c   : > { %v1185_v62 = vpop.permute.xlu1 %1184 }
 0xb1d   : > { %v1203_v63 = vcombine.low %v1179_v30, %v1185_v62  ;;  %v1204_v43 = vcombine.high %v1179_v30, %v1185_v62  ;;  %v1182_v1 = vpop.permute.xlu0 %1181 }
 0xb1e   : > { %v1187_v2 = vcombine.low %v8188_v51, %v1182_v1  ;;  %v1188_v3 = vcombine.high %v8188_v51, %v1182_v1 }
 0xb1f   : > { %v1211_v40 = vrot.slane %v1203_v63, %v8118_v4  ;;  %v1218_v5 = vrot.slane %v1204_v43, %v8118_v4 }
 0xb20   : > { %v1195_v7 = vrot.slane %v1187_v2, %v8118_v4  ;;  %v1202_v8 = vrot.slane %v1188_v3, %v8118_v4 }
 0xb22   : > { %v1219_v9 = vcombine.low %v1195_v7, %v1211_v40  ;;  %v1220_v12 = vcombine.high %v1195_v7, %v1211_v40  ;;  %v1235_v13 = vcombine.low %v1202_v8, %v1218_v5  ;;  %v1236_v14 = vcombine.high %v1202_v8, %v1218_v5 }
 0xb24   : > { %v1227_v15 = vrot.slane %v1219_v9, %v8123_v11  ;;  %v1234_v16 = vrot.slane %v1220_v12, %v8123_v11  ;;  %v1243_v51 = vrot.slane %v1235_v13, %v8123_v11  ;;  %v1250_v17 = vrot.slane %v1236_v14, %v8123_v11 }
 0xb26   : > { %v1255_v18 = vcombine.low %v1227_v15, %v1234_v16  ;;  %v6156_v20 = vcombine.high %v1227_v15, %v1234_v16  ;;  %v1271_v22 = vcombine.low %v1243_v51, %v1250_v17  ;;  %v6157_v24 = vcombine.high %v1243_v51, %v1250_v17  ;;  %v7170_v48 = vpop.eup %7169  ;;  %v7119_v17 = vld [vmem:[#allocation16 + $0x38] sm:$0xff]  }
 0xb27   : > { %v7172_v56 = vpop.eup %7171  ;;  %v3164_v63 = vmul.f32 %v7170_v48, %v8424_v38 }
 0xb28   : > { %v1262_v26 = vrot.slane %v1255_v18, %v8118_v4  ;;  %v1270_v25 = vrot.slane %v6156_v20, %v8118_v4  ;;  %v1278_v29 = vrot.slane %v1271_v22, %v8118_v4  ;;  %v1286_v32 = vrot.slane %v6157_v24, %v8118_v4  ;;  %v7120_v18 = vld [vmem:[#allocation16 + $0x30] sm:$0xff]   ;;  %v7123_v20 = vld [vmem:[#allocation16 + $0x18] sm:$0xff]  }
 0xb29   : > { %v3165_v43 = vmul.f32 %v7172_v56, %v8426_v41  ;;  %v3168_v5 = vpack.c.bf16 %v3164_v63, %v3164_v63  ;;  %v7124_v22 = vld [vmem:[#allocation16 + $0x10] sm:$0xff]  }
 0xb2a   : > { %v1287_v34 = vcombine.low %v1262_v26, %v1270_v25  ;;  %v1303_v37 = vcombine.low %v1278_v29, %v1286_v32  ;;  %v1288_v42 = vcombine.high %v1262_v26, %v1270_v25  ;;  %v1304_v45 = vcombine.high %v1278_v29, %v1286_v32 }
 0xb2b   : > { %v3169_v7 = vpack.c.bf16 %v3165_v43, %v3165_v43 }
 0xb2c   : > { %v1295_v46 = vrot.slane %v1287_v34, %v8123_v11  ;;  %v1311_v49 = vrot.slane %v1303_v37, %v8123_v11  ;;  %v1302_v52 = vrot.slane %v1288_v42, %v8123_v11  ;;  %v1318_v53 = vrot.slane %v1304_v45, %v8123_v11 }
 0xb2e   : > { %v1319_v36 = vcombine.low %v1295_v46, %v1311_v49  ;;  %v1320_v58 = vcombine.high %v1295_v46, %v1311_v49  ;;  %v1321_v30 = vcombine.low %v1302_v52, %v1318_v53  ;;  %v1322_v50 = vcombine.high %v1302_v52, %v1318_v53 }
 0xb30   : > { %v1323_v61 = vpack.c.bf16 %v1319_v36, %v1319_v36  ;;  %v1324_v62 = vpack.c.bf16 %v1320_v58, %v1320_v58  ;;  %v1325_v3 = vpack.c.bf16 %v1321_v30, %v1321_v30  ;;  %v1326_v40 = vpack.c.bf16 %v1322_v50, %v1322_v50 }
 0xb32   : > { %v8465_v1 = vsel %vm2240_vm3, %v1323_v61, 0  ;;  %v8468_v2 = vsel %vm2240_vm3, %v1324_v62, 0  ;;  %v8477_v38 = vsel %vm2240_vm3, %v1325_v3, 0  ;;  %v8480_v41 = vsel %vm2240_vm3, %v1326_v40, 0 }
 0xb33   : > { %6592 = vmatpush3.bf16.msra.mxu0 %v8465_v1  ;;  %6598 = vmatpush3.bf16.msra.mxu1 %v8468_v2 }
 0xb34   : > { %6603 = vmatprep.subr.bf16.mxu0 %v7694_v44  ;;  %6609 = vmatprep.subr.bf16.mxu1 %v7694_v44 }
 0xb36   : > { %6594 = vmatmul.mubr.msk.bf16.vlgmr.msra.gmra.mxu0 %vm2188_vm2, %v3168_v5  ;;  %6600 = vmatmul.mubr.msk.bf16.vlgmr.msra.gmra.mxu1 %vm2188_vm2, %v3169_v7 }
 0xb37   : > { %6604 = vmatpush3.bf16.msra.mxu0 %v8477_v38  ;;  %6610 = vmatpush3.bf16.msra.mxu1 %v8480_v41 }
 0xb38   : > { %6605 = vmatprep.mubr.msk.bf16.mxu0 %vm7695_vm0, %v7694_v44  ;;  %6611 = vmatprep.mubr.msk.bf16.mxu1 %vm7695_vm0, %v7694_v44 }
 0xb39   : > { %6615 = vmatprep.subr.bf16.mxu0 %v7694_v44  ;;  %6635 = vmatprep.subr.bf16.mxu1 %v7694_v44 }
 0xb4d   : > { %v3156_v8 = vpop.xlane.xlu1 %3155 }
 0xb4e   : > { %7173 = vrcp.f32 %v3156_v8  ;;  %v3159_v9 = vpop.xlane.xlu0 %3158  ;;  %v7125_v8 = vld [vmem:[#allocation16 + $0x8] sm:$0xff]  }
 0xb4f   : > { %7175 = vrcp.f32 %v3159_v9 }
 0xb5b   : > { %v7174_v12 = vpop.eup %7173 }
 0xb5c   : > { %v7176_v13 = vpop.eup %7175  ;;  %v3166_v14 = vmul.f32 %v7174_v12, %v8436_v27  ;;  %v7121_v27 = vld [vmem:[#allocation16 + $0x28] sm:$0xff]  }
 0xb5d   : > { %v3167_v15 = vmul.f32 %v7176_v13, %v8438_v57  ;;  %v7122_v57 = vld [vmem:[#allocation16 + $0x20] sm:$0xff]  }
 0xb5e   : > { %v3170_v16 = vpack.c.bf16 %v3166_v14, %v3166_v14 }
 0xb5f   : > { %v3171_v51 = vpack.c.bf16 %v3167_v15, %v3167_v15 }
 0xb60   : > { %6606 = vmatmul.mubr.msk.bf16.vlgmr.msra.gmra.mxu0 %vm2188_vm2, %v3170_v16 }
 0xb61   : > { %6612 = vmatmul.mubr.msk.bf16.vlgmr.msra.gmra.mxu1 %vm2188_vm2, %v3171_v51  ;;  %6631 = vmatprep.mubr.msk.bf16.mxu0 %vm7695_vm0, %v7694_v44 }
 0xb62   : > { %6651 = vmatprep.mubr.msk.bf16.mxu1 %vm7695_vm0, %v7694_v44  ;;  %6616 = vmatpush3.bf16.msra.mxu0 %v7119_v17 }
 0xb63   : > { %6617 = vmatprep.subr.bf16.mxu0 %v7694_v44 }
 0xb66   : > { %6618 = vmatpush3.bf16.msra.mxu0 %v7120_v18 }
 0xb67   : > { %6619 = vmatprep.subr.bf16.mxu0 %v7694_v44 }
 0xb6a   : > { %6620 = vmatpush3.bf16.msra.mxu0 %v7121_v27  ;;  %v7126_v27 = vld [vmem:[#allocation16] sm:$0xff]  }
 0xb6b   : > { %6621 = vmatprep.subr.bf16.mxu0 %v7694_v44 }
 0xb6e   : > { %6622 = vmatpush3.bf16.msra.mxu0 %v7122_v57 }
 0xb6f   : > { %6623 = vmatprep.subr.bf16.mxu0 %v7694_v44 }
 0xb72   : > { %6624 = vmatpush3.bf16.msra.mxu0 %v7123_v20 }
 0xb73   : > { %6625 = vmatprep.subr.bf16.mxu0 %v7694_v44 }
 0xb76   : > { %6626 = vmatpush3.bf16.msra.mxu0 %v7124_v22 }
 0xb77   : > { %6627 = vmatprep.subr.bf16.mxu0 %v7694_v44 }
 0xb7a   : > { %6628 = vmatpush3.bf16.msra.mxu0 %v7125_v8  ;;  %v7127_v8 = vld [vmem:[#allocation17 + $0x38] sm:$0xff]  }
 0xb7b   : > { %6629 = vmatprep.subr.bf16.mxu0 %v7694_v44  ;;  %6636 = vmatpush3.bf16.msra.mxu1 %v7127_v8  ;;  %v7235_v8 = vld [vmem:[#allocation7 + $0x18] ss:$12 sps:$4 sm:$0xff]  }
 0xb7c   : > { %6637 = vmatprep.subr.bf16.mxu1 %v7694_v44 }
 0xb7e   : > { %6630 = vmatpush3.bf16.msra.mxu0 %v7126_v27  ;;  %v7134_v27 = vld [vmem:[#allocation17] sm:$0xff]  }
 0xb7f   : > { %6655 = vmatprep.subr.bf16.mxu0 %v7694_v44 }
 0xbf6   : > { %v3212_v24 = vpop.f32.mrf.mxu0  ;;  %v3258_v26 = vpop.f32.mrf.mxu1 }
 0xbf8   : > { %v6595_v25 = vpop.f32.mrf.mxu0  ;;  %v6601_v29 = vpop.f32.mrf.mxu1 }
 0xbfa   : > { %v3215_v32 = vpop.f32.mrf.mxu0  ;;  %v3261_v34 = vpop.f32.mrf.mxu1 }
 0xbfc   : > { %v6596_v37 = vpop.f32.mrf.mxu0  ;;  %v6602_v42 = vpop.f32.mrf.mxu1 }
 0xc20   : > { %v3304_v45 = vpop.f32.mrf.mxu0 }
 0xc21   : > { %v3356_v48 = vcombine.low %v3212_v24, %v3304_v45  ;;  %v3357_v46 = vcombine.high %v3212_v24, %v3304_v45  ;;  %v3350_v49 = vpop.f32.mrf.mxu1 }
 0xc22   : > { %v3372_v52 = vcombine.low %v3258_v26, %v3350_v49  ;;  %v3373_v53 = vcombine.high %v3258_v26, %v3350_v49  ;;  %v6607_v56 = vpop.f32.mrf.mxu0 }
 0xc23   : > { %v3364_v36 = vrot.slane %v3356_v48, %v8118_v4  ;;  %v3371_v58 = vrot.slane %v3357_v46, %v8118_v4  ;;  %v6613_v30 = vpop.f32.mrf.mxu1 }
 0xc24   : > { %v3380_v50 = vrot.slane %v3372_v52, %v8118_v4  ;;  %v3387_v61 = vrot.slane %v3373_v53, %v8118_v4  ;;  %v3307_v62 = vpop.f32.mrf.mxu0 }
 0xc25   : > { %v3353_v63 = vpop.f32.mrf.mxu1  ;;  %v6228_v62 = vld [vmem:[%s9027_s8] ss:$0 sm:$0xff] }
 0xc26   : > { %v3388_v43 = vcombine.low %v3364_v36, %v3380_v50  ;;  %v3389_v3 = vcombine.high %v3364_v36, %v3380_v50  ;;  %v3404_v40 = vcombine.low %v3371_v58, %v3387_v61  ;;  %v3405_v5 = vcombine.high %v3371_v58, %v3387_v61  ;;  %v6608_v7 = vpop.f32.mrf.mxu0 }
 0xc27   : > { %v6614_v9 = vpop.f32.mrf.mxu1 }
 0xc28   : > { %v3396_v12 = vrot.slane %v3388_v43, %v8123_v11  ;;  %v3403_v13 = vrot.slane %v3389_v3, %v8123_v11  ;;  %v3412_v14 = vrot.slane %v3404_v40, %v8123_v11  ;;  %v3419_v15 = vrot.slane %v3405_v5, %v8123_v11 }
 0xc2a   : > { %v3424_v16 = vcombine.low %v3396_v12, %v3403_v13  ;;  %v6226_v51 = vcombine.high %v3396_v12, %v3403_v13  ;;  %v3440_v17 = vcombine.low %v3412_v14, %v3419_v15  ;;  %v6227_v18 = vcombine.high %v3412_v14, %v3419_v15  ;;  %v7128_v15 = vld [vmem:[#allocation17 + $0x30] sm:$0xff]  }
 0xc2b   : > { %6638 = vmatpush3.bf16.msra.mxu1 %v7128_v15  ;;  %v6237_v15 = vld [vmem:[%s9028_s5] ss:$0 sm:$0xff] }
 0xc2c   : > { %v3431_v57 = vrot.slane %v3424_v16, %v8118_v4  ;;  %v3439_v20 = vrot.slane %v6226_v51, %v8118_v4  ;;  %v3447_v22 = vrot.slane %v3440_v17, %v8118_v4  ;;  %v3455_v24 = vrot.slane %v6227_v18, %v8118_v4  ;;  %6639 = vmatprep.subr.bf16.mxu1 %v7694_v44  ;;  %v7129_v16 = vld [vmem:[#allocation17 + $0x28] sm:$0xff]   ;;  %v7130_v51 = vld [vmem:[#allocation17 + $0x20] sm:$0xff]   ;;  %v7132_v17 = vld [vmem:[#allocation17 + $0x10] sm:$0xff]  }
 0xc2d   : > { %v7133_v18 = vld [vmem:[#allocation17 + $0x8] sm:$0xff]  }
 0xc2e   : > { %v3457_v26 = vcombine.high %v3431_v57, %v3439_v20  ;;  %v3473_v25 = vcombine.high %v3447_v22, %v3455_v24  ;;  %v3456_v29 = vcombine.low %v3431_v57, %v3439_v20  ;;  %v3472_v32 = vcombine.low %v3447_v22, %v3455_v24  ;;  %v7222_v57 = vld [vmem:[#allocation7 + $0xac] ss:$12 sps:$4 sm:$0xff]   ;;  %v7135_v20 = vld [vmem:[#allocation19 + $0x38] sm:$0xff]  }
 0xc2f   : > { %6640 = vmatpush3.bf16.msra.mxu1 %v7129_v16  ;;  %v7136_v22 = vld [vmem:[#allocation19 + $0x30] sm:$0xff]   ;;  %v7137_v24 = vld [vmem:[#allocation19 + $0x28] sm:$0xff]  }
 0xc30   : > { %v3471_v34 = vrot.slane %v3457_v26, %v8123_v11  ;;  %v3487_v37 = vrot.slane %v3473_v25, %v8123_v11  ;;  %v3464_v42 = vrot.slane %v3456_v29, %v8123_v11  ;;  %v3480_v45 = vrot.slane %v3472_v32, %v8123_v11  ;;  %6641 = vmatprep.subr.bf16.mxu1 %v7694_v44  ;;  %v7138_v26 = vld [vmem:[#allocation19 + $0x20] sm:$0xff]   ;;  %v7139_v25 = vld [vmem:[#allocation19 + $0x18] sm:$0xff]   ;;  %v7140_v29 = vld [vmem:[#allocation19 + $0x10] sm:$0xff]  }
 0xc32   : > { %v3490_v48 = vcombine.low %v3471_v34, %v3487_v37  ;;  %v3489_v46 = vcombine.high %v3464_v42, %v3480_v45  ;;  %v3488_v49 = vcombine.low %v3464_v42, %v3480_v45  ;;  %v3491_v52 = vcombine.high %v3471_v34, %v3487_v37 }
 0xc33   : > { %6642 = vmatpush3.bf16.msra.mxu1 %v7130_v51 }
 0xc34   : > { %3497 = vrot.lane.b32.xlu1 %v3490_v48, %s7693_s15  ;;  %3493 = vrot.lane.b32.xlu0 %v3489_v46, %s7691_s23  ;;  %v8549_v46 = vrot.slane %v8324_v19, %v8065_v23 }
 0xc35   : > { %6643 = vmatprep.subr.bf16.mxu1 %v7694_v44 }
 0xc38   : > { %3501 = vrot.lane.b32.xlu1 %v3491_v52, %s7692_s21 }
 0xca6   : > { %v3498_v53 = vpop.permute.xlu1 %3497  ;;  %v3494_v56 = vpop.permute.xlu0 %3493 }
 0xca7   : > { %v3504_v36 = vsel %vm2003_vm1, %v3488_v49, %v3494_v56 }
 0xca8   : > { %v3505_v30 = vsel %vm2571_vm4, %v3504_v36, %v3498_v53  ;;  %v8553_v53 = vrot.slane %v8333_v31, %v8065_v23  ;;  %v7227_v23 = vld [vmem:[#allocation7 + $0x78] ss:$12 sps:$4 sm:$0xff]  }
 0xcaa   : > { %v3502_v58 = vpop.permute.xlu1 %3501 }
 0xcab   : > { %v3506_v50 = vsel %vm2573_vm5, %v3505_v30, %v3502_v58  ;;  %v7223_v30 = vld [vmem:[#allocation7 + $0xa8] ss:$12 sps:$4 sm:$0xff]  }
 0xcac   : > { %v3507_v61 = vpack.c.bf16 %v3506_v50, %v3506_v50  ;;  %v7224_v50 = vld [vmem:[#allocation7 + $0x94] ss:$12 sps:$4 sm:$0xff]  }
 0xcae   : > { %6632 = vmatmul.mubr.bf16.vlgmr.msra.gmra.mxu0 %v3507_v61  ;;  %v7225_v61 = vld [vmem:[#allocation7 + $0x90] ss:$12 sps:$4 sm:$0xff]  }
 0xcaf   : > { %6671 = vmatprep.mubr.msk.bf16.mxu0 %vm7695_vm0, %v7694_v44  ;;  %6656 = vmatpush3.bf16.msra.mxu0 %v7135_v20  ;;  %v7238_v20 = vld [vmem:[#allocation7 + $0xb0] ss:$12 sps:$4 sm:$0xff]  }
 0xcb0   : > { %6657 = vmatprep.subr.bf16.mxu0 %v7694_v44 }
 0xcb3   : > { %6658 = vmatpush3.bf16.msra.mxu0 %v7136_v22  ;;  %v7239_v22 = vld [vmem:[#allocation7 + $0x98] ss:$12 sps:$4 sm:$0xff]  }
 0xcb4   : > { %6659 = vmatprep.subr.bf16.mxu0 %v7694_v44 }
 0xcb7   : > { %6660 = vmatpush3.bf16.msra.mxu0 %v7137_v24  ;;  %v7240_v24 = vld [vmem:[#allocation7 + $0x80] ss:$12 sps:$4 sm:$0xff]  }
 0xcb8   : > { %6661 = vmatprep.subr.bf16.mxu0 %v7694_v44 }
 0xcbb   : > { %6662 = vmatpush3.bf16.msra.mxu0 %v7138_v26  ;;  %v7241_v26 = vld [vmem:[#allocation7 + $0x68] ss:$12 sps:$4 sm:$0xff]  }
 0xcbc   : > { %6663 = vmatprep.subr.bf16.mxu0 %v7694_v44 }
 0xcbf   : > { %6664 = vmatpush3.bf16.msra.mxu0 %v7139_v25  ;;  %v7242_v25 = vld [vmem:[#allocation7 + $0x50] ss:$12 sps:$4 sm:$0xff]  }
 0xcc0   : > { %6665 = vmatprep.subr.bf16.mxu0 %v7694_v44 }
 0xcc3   : > { %6666 = vmatpush3.bf16.msra.mxu0 %v7140_v29  ;;  %v7243_v29 = vld [vmem:[#allocation7 + $0x38] ss:$12 sps:$4 sm:$0xff]  }
 0xcc4   : > { %6667 = vmatprep.subr.bf16.mxu0 %v7694_v44 }
 0xd6e   : > { %v3596_v63 = vpop.f32.mrf.mxu0 }
 0xd6f   : > { %v3597_v43 = vadd.f32 %v6228_v62, %v3596_v63  ;;  %v7226_v62 = vld [vmem:[#allocation7 + $0x7c] ss:$12 sps:$4 sm:$0xff]   ;;  %v7228_v63 = vld [vmem:[#allocation7 + $0x64] ss:$12 sps:$4 sm:$0xff]  }
 0xd70   : > { %v6633_v3 = vpop.f32.mrf.mxu0 }
 0xd71   : > { %v3602_v40 = vadd.f32 %v3597_v43, %v8357_v55  ;;  %v7131_v55 = vld [vmem:[#allocation17 + $0x18] sm:$0xff]   ;;  %v7230_v3 = vld [vmem:[#allocation7 + $0x4c] ss:$12 sps:$4 sm:$0xff]  }
 0xd72   : > { %v3599_v5 = vpop.f32.mrf.mxu0  ;;  %6644 = vmatpush3.bf16.msra.mxu1 %v7131_v55  ;;  %v7229_v43 = vld [vmem:[#allocation7 + $0x60] ss:$12 sps:$4 sm:$0xff]  }
 0xd73   : > { %3603 = vadd.xlane.f32.xlu0 %v3602_v40  ;;  %6645 = vmatprep.subr.bf16.mxu1 %v7694_v44  ;;  %v7232_v5 = vld [vmem:[#allocation7 + $0x34] ss:$12 sps:$4 sm:$0xff]  }
 0xd74   : > { %v6634_v7 = vpop.f32.mrf.mxu0 }
 0xd75   : > { %v7233_v7 = vld [vmem:[#allocation7 + $0x30] ss:$12 sps:$4 sm:$0xff]  }
 0xd76   : > { %6646 = vmatpush3.bf16.msra.mxu1 %v7132_v17 }
 0xd77   : > { %6647 = vmatprep.subr.bf16.mxu1 %v7694_v44 }
 0xd7a   : > { %6648 = vmatpush3.bf16.msra.mxu1 %v7133_v18 }
 0xd7b   : > { %6649 = vmatprep.subr.bf16.mxu1 %v7694_v44 }
 0xd7e   : > { %6650 = vmatpush3.bf16.msra.mxu1 %v7134_v27 }
 0xd7f   : > { %3844 = vmatprep.subr.bf16.mxu1 %v7222_v57 }
 0xdfc   : > { %v3604_v9 = vpop.xlane.xlu0 %3603 }
 0xdfd   : > { %v3605_v12 = vmul.f32 0.03125, %v3604_v9  ;;  %v7236_v9 = vld [vmem:[#allocation7 + $0x4] ss:$12 sps:$4 sm:$0xff]  }
 0xdff   : > { %v3606_v13 = vsub.f32 %v3602_v40, %v3605_v12  ;;  %v3610_v32 = vmul.f32 96.0, %v3605_v12  ;;  %v7231_v40 = vld [vmem:[#allocation7 + $0x48] ss:$12 sps:$4 sm:$0xff]  }
 0xe01   : > { %v3607_v14 = vmul.f32 %v3606_v13, %v3606_v13  ;;  %v3611_v34 = vmul.f32 %v3610_v32, %v3605_v12  ;;  %v7237_v12 = vld [vmem:[#allocation7] ss:$12 sps:$4 sm:$0xff]  }
 0xe02   : > { %v7244_v32 = vld [vmem:[#allocation7 + $0x20] ss:$12 sps:$4 sm:$0xff]  }
 0xe03   : > { %3608 = vadd.xlane.f32.xlu1 %v3607_v14  ;;  %v7142_v14 = vld [vmem:[#allocation19] sm:$0xff]  }
 0xe8c   : > { %v3609_v37 = vpop.xlane.xlu1 %3608 }
 0xe8d   : > { %v3612_v42 = vsub.f32 %v3609_v37, %v3611_v34  ;;  %v7245_v34 = vld [vmem:[#allocation7 + $0x8] ss:$12 sps:$4 sm:$0xff]   ;;  %v6246_v37 = vld [vmem:[%s9029_s26] ss:$0 sm:$0xff] }
 0xe8f   : > { %v3613_v45 = vmul.f32 0.03125, %v3612_v42 }
 0xe91   : > { %v3614_v48 = vadd.f32 1e-05, %v3613_v45 }
 0xe93   : > { %7177 = vrsqrt.f32 %v3614_v48 }
 0xea0   : > { %v7178_v49 = vpop.eup %7177 }
 0xea1   : > { %v3616_v52 = vmul.f32 %v7178_v49, %v3606_v13  ;;  %v7141_v13 = vld [vmem:[#allocation19 + $0x8] sm:$0xff]  }
 0xea2   : > { %6668 = vmatpush3.bf16.msra.mxu0 %v7141_v13 }
 0xea3   : > { %v3621_v56 = vmul.f32 %v8549_v46, %v3616_v52  ;;  %6669 = vmatprep.subr.bf16.mxu0 %v7694_v44 }
 0xea5   : > { %v8557_v36 = vadd.f32 %v8553_v53, %v3621_v56 }
 0xea6   : > { %6670 = vmatpush3.bf16.msra.mxu0 %v7142_v14 }
 0xea7   : > { %v3627_v58 = vpack.c.bf16 %v8557_v36, %v8557_v36  ;;  %6675 = vmatprep.subr.bf16.mxu0 %v7694_v44 }
 0xea9   : > { %6652 = vmatmul.mubr.bf16.vlgmr.msra.gmra.mxu1 %v3627_v58 }
 0xeaa   : > { %3845 = vmatpush1.bf16.msra.mxu1 %v7223_v30  ;;  %3876 = vmatprep.mubr.bf16.mxu1 %v7690_v0  ;;  %v7234_v0 = vld [vmem:[#allocation7 + $0x1c] ss:$12 sps:$4 sm:$0xff]  }
 0xeab   : > { %3846 = vmatprep.subr.bf16.mxu1 %v7224_v50 }
 0xeae   : > { %3847 = vmatpush1.bf16.msra.mxu1 %v7225_v61 }
 0xeaf   : > { %3848 = vmatprep.subr.bf16.mxu1 %v7226_v62 }
 0xeb2   : > { %3849 = vmatpush1.bf16.msra.mxu1 %v7227_v23 }
 0xeb3   : > { %3850 = vmatprep.subr.bf16.mxu1 %v7228_v63 }
 0xeb6   : > { %3851 = vmatpush1.bf16.msra.mxu1 %v7229_v43 }
 0xeb7   : > { %3852 = vmatprep.subr.bf16.mxu1 %v7230_v3 }
 0xeba   : > { %3853 = vmatpush1.bf16.msra.mxu1 %v7231_v40 }
 0xebb   : > { %3854 = vmatprep.subr.bf16.mxu1 %v7232_v5  ;;  %v8584_v5 = vrot.slane %v8324_v19, %v8193_v6 }
 0xebe   : > { %3855 = vmatpush1.bf16.msra.mxu1 %v7233_v7 }
 0xebf   : > { %3856 = vmatprep.subr.bf16.mxu1 %v7234_v0  ;;  %v8588_v0 = vrot.slane %v8333_v31, %v8193_v6 }
 0xec2   : > { %3857 = vmatpush1.bf16.msra.mxu1 %v7235_v8 }
 0xec3   : > { %3858 = vmatprep.subr.bf16.mxu1 %v7236_v9 }
 0xec6   : > { %3859 = vmatpush1.bf16.msra.mxu1 %v7237_v12 }
 0xec7   : > { %6695 = vmatprep.subr.bf16.mxu1 %v7694_v44 }
 0xf69   : > { %v3716_v16 = vpop.f32.mrf.mxu1 }
 0xf6a   : > { %v3717_v51 = vadd.f32 %v6237_v15, %v3716_v16 }
 0xf6b   : > { %v6653_v55 = vpop.f32.mrf.mxu1 }
 0xf6c   : > { %v3722_v17 = vmax.f32 %v3717_v51, 0.0 }
 0xf6d   : > { %v3719_v18 = vpop.f32.mrf.mxu1 }
 0xf6e   : > { %v3723_v27 = vpack.c.bf16 %v3722_v17, %v3722_v17 }
 0xf6f   : > { %v6654_v57 = vpop.f32.mrf.mxu1 }
 0xf70   : > { %6672 = vmatmul.mubr.bf16.vlgmr.msra.gmra.mxu0 %v3723_v27 }
 0xf71   : > { %6676 = vmatpush3.bf16.msra.mxu0 %v7238_v20  ;;  %6691 = vmatprep.mubr.msk.bf16.mxu0 %vm7695_vm0, %v7694_v44 }
 0xf72   : > { %6677 = vmatprep.subr.bf16.mxu0 %v7694_v44 }
 0xf75   : > { %6678 = vmatpush3.bf16.msra.mxu0 %v7239_v22 }
 0xf76   : > { %6679 = vmatprep.subr.bf16.mxu0 %v7694_v44 }
 0xf79   : > { %6680 = vmatpush3.bf16.msra.mxu0 %v7240_v24 }
 0xf7a   : > { %6681 = vmatprep.subr.bf16.mxu0 %v7694_v44 }
 0xf7d   : > { %6682 = vmatpush3.bf16.msra.mxu0 %v7241_v26 }
 0xf7e   : > { %6683 = vmatprep.subr.bf16.mxu0 %v7694_v44 }
 0xf81   : > { %6684 = vmatpush3.bf16.msra.mxu0 %v7242_v25 }
 0xf82   : > { %6685 = vmatprep.subr.bf16.mxu0 %v7694_v44 }
 0xf85   : > { %6686 = vmatpush3.bf16.msra.mxu0 %v7243_v29 }
 0xf86   : > { %6687 = vmatprep.subr.bf16.mxu0 %v7694_v44 }
 0xf89   : > { %6688 = vmatpush3.bf16.msra.mxu0 %v7244_v32 }
 0xf8a   : > { %6689 = vmatprep.subr.bf16.mxu0 %v7694_v44 }
 0xf8d   : > { %6690 = vmatpush3.bf16.msra.mxu0 %v7245_v34 }
 0xf8e   : > { %6719 = vmatprep.subr.bf16.mxu0 %v7694_v44 }
0x1030   : > { %v3812_v42 = vpop.f32.mrf.mxu0 }
0x1031   : > { %v3813_v45 = vadd.f32 %v6246_v37, %v3812_v42 }
0x1032   : > { %v6673_v48 = vpop.f32.mrf.mxu0 }
0x1033   : > { %v3818_v49 = vadd.f32 %v3813_v45, %v8557_v36 }
0x1034   : > { %v3815_v52 = vpop.f32.mrf.mxu0 }
0x1035   : > { %3819 = vadd.xlane.f32.xlu0 %v3818_v49 }
0x1036   : > { %v6674_v56 = vpop.f32.mrf.mxu0 }
0x10be   : > { %v3820_v58 = vpop.xlane.xlu0 %3819 }
0x10bf   : > { %v3821_v30 = vmul.f32 0.03125, %v3820_v58 }
0x10c1   : > { %v3822_v50 = vsub.f32 %v3818_v49, %v3821_v30  ;;  %v3826_v62 = vmul.f32 96.0, %v3821_v30 }
0x10c3   : > { %v3823_v61 = vmul.f32 %v3822_v50, %v3822_v50  ;;  %v3827_v23 = vmul.f32 %v3826_v62, %v3821_v30 }
0x10c5   : > { %3824 = vadd.xlane.f32.xlu0 %v3823_v61 }
0x114e   : > { %v3825_v63 = vpop.xlane.xlu0 %3824 }
0x114f   : > { %v3828_v43 = vsub.f32 %v3825_v63, %v3827_v23 }
0x1151   : > { %v3829_v3 = vmul.f32 0.03125, %v3828_v43 }
0x1153   : > { %v3830_v40 = vadd.f32 1e-05, %v3829_v3 }
0x1155   : > { %7179 = vrsqrt.f32 %v3830_v40 }
0x1162   : > { %v7180_v36 = vpop.eup %7179 }
0x1163   : > { %v3832_v7 = vmul.f32 %v7180_v36, %v3822_v50 }
0x1165   : > { %v3837_v8 = vmul.f32 %v8584_v5, %v3832_v7 }
0x1167   : > { %v8592_v9 = vadd.f32 %v8588_v0, %v3837_v8 }
0x1169   : > { %v3843_v12 = vpack.c.bf16 %v8592_v9, %v8592_v9 }
0x116b   : > { %3877 = vmatmul.mubr.bf16.vlgmr.msra.gmra.mxu1 %v3843_v12  ;;  %6692 = vmatmul.mubr.bf16.vlgmr.msra.gmra.mxu0 %v3843_v12 }
0x116c   : > { %6697 = vmatprep.mubr.msk.bf16.mxu1 %vm7695_vm0, %v7694_v44  ;;  %6721 = vmatprep.mubr.msk.bf16.mxu0 %vm7695_vm0, %v7694_v44 }
0x122b   : > { %v3878_v19 = vpop.f32.mrf.mxu1  ;;  %v8600_v13 = vpop.f32.mrf.mxu0 }
0x122c   : > { %v3879_v17 = vadd.f32 %v3878_v19, %v8078_v33 }
0x122d   : > { %v3880_v6 = vpop.f32.mrf.mxu1  ;;  %v6693_v31 = vpop.f32.mrf.mxu0 }
0x122e   : > { %v3881_v14 = vadd.f32 %v3880_v6, %v8074_v28 }
0x122f   : > { %v3882_v15 = vpop.f32.mrf.mxu1  ;;  %v3922_v16 = vpop.f32.mrf.mxu0 }
0x1230   : > { %3929 = vrot.lane.b32.xlu0 %v3881_v14, %s7693_s15  ;;  %3926 = vrot.lane.b32.xlu1 %v3881_v14, %s7692_s21 }
0x1231   : > { %v3883_v51 = vpop.f32.mrf.mxu1  ;;  %v6694_v55 = vpop.f32.mrf.mxu0 }
0x1234   : > { %3932 = vrot.lane.b32.xlu1 %v3881_v14, %s7691_s23  ;;  %4229 = vrot.lane.b32.xlu0 %v3879_v17, %s7693_s15 }
0x1238   : > { %4226 = vrot.lane.b32.xlu1 %v3879_v17, %s7692_s21 }
0x123c   : > { %4232 = vrot.lane.b32.xlu1 %v3879_v17, %s7691_s23 }
0x12a2   : > { %v3930_v18 = vpop.permute.xlu0 %3929  ;;  %v3927_v28 = vpop.permute.xlu1 %3926 }
0x12a3   : > { %v3935_v27 = vcombine.low %v3881_v14, %v3930_v18  ;;  %v3936_v57 = vcombine.high %v3881_v14, %v3930_v18 }
0x12a5   : > { %v3943_v26 = vrot.slane %v3935_v27, %v8118_v4  ;;  %v3950_v25 = vrot.slane %v3936_v57, %v8118_v4 }
0x12a6   : > { %v3933_v20 = vpop.permute.xlu1 %3932  ;;  %v4230_v48 = vpop.permute.xlu0 %4229 }
0x12a7   : > { %v3951_v22 = vcombine.low %v3927_v28, %v3933_v20  ;;  %v3952_v24 = vcombine.high %v3927_v28, %v3933_v20  ;;  %v4235_v30 = vcombine.low %v3879_v17, %v4230_v48  ;;  %v4236_v50 = vcombine.high %v3879_v17, %v4230_v48 }
0x12a9   : > { %v3959_v33 = vrot.slane %v3951_v22, %v8118_v4  ;;  %v3966_v29 = vrot.slane %v3952_v24, %v8118_v4  ;;  %v4243_v19 = vrot.slane %v4235_v30, %v8118_v4  ;;  %v4250_v6 = vrot.slane %v4236_v50, %v8118_v4 }
0x12aa   : > { %v4227_v32 = vpop.permute.xlu1 %4226 }
0x12ab   : > { %v3967_v34 = vcombine.low %v3943_v26, %v3959_v33  ;;  %v3968_v37 = vcombine.high %v3943_v26, %v3959_v33  ;;  %v3983_v42 = vcombine.low %v3950_v25, %v3966_v29  ;;  %v3984_v45 = vcombine.high %v3950_v25, %v3966_v29 }
0x12ad   : > { %v3975_v49 = vrot.slane %v3967_v34, %v8123_v11  ;;  %v3982_v52 = vrot.slane %v3968_v37, %v8123_v11  ;;  %v3991_v56 = vrot.slane %v3983_v42, %v8123_v11  ;;  %v3998_v58 = vrot.slane %v3984_v45, %v8123_v11 }
0x12ae   : > { %v4233_v61 = vpop.permute.xlu1 %4232 }
0x12af   : > { %v4003_v62 = vcombine.low %v3975_v49, %v3982_v52  ;;  %v6255_v23 = vcombine.high %v3975_v49, %v3982_v52  ;;  %v4019_v63 = vcombine.low %v3991_v56, %v3998_v58  ;;  %v6256_v43 = vcombine.high %v3991_v56, %v3998_v58 }
0x12b0   : > { %v4251_v3 = vcombine.low %v4227_v32, %v4233_v61  ;;  %v4252_v40 = vcombine.high %v4227_v32, %v4233_v61 }
0x12b1   : > { %v4010_v36 = vrot.slane %v4003_v62, %v8118_v4  ;;  %v4018_v7 = vrot.slane %v6255_v23, %v8118_v4  ;;  %v4026_v8 = vrot.slane %v4019_v63, %v8118_v4  ;;  %v4034_v12 = vrot.slane %v6256_v43, %v8118_v4 }
0x12b2   : > { %v4259_v31 = vrot.slane %v4251_v3, %v8118_v4  ;;  %v4266_v14 = vrot.slane %v4252_v40, %v8118_v4 }
0x12b3   : > { %v4035_v15 = vcombine.low %v4010_v36, %v4018_v7  ;;  %v4051_v16 = vcombine.low %v4026_v8, %v4034_v12  ;;  %v4036_v52 = vcombine.high %v4010_v36, %v4018_v7  ;;  %v4052_v50 = vcombine.high %v4026_v8, %v4034_v12 }
0x12b4   : > { %v4267_v51 = vcombine.low %v4243_v19, %v4259_v31  ;;  %v4268_v55 = vcombine.high %v4243_v19, %v4259_v31  ;;  %v4283_v17 = vcombine.low %v4250_v6, %v4266_v14  ;;  %v4284_v18 = vcombine.high %v4250_v6, %v4266_v14 }
0x12b5   : > { %v4043_v28 = vrot.slane %v4035_v15, %v8123_v11  ;;  %v4059_v27 = vrot.slane %v4051_v16, %v8123_v11  ;;  %v4050_v43 = vrot.slane %v4036_v52, %v8123_v11  ;;  %v4066_v3 = vrot.slane %v4052_v50, %v8123_v11 }
0x12b6   : > { %v4275_v57 = vrot.slane %v4267_v51, %v8123_v11  ;;  %v4282_v20 = vrot.slane %v4268_v55, %v8123_v11  ;;  %v4291_v22 = vrot.slane %v4283_v17, %v8123_v11  ;;  %v4298_v24 = vrot.slane %v4284_v18, %v8123_v11 }
0x12b7   : > { %v4067_v26 = vcombine.low %v4043_v28, %v4059_v27  ;;  %v4068_v30 = vcombine.high %v4043_v28, %v4059_v27  ;;  %v4069_v7 = vcombine.low %v4050_v43, %v4066_v3  ;;  %v4070_v51 = vcombine.high %v4050_v43, %v4066_v3 }
0x12b8   : > { %v4303_v25 = vcombine.low %v4275_v57, %v4282_v20  ;;  %v6259_v33 = vcombine.high %v4275_v57, %v4282_v20  ;;  %v4319_v29 = vcombine.low %v4291_v22, %v4298_v24  ;;  %v6260_v32 = vcombine.high %v4291_v22, %v4298_v24 }
0x12b9   : > { %v4071_v34 = vpack.c.bf16 %v4067_v26, %v4067_v26  ;;  %v4072_v63 = vpack.c.bf16 %v4068_v30, %v4068_v30  ;;  %v4073_v6 = vpack.c.bf16 %v4069_v7, %v4069_v7  ;;  %v4074_v17 = vpack.c.bf16 %v4070_v51, %v4070_v51 }
0x12ba   : > { %v4310_v37 = vrot.slane %v4303_v25, %v8118_v4  ;;  %v4318_v42 = vrot.slane %v6259_v33, %v8118_v4  ;;  %v4326_v45 = vrot.slane %v4319_v29, %v8118_v4  ;;  %v4334_v48 = vrot.slane %v6260_v32, %v8118_v4 }
0x12bb   : > { %v4379_v49 = vsel %vm2003_vm1, %v4071_v34, 0  ;;  %v4425_v36 = vsel %vm2003_vm1, %v4072_v63, 0  ;;  %v4471_v16 = vsel %vm2003_vm1, %v4073_v6, 0  ;;  %v4517_v28 = vsel %vm2003_vm1, %v4074_v17, 0 }
0x12bc   : > { %v4335_v56 = vcombine.low %v4310_v37, %v4318_v42  ;;  %v4351_v58 = vcombine.low %v4326_v45, %v4334_v48  ;;  %6696 = vmatpush3.bf16.xpose.msra.mxu1 %v4379_v49  ;;  %v4336_v8 = vcombine.high %v4310_v37, %v4318_v42  ;;  %v4352_v12 = vcombine.high %v4326_v45, %v4334_v48 }
0x12bd   : > { %6701 = vmatprep.subr.bf16.mxu1 %v7694_v44 }
0x12be   : > { %v4343_v61 = vrot.slane %v4335_v56, %v8123_v11  ;;  %v4359_v62 = vrot.slane %v4351_v58, %v8123_v11  ;;  %v4350_v14 = vrot.slane %v4336_v8, %v8123_v11  ;;  %v4366_v15 = vrot.slane %v4352_v12, %v8123_v11 }
0x12bf   : > { %v3920_v58 = vadd.f32 %v8600_v13, %v8198_v10 }
0x12c0   : > { %v4367_v23 = vcombine.low %v4343_v61, %v4359_v62  ;;  %v4368_v19 = vcombine.high %v4343_v61, %v4359_v62  ;;  %v4369_v55 = vcombine.low %v4350_v14, %v4366_v15  ;;  %v4370_v27 = vcombine.high %v4350_v14, %v4366_v15 }
0x12c2   : > { %v4371_v40 = vpack.c.bf16 %v4367_v23, %v4367_v23  ;;  %v4372_v31 = vpack.c.bf16 %v4368_v19, %v4368_v19  ;;  %v4373_v18 = vpack.c.bf16 %v4369_v55, %v4369_v55  ;;  %v4374_v57 = vpack.c.bf16 %v4370_v27, %v4370_v27 }
0x12c4   : > { %6698 = vmatmul.mubr.msk.bf16.vlgmr.msra.gmra.mxu1 %vm2003_vm1, %v4371_v40 }
0x12c5   : > { %6702 = vmatpush3.bf16.xpose.msra.mxu1 %v4425_v36  ;;  %6703 = vmatprep.mubr.msk.bf16.mxu1 %vm7695_vm0, %v7694_v44 }
0x12c6   : > { %6707 = vmatprep.subr.bf16.mxu1 %v7694_v44 }
0x12cc   : > { %6704 = vmatmul.mubr.msk.bf16.vlgmr.msra.gmra.mxu1 %vm2003_vm1, %v4372_v31 }
0x12cd   : > { %6708 = vmatpush3.bf16.xpose.msra.mxu1 %v4471_v16  ;;  %6709 = vmatprep.mubr.msk.bf16.mxu1 %vm7695_vm0, %v7694_v44 }
0x12ce   : > { %6713 = vmatprep.subr.bf16.mxu1 %v7694_v44 }
0x12d4   : > { %6710 = vmatmul.mubr.msk.bf16.vlgmr.msra.gmra.mxu1 %vm2003_vm1, %v4373_v18 }
0x12d5   : > { %6714 = vmatpush3.bf16.xpose.msra.mxu1 %v4517_v28  ;;  %6715 = vmatprep.mubr.msk.bf16.mxu1 %vm7695_vm0, %v7694_v44 }
0x12d6   : > { %6725 = vmatprep.subr.bf16.mxu1 %v7694_v44 }
0x12dc   : > { %6716 = vmatmul.mubr.msk.bf16.vlgmr.msra.gmra.mxu1 %vm2003_vm1, %v4374_v57 }
0x12dd   : > { %6727 = vmatprep.mubr.msk.bf16.mxu1 %vm7695_vm0, %v7694_v44 }
0x1384   : > { %v4415_v20 = vpop.f32.mrf.mxu1 }
0x1385   : > { %v4559_v22 = vsel %vm2188_vm2, %v4415_v20, -inf }
0x1386   : > { %4560 = vmax.xlane.f32.xlu0 %v4559_v22  ;;  %v6699_v24 = vpop.f32.mrf.mxu1 }
0x1388   : > { %v4418_v26 = vpop.f32.mrf.mxu1 }
0x138a   : > { %v6700_v25 = vpop.f32.mrf.mxu1 }
0x138c   : > { %v4461_v33 = vpop.f32.mrf.mxu1 }
0x138d   : > { %v4562_v29 = vsel %vm2188_vm2, %v4461_v33, -inf }
0x138e   : > { %4563 = vmax.xlane.f32.xlu1 %v4562_v29  ;;  %v6705_v32 = vpop.f32.mrf.mxu1 }
0x1390   : > { %v4464_v34 = vpop.f32.mrf.mxu1 }
0x1392   : > { %v6706_v37 = vpop.f32.mrf.mxu1 }
0x1394   : > { %v4507_v42 = vpop.f32.mrf.mxu1 }
0x1395   : > { %v4565_v45 = vsel %vm2188_vm2, %v4507_v42, -inf }
0x1396   : > { %4566 = vmax.xlane.f32.xlu0 %v4565_v45  ;;  %v6711_v48 = vpop.f32.mrf.mxu1 }
0x1398   : > { %v4510_v49 = vpop.f32.mrf.mxu1 }
0x139a   : > { %v6712_v52 = vpop.f32.mrf.mxu1 }
0x139c   : > { %v4553_v56 = vpop.f32.mrf.mxu1 }
0x139d   : > { %v4568_v30 = vsel %vm2188_vm2, %v4553_v56, -inf }
0x139e   : > { %4569 = vmax.xlane.f32.xlu0 %v4568_v30  ;;  %v6717_v50 = vpop.f32.mrf.mxu1 }
0x139f   : > { %4076 = vrot.lane.b32.xlu1 %v3920_v58, %s7692_s21 }
0x13a0   : > { %v4556_v61 = vpop.f32.mrf.mxu1 }
0x13a2   : > { %v6718_v62 = vpop.f32.mrf.mxu1 }
0x140f   : > { %v4561_v23 = vpop.xlane.xlu0 %4560 }
0x1410   : > { %v4571_v63 = vsub.f32 %v4415_v20, %v4561_v23 }
0x1412   : > { %v4575_v43 = vmul.f32 1.442695, %v4571_v63 }
0x1414   : > { %7181 = vpow2.f32 %v4575_v43 }
0x1417   : > { %v4564_v3 = vpop.xlane.xlu1 %4563 }
0x1418   : > { %v4572_v40 = vsub.f32 %v4461_v33, %v4564_v3 }
0x141a   : > { %v4577_v36 = vmul.f32 1.442695, %v4572_v40 }
0x141b   : > { %v4077_v18 = vpop.permute.xlu1 %4076 }
0x141c   : > { %7183 = vpow2.f32 %v4577_v36 }
0x141f   : > { %v4567_v12 = vpop.xlane.xlu0 %4566 }
0x1420   : > { %v4573_v19 = vsub.f32 %v4507_v42, %v4567_v12 }
0x1421   : > { %v8669_v7 = vpop.eup %7181 }
0x1422   : > { %v4583_v10 = vsel %vm2188_vm2, %v8669_v7, 0.0  ;;  %v4579_v6 = vmul.f32 1.442695, %v4573_v19 }
0x1423   : > { %4584 = vadd.xlane.f32.xlu1 %v4583_v10 }
0x1424   : > { %7185 = vpow2.f32 %v4579_v6 }
0x1427   : > { %v4570_v31 = vpop.xlane.xlu0 %4569 }
0x1428   : > { %v4574_v14 = vsub.f32 %v4553_v56, %v4570_v31 }
0x1429   : > { %v8673_v13 = vpop.eup %7183 }
0x142a   : > { %v4586_v8 = vsel %vm2188_vm2, %v8673_v13, 0.0  ;;  %v4581_v15 = vmul.f32 1.442695, %v4574_v14 }
0x142b   : > { %4587 = vadd.xlane.f32.xlu0 %v4586_v8 }
0x142c   : > { %7187 = vpow2.f32 %v4581_v15 }
0x1431   : > { %v8679_v16 = vpop.eup %7185 }
0x1432   : > { %v4589_v51 = vsel %vm2188_vm2, %v8679_v16, 0.0 }
0x1434   : > { %4082 = vrot.lane.b32.xlu1 %v3920_v58, %s7691_s23 }
0x1439   : > { %v8683_v55 = vpop.eup %7187 }
0x143a   : > { %v4592_v17 = vsel %vm2188_vm2, %v8683_v55, 0.0 }
0x1441   : > { %4079 = vrot.lane.b32.xlu0 %v3920_v58, %s7693_s15 }
0x1458   : > { %4590 = vadd.xlane.f32.xlu1 %v4589_v51 }
0x1460   : > { %4593 = vadd.xlane.f32.xlu0 %v4592_v17 }
0x14ac   : > { %v4585_v28 = vpop.xlane.xlu1 %4584 }
0x14ad   : > { %7189 = vrcp.f32 %v4585_v28 }
0x14b0   : > { %v4083_v27 = vpop.permute.xlu1 %4082 }
0x14b1   : > { %v4101_v20 = vcombine.low %v4077_v18, %v4083_v27  ;;  %v4102_v22 = vcombine.high %v4077_v18, %v4083_v27 }
0x14b3   : > { %v4109_v33 = vrot.slane %v4101_v20, %v8118_v4  ;;  %v4116_v29 = vrot.slane %v4102_v22, %v8118_v4 }
0x14b4   : > { %v4588_v57 = vpop.xlane.xlu0 %4587 }
0x14b5   : > { %7191 = vrcp.f32 %v4588_v57 }
0x14b8   : > { %v4080_v24 = vpop.permute.xlu0 %4079 }
0x14b9   : > { %v4085_v26 = vcombine.low %v3920_v58, %v4080_v24  ;;  %v4086_v25 = vcombine.high %v3920_v58, %v4080_v24 }
0x14ba   : > { %v7190_v12 = vpop.eup %7189 }
0x14bb   : > { %v4093_v32 = vrot.slane %v4085_v26, %v8118_v4  ;;  %v4100_v34 = vrot.slane %v4086_v25, %v8118_v4  ;;  %v4599_v20 = vmul.f32 %v7190_v12, %v8669_v7  ;;  %v7261_v12 = vld [vmem:[#allocation13] sm:$0xff]  }
0x14bd   : > { %v4117_v37 = vcombine.low %v4093_v32, %v4109_v33  ;;  %v4118_v42 = vcombine.high %v4093_v32, %v4109_v33  ;;  %v4133_v45 = vcombine.low %v4100_v34, %v4116_v29  ;;  %v4134_v48 = vcombine.high %v4100_v34, %v4116_v29 }
0x14be   : > { %v4603_v29 = vpack.c.bf16 %v4599_v20, %v4599_v20 }
0x14bf   : > { %v4125_v49 = vrot.slane %v4117_v37, %v8123_v11  ;;  %v4132_v52 = vrot.slane %v4118_v42, %v8123_v11  ;;  %v4141_v56 = vrot.slane %v4133_v45, %v8123_v11  ;;  %v4148_v58 = vrot.slane %v4134_v48, %v8123_v11 }
0x14c1   : > { %v4153_v30 = vcombine.low %v4125_v49, %v4132_v52  ;;  %v6257_v50 = vcombine.high %v4125_v49, %v4132_v52  ;;  %v4169_v61 = vcombine.low %v4141_v56, %v4148_v58  ;;  %v6258_v62 = vcombine.high %v4141_v56, %v4148_v58  ;;  %v7246_v49 = vld [vmem:[#allocation10 + $0x38] sm:$0xff]   ;;  %v7247_v58 = vld [vmem:[#allocation10 + $0x30] sm:$0xff]  }
0x14c2   : > { %v7192_v15 = vpop.eup %7191 }
0x14c3   : > { %v4160_v23 = vrot.slane %v4153_v30, %v8118_v4  ;;  %v4168_v63 = vrot.slane %v6257_v50, %v8118_v4  ;;  %v4176_v43 = vrot.slane %v4169_v61, %v8118_v4  ;;  %v4184_v3 = vrot.slane %v6258_v62, %v8118_v4  ;;  %v7249_v50 = vld [vmem:[#allocation13 + $0x38] sm:$0xff]  }
0x14c4   : > { %v4600_v22 = vmul.f32 %v7192_v15, %v8673_v13  ;;  %v7250_v61 = vld [vmem:[#allocation10 + $0x20] sm:$0xff]   ;;  %v7252_v62 = vld [vmem:[#allocation10 + $0x18] sm:$0xff]  }
0x14c5   : > { %v4185_v40 = vcombine.low %v4160_v23, %v4168_v63  ;;  %v4201_v36 = vcombine.low %v4176_v43, %v4184_v3  ;;  %v4186_v10 = vcombine.high %v4160_v23, %v4168_v63  ;;  %v4202_v8 = vcombine.high %v4176_v43, %v4184_v3  ;;  %v7253_v23 = vld [vmem:[#allocation13 + $0x28] sm:$0xff]   ;;  %v7255_v43 = vld [vmem:[#allocation13 + $0x20] sm:$0xff]  }
0x14c6   : > { %v4604_v32 = vpack.c.bf16 %v4600_v22, %v4600_v22  ;;  %v7254_v63 = vld [vmem:[#allocation10 + $0x10] sm:$0xff]   ;;  %v7256_v3 = vld [vmem:[#allocation10 + $0x8] sm:$0xff]  }
0x14c7   : > { %v4193_v19 = vrot.slane %v4185_v40, %v8123_v11  ;;  %v4209_v6 = vrot.slane %v4201_v36, %v8123_v11  ;;  %v4200_v31 = vrot.slane %v4186_v10, %v8123_v11  ;;  %v4216_v14 = vrot.slane %v4202_v8, %v8123_v11  ;;  %v7257_v40 = vld [vmem:[#allocation13 + $0x18] sm:$0xff]   ;;  %v7259_v10 = vld [vmem:[#allocation13 + $0x10] sm:$0xff]   ;;  %v7260_v8 = vld [vmem:[#allocation13 + $0x8] sm:$0xff]  }
0x14c8   : > { %v7258_v36 = vld [vmem:[#allocation10] sm:$0xff]  }
0x14c9   : > { %v4217_v51 = vcombine.low %v4193_v19, %v4209_v6  ;;  %v4218_v17 = vcombine.high %v4193_v19, %v4209_v6  ;;  %v4219_v18 = vcombine.low %v4200_v31, %v4216_v14  ;;  %v4220_v28 = vcombine.high %v4200_v31, %v4216_v14 }
0x14cb   : > { %v4221_v27 = vpack.c.bf16 %v4217_v51, %v4217_v51  ;;  %v4222_v57 = vpack.c.bf16 %v4218_v17, %v4218_v17  ;;  %v4223_v25 = vpack.c.bf16 %v4219_v18, %v4219_v18  ;;  %v4224_v33 = vpack.c.bf16 %v4220_v28, %v4220_v28 }
0x14cd   : > { %v4611_v24 = vsel %vm2240_vm3, %v4221_v27, 0  ;;  %v4657_v26 = vsel %vm2240_vm3, %v4222_v57, 0  ;;  %v4703_v7 = vsel %vm2240_vm3, %v4223_v25, 0  ;;  %v4749_v13 = vsel %vm2240_vm3, %v4224_v33, 0 }
0x14ce   : > { %6720 = vmatpush3.bf16.msra.mxu0 %v4611_v24  ;;  %6726 = vmatpush3.bf16.msra.mxu1 %v4657_v26 }
0x14cf   : > { %6731 = vmatprep.subr.bf16.mxu0 %v7694_v44  ;;  %6737 = vmatprep.subr.bf16.mxu1 %v7694_v44 }
0x14d1   : > { %6722 = vmatmul.mubr.msk.bf16.vlgmr.msra.gmra.mxu0 %vm2188_vm2, %v4603_v29  ;;  %6728 = vmatmul.mubr.msk.bf16.vlgmr.msra.gmra.mxu1 %vm2188_vm2, %v4604_v32 }
0x14d2   : > { %6732 = vmatpush3.bf16.msra.mxu0 %v4703_v7  ;;  %6738 = vmatpush3.bf16.msra.mxu1 %v4749_v13 }
0x14d3   : > { %6733 = vmatprep.mubr.msk.bf16.mxu0 %vm7695_vm0, %v7694_v44  ;;  %6739 = vmatprep.mubr.msk.bf16.mxu1 %vm7695_vm0, %v7694_v44 }
0x14d4   : > { %6743 = vmatprep.subr.bf16.mxu0 %v7694_v44  ;;  %6763 = vmatprep.subr.bf16.mxu1 %v7694_v44 }
0x14e1   : > { %v4591_v34 = vpop.xlane.xlu1 %4590 }
0x14e2   : > { %7193 = vrcp.f32 %v4591_v34 }
0x14e9   : > { %v4594_v37 = vpop.xlane.xlu0 %4593 }
0x14ea   : > { %7195 = vrcp.f32 %v4594_v37 }
0x14ef   : > { %v7194_v42 = vpop.eup %7193 }
0x14f0   : > { %v4601_v45 = vmul.f32 %v7194_v42, %v8679_v16  ;;  %v7248_v16 = vld [vmem:[#allocation10 + $0x28] sm:$0xff]  }
0x14f2   : > { %v4605_v48 = vpack.c.bf16 %v4601_v45, %v4601_v45 }
0x14f4   : > { %6734 = vmatmul.mubr.msk.bf16.vlgmr.msra.gmra.mxu0 %vm2188_vm2, %v4605_v48 }
0x14f5   : > { %6744 = vmatpush3.bf16.msra.mxu0 %v7246_v49  ;;  %6759 = vmatprep.mubr.msk.bf16.mxu0 %vm7695_vm0, %v7694_v44 }
0x14f6   : > { %6745 = vmatprep.subr.bf16.mxu0 %v7694_v44 }
0x14f7   : > { %v7196_v52 = vpop.eup %7195 }
0x14f8   : > { %v4602_v56 = vmul.f32 %v7196_v52, %v8683_v55  ;;  %v7251_v55 = vld [vmem:[#allocation13 + $0x30] sm:$0xff]  }
0x14f9   : > { %6746 = vmatpush3.bf16.msra.mxu0 %v7247_v58 }
0x14fa   : > { %v4606_v30 = vpack.c.bf16 %v4602_v56, %v4602_v56  ;;  %6747 = vmatprep.subr.bf16.mxu0 %v7694_v44 }
0x14fc   : > { %6740 = vmatmul.mubr.msk.bf16.vlgmr.msra.gmra.mxu1 %vm2188_vm2, %v4606_v30 }
0x14fd   : > { %6748 = vmatpush3.bf16.msra.mxu0 %v7248_v16  ;;  %6764 = vmatpush3.bf16.msra.mxu1 %v7249_v50 }
0x14fe   : > { %6749 = vmatprep.subr.bf16.mxu0 %v7694_v44  ;;  %6765 = vmatprep.subr.bf16.mxu1 %v7694_v44 }
0x14ff   : > { %6779 = vmatprep.mubr.msk.bf16.mxu1 %vm7695_vm0, %v7694_v44 }
0x1501   : > { %6750 = vmatpush3.bf16.msra.mxu0 %v7250_v61  ;;  %6766 = vmatpush3.bf16.msra.mxu1 %v7251_v55 }
0x1502   : > { %6751 = vmatprep.subr.bf16.mxu0 %v7694_v44  ;;  %6767 = vmatprep.subr.bf16.mxu1 %v7694_v44 }
0x1505   : > { %6752 = vmatpush3.bf16.msra.mxu0 %v7252_v62  ;;  %6768 = vmatpush3.bf16.msra.mxu1 %v7253_v23 }
0x1506   : > { %6753 = vmatprep.subr.bf16.mxu0 %v7694_v44  ;;  %6769 = vmatprep.subr.bf16.mxu1 %v7694_v44 }
0x1509   : > { %6754 = vmatpush3.bf16.msra.mxu0 %v7254_v63  ;;  %6770 = vmatpush3.bf16.msra.mxu1 %v7255_v43 }
0x150a   : > { %6755 = vmatprep.subr.bf16.mxu0 %v7694_v44  ;;  %6771 = vmatprep.subr.bf16.mxu1 %v7694_v44 }
0x150d   : > { %6756 = vmatpush3.bf16.msra.mxu0 %v7256_v3  ;;  %6772 = vmatpush3.bf16.msra.mxu1 %v7257_v40 }
0x150e   : > { %6757 = vmatprep.subr.bf16.mxu0 %v7694_v44  ;;  %6773 = vmatprep.subr.bf16.mxu1 %v7694_v44 }
0x1511   : > { %6758 = vmatpush3.bf16.msra.mxu0 %v7258_v36  ;;  %6774 = vmatpush3.bf16.msra.mxu1 %v7259_v10 }
0x1512   : > { %6783 = vmatprep.subr.bf16.mxu0 %v7694_v44  ;;  %6775 = vmatprep.subr.bf16.mxu1 %v7694_v44 }
0x1515   : > { %6776 = vmatpush3.bf16.msra.mxu1 %v7260_v8 }
0x1516   : > { %6777 = vmatprep.subr.bf16.mxu1 %v7694_v44 }
0x1519   : > { %6778 = vmatpush3.bf16.msra.mxu1 %v7261_v12 }
0x151a   : > { %6789 = vmatprep.subr.bf16.mxu1 %v7694_v44 }
0x1591   : > { %v4647_v19 = vpop.f32.mrf.mxu0  ;;  %v4693_v6 = vpop.f32.mrf.mxu1 }
0x1593   : > { %v6723_v31 = vpop.f32.mrf.mxu0  ;;  %v6729_v14 = vpop.f32.mrf.mxu1 }
0x1595   : > { %v4650_v15 = vpop.f32.mrf.mxu0  ;;  %v4696_v51 = vpop.f32.mrf.mxu1 }
0x1597   : > { %v6724_v17 = vpop.f32.mrf.mxu0  ;;  %v6730_v18 = vpop.f32.mrf.mxu1 }
0x15b4   : > { %v4739_v28 = vpop.f32.mrf.mxu0 }
0x15b5   : > { %v4791_v22 = vcombine.low %v4647_v19, %v4739_v28  ;;  %v4792_v24 = vcombine.high %v4647_v19, %v4739_v28 }
0x15b6   : > { %v6735_v27 = vpop.f32.mrf.mxu0 }
0x15b7   : > { %v4799_v32 = vrot.slane %v4791_v22, %v8118_v4  ;;  %v4806_v7 = vrot.slane %v4792_v24, %v8118_v4 }
0x15b8   : > { %v4742_v57 = vpop.f32.mrf.mxu0 }
0x15ba   : > { %v6736_v20 = vpop.f32.mrf.mxu0 }
0x15bc   : > { %v4785_v26 = vpop.f32.mrf.mxu1 }
0x15bd   : > { %v4807_v25 = vcombine.low %v4693_v6, %v4785_v26  ;;  %v4808_v33 = vcombine.high %v4693_v6, %v4785_v26 }
0x15be   : > { %v6741_v29 = vpop.f32.mrf.mxu1 }
0x15bf   : > { %v4815_v13 = vrot.slane %v4807_v25, %v8118_v4  ;;  %v4822_v34 = vrot.slane %v4808_v33, %v8118_v4  ;;  %v7262_v25 = vld [vmem:[#allocation11] ss:$0 sm:$0xff] }
0x15c0   : > { %v4788_v37 = vpop.f32.mrf.mxu1 }
0x15c1   : > { %v4823_v42 = vcombine.low %v4799_v32, %v4815_v13  ;;  %v4824_v45 = vcombine.high %v4799_v32, %v4815_v13  ;;  %v4839_v48 = vcombine.low %v4806_v7, %v4822_v34  ;;  %v4840_v49 = vcombine.high %v4806_v7, %v4822_v34 }
0x15c2   : > { %v6742_v52 = vpop.f32.mrf.mxu1 }
0x15c3   : > { %v4831_v56 = vrot.slane %v4823_v42, %v8123_v11  ;;  %v4838_v58 = vrot.slane %v4824_v45, %v8123_v11  ;;  %v4847_v30 = vrot.slane %v4839_v48, %v8123_v11  ;;  %v4854_v16 = vrot.slane %v4840_v49, %v8123_v11 }
0x15c5   : > { %v4859_v50 = vcombine.low %v4831_v56, %v4838_v58  ;;  %v6269_v61 = vcombine.high %v4831_v56, %v4838_v58  ;;  %v4875_v55 = vcombine.low %v4847_v30, %v4854_v16  ;;  %v6270_v62 = vcombine.high %v4847_v30, %v4854_v16 }
0x15c7   : > { %v4866_v23 = vrot.slane %v4859_v50, %v8118_v4  ;;  %v4874_v63 = vrot.slane %v6269_v61, %v8118_v4  ;;  %v4882_v43 = vrot.slane %v4875_v55, %v8118_v4  ;;  %v4890_v3 = vrot.slane %v6270_v62, %v8118_v4  ;;  %v7263_v62 = vld [vmem:[%s9026_s22] ss:$0 sm:$0xff] }
0x15c9   : > { %v4892_v40 = vcombine.high %v4866_v23, %v4874_v63  ;;  %v4908_v36 = vcombine.high %v4882_v43, %v4890_v3  ;;  %v4891_v10 = vcombine.low %v4866_v23, %v4874_v63  ;;  %v4907_v8 = vcombine.low %v4882_v43, %v4890_v3 }
0x15cb   : > { %v4906_v12 = vrot.slane %v4892_v40, %v8123_v11  ;;  %v4922_v19 = vrot.slane %v4908_v36, %v8123_v11  ;;  %v4899_v6 = vrot.slane %v4891_v10, %v8123_v11  ;;  %v4915_v31 = vrot.slane %v4907_v8, %v8123_v11 }
0x15cd   : > { %v4925_v14 = vcombine.low %v4906_v12, %v4922_v19  ;;  %v4924_v15 = vcombine.high %v4899_v6, %v4915_v31  ;;  %v4923_v51 = vcombine.low %v4899_v6, %v4915_v31  ;;  %v4926_v17 = vcombine.high %v4906_v12, %v4922_v19 }
0x15cf   : > { %4932 = vrot.lane.b32.xlu1 %v4925_v14, %s7693_s15  ;;  %4928 = vrot.lane.b32.xlu0 %v4924_v15, %s7691_s23 }
0x15d3   : > { %4936 = vrot.lane.b32.xlu1 %v4926_v17, %s7692_s21 }
0x1641   : > { %v4933_v18 = vpop.permute.xlu1 %4932  ;;  %v4929_v28 = vpop.permute.xlu0 %4928 }
0x1642   : > { %v4939_v27 = vsel %vm2003_vm1, %v4923_v51, %v4929_v28 }
0x1643   : > { %v4940_v20 = vsel %vm2571_vm4, %v4939_v27, %v4933_v18 }
0x1645   : > { %v4937_v57 = vpop.permute.xlu1 %4936 }
0x1646   : > { %v4941_v22 = vsel %vm2573_vm5, %v4940_v20, %v4937_v57 }
0x1647   : > { %v4942_v24 = vpack.c.bf16 %v4941_v22, %v4941_v22 }
0x1649   : > { %6760 = vmatmul.mubr.bf16.vlgmr.msra.gmra.mxu0 %v4942_v24 }
0x164a   : > { %6784 = vmatpush3.bf16.xpose.msra.mxu0 %v8354_v54  ;;  %6785 = vmatprep.mubr.msk.bf16.mxu0 %vm7695_vm0, %v7694_v44 }
0x164b   : > { %6795 = vmatprep.subr.bf16.mxu0 %v7694_v44 }
0x1709   : > { %v4977_v26 = vpop.f32.mrf.mxu0 }
0x170a   : > { %v4978_v33 = vadd.f32 %v7262_v25, %v4977_v26 }
0x170b   : > { %v6761_v29 = vpop.f32.mrf.mxu0 }
0x170c   : > { %v4983_v32 = vadd.f32 %v4978_v33, %v8592_v9 }
0x170d   : > { %v4980_v7 = vpop.f32.mrf.mxu0 }
0x170e   : > { %4984 = vadd.xlane.f32.xlu0 %v4983_v32 }
0x170f   : > { %v6762_v13 = vpop.f32.mrf.mxu0 }
0x1797   : > { %v4985_v34 = vpop.xlane.xlu0 %4984 }
0x1798   : > { %v4986_v37 = vmul.f32 0.03125, %v4985_v34 }
0x179a   : > { %v4987_v42 = vsub.f32 %v4983_v32, %v4986_v37  ;;  %v4991_v54 = vmul.f32 96.0, %v4986_v37 }
0x179c   : > { %v4988_v45 = vmul.f32 %v4987_v42, %v4987_v42  ;;  %v4992_v48 = vmul.f32 %v4991_v54, %v4986_v37 }
0x179e   : > { %4989 = vadd.xlane.f32.xlu1 %v4988_v45 }
0x1827   : > { %v4990_v49 = vpop.xlane.xlu1 %4989 }
0x1828   : > { %v4993_v52 = vsub.f32 %v4990_v49, %v4992_v48 }
0x182a   : > { %v4994_v56 = vmul.f32 0.03125, %v4993_v52 }
0x182c   : > { %v4995_v58 = vadd.f32 1e-05, %v4994_v56 }
0x182e   : > { %7197 = vrsqrt.f32 %v4995_v58 }
0x183b   : > { %v7198_v30 = vpop.eup %7197 }
0x183c   : > { %v4997_v16 = vmul.f32 %v7198_v30, %v4987_v42 }
0x183e   : > { %v4998_v50 = vmul.f32 %v4997_v16, %v8337_v35 }
0x1840   : > { %v8772_v9 = vadd.f32 %v4998_v50, %v8345_v47 }
0x1842   : > { %v5000_v61 = vpack.c.bf16 %v8772_v9, %v8772_v9 }
0x1844   : > { %6780 = vmatmul.mubr.bf16.vlgmr.msra.gmra.mxu1 %v5000_v61 }
0x1845   : > { %6790 = vmatpush3.bf16.xpose.msra.mxu1 %v8364_v39  ;;  %6791 = vmatprep.mubr.msk.bf16.mxu1 %vm7695_vm0, %v7694_v44 }
0x1846   : > { %6801 = vmatprep.subr.bf16.mxu1 %v7694_v44 }
0x1904   : > { %v5035_v55 = vpop.f32.mrf.mxu1 }
0x1905   : > { %v5036_v35 = vadd.f32 %v7263_v62, %v5035_v55 }
0x1906   : > { %v6781_v23 = vpop.f32.mrf.mxu1 }
0x1907   : > { %5045 = vrot.lane.b32.xlu1 %v5036_v35, %s7693_s15  ;;  %5042 = vrot.lane.b32.xlu0 %v5036_v35, %s7692_s21 }
0x1908   : > { %v5038_v47 = vpop.f32.mrf.mxu1 }
0x190a   : > { %v6782_v63 = vpop.f32.mrf.mxu1 }
0x190b   : > { %5048 = vrot.lane.b32.xlu0 %v5036_v35, %s7691_s23 }
0x1979   : > { %v5046_v39 = vpop.permute.xlu1 %5045  ;;  %v5043_v43 = vpop.permute.xlu0 %5042 }
0x197a   : > { %v5051_v3 = vcombine.low %v5036_v35, %v5046_v39  ;;  %v5052_v40 = vcombine.high %v5036_v35, %v5046_v39 }
0x197c   : > { %v5059_v12 = vrot.slane %v5051_v3, %v8118_v4  ;;  %v5066_v19 = vrot.slane %v5052_v40, %v8118_v4 }
0x197d   : > { %v5049_v36 = vpop.permute.xlu0 %5048 }
0x197e   : > { %v5067_v10 = vcombine.low %v5043_v43, %v5049_v36  ;;  %v5068_v8 = vcombine.high %v5043_v43, %v5049_v36 }
0x1980   : > { %v5075_v6 = vrot.slane %v5067_v10, %v8118_v4  ;;  %v5082_v31 = vrot.slane %v5068_v8, %v8118_v4 }
0x1982   : > { %v5083_v14 = vcombine.low %v5059_v12, %v5075_v6  ;;  %v5084_v15 = vcombine.high %v5059_v12, %v5075_v6  ;;  %v5099_v51 = vcombine.low %v5066_v19, %v5082_v31  ;;  %v5100_v17 = vcombine.high %v5066_v19, %v5082_v31 }
0x1984   : > { %v5091_v18 = vrot.slane %v5083_v14, %v8123_v11  ;;  %v5098_v28 = vrot.slane %v5084_v15, %v8123_v11  ;;  %v5107_v27 = vrot.slane %v5099_v51, %v8123_v11  ;;  %v5114_v57 = vrot.slane %v5100_v17, %v8123_v11 }
0x1986   : > { %v5119_v20 = vcombine.low %v5091_v18, %v5098_v28  ;;  %v6271_v22 = vcombine.high %v5091_v18, %v5098_v28  ;;  %v5135_v24 = vcombine.low %v5107_v27, %v5114_v57  ;;  %v6272_v26 = vcombine.high %v5107_v27, %v5114_v57 }
0x1988   : > { %v5126_v25 = vrot.slane %v5119_v20, %v8118_v4  ;;  %v5134_v33 = vrot.slane %v6271_v22, %v8118_v4  ;;  %v5142_v29 = vrot.slane %v5135_v24, %v8118_v4  ;;  %v5150_v32 = vrot.slane %v6272_v26, %v8118_v4 }
0x198a   : > { %v5151_v7 = vcombine.low %v5126_v25, %v5134_v33  ;;  %v5167_v13 = vcombine.low %v5142_v29, %v5150_v32  ;;  %v5152_v34 = vcombine.high %v5126_v25, %v5134_v33  ;;  %v5168_v37 = vcombine.high %v5142_v29, %v5150_v32 }
0x198c   : > { %v5159_v42 = vrot.slane %v5151_v7, %v8123_v11  ;;  %v5175_v45 = vrot.slane %v5167_v13, %v8123_v11  ;;  %v5166_v56 = vrot.slane %v5152_v34, %v8123_v11  ;;  %v5182_v58 = vrot.slane %v5168_v37, %v8123_v11 }
0x198e   : > { %v5183_v54 = vcombine.low %v5159_v42, %v5175_v45  ;;  %v5184_v48 = vcombine.high %v5159_v42, %v5175_v45  ;;  %v5185_v30 = vcombine.low %v5166_v56, %v5182_v58  ;;  %v5186_v16 = vcombine.high %v5166_v56, %v5182_v58 }
0x1990   : > { %v5187_v49 = vpack.c.bf16 %v5183_v54, %v5183_v54  ;;  %v5188_v52 = vpack.c.bf16 %v5184_v48, %v5184_v48  ;;  %v5189_v50 = vpack.c.bf16 %v5185_v30, %v5185_v30  ;;  %v5190_v61 = vpack.c.bf16 %v5186_v16, %v5186_v16 }
0x1992   : > { %6786 = vmatmul.mubr.msk.bf16.vlgmr.msra.gmra.mxu0 %vm2003_vm1, %v5187_v49  ;;  %6792 = vmatmul.mubr.msk.bf16.vlgmr.msra.gmra.mxu1 %vm2003_vm1, %v5188_v52 }
0x1993   : > { %6796 = vmatpush3.bf16.xpose.msra.mxu0 %v8399_v59  ;;  %6802 = vmatpush3.bf16.xpose.msra.mxu1 %v8402_v60 }
0x1994   : > { %6797 = vmatprep.mubr.msk.bf16.mxu0 %vm7695_vm0, %v7694_v44  ;;  %6803 = vmatprep.mubr.msk.bf16.mxu1 %vm7695_vm0, %v7694_v44 }
0x1995   : > { %6807 = vmatprep.subr.bf16.mxu0 %v7694_v44  ;;  %6813 = vmatprep.subr.bf16.mxu1 %v7694_v44 }
0x199a   : > { %6798 = vmatmul.mubr.msk.bf16.vlgmr.msra.gmra.mxu0 %vm2003_vm1, %v5189_v50  ;;  %6804 = vmatmul.mubr.msk.bf16.vlgmr.msra.gmra.mxu1 %vm2003_vm1, %v5190_v61 }
0x199b   : > { %6808 = vmatpush3.bf16.msra.mxu0 %v8465_v1  ;;  %6814 = vmatpush3.bf16.msra.mxu1 %v8468_v2 }
0x199c   : > { %6809 = vmatprep.mubr.msk.bf16.mxu0 %vm7695_vm0, %v7694_v44  ;;  %6815 = vmatprep.mubr.msk.bf16.mxu1 %vm7695_vm0, %v7694_v44 }
0x199d   : > { %6819 = vmatprep.subr.bf16.mxu0 %v7694_v44  ;;  %6825 = vmatprep.subr.bf16.mxu1 %v7694_v44 }
0x1a52   : > { %v5228_v59 = vpop.f32.mrf.mxu0  ;;  %v5271_v60 = vpop.f32.mrf.mxu1 }
0x1a53   : > { %v5363_v55 = vsel %vm2188_vm2, %v5228_v59, -inf  ;;  %v5366_v62 = vsel %vm2188_vm2, %v5271_v60, -inf }
0x1a54   : > { %5364 = vmax.xlane.f32.xlu1 %v5363_v55  ;;  %v6787_v1 = vpop.f32.mrf.mxu0  ;;  %5367 = vmax.xlane.f32.xlu0 %v5366_v62  ;;  %v6793_v2 = vpop.f32.mrf.mxu1  ;;  %v7266_v62 = vld [vmem:[#allocation16 + $0x30] sm:$0xff]  }
0x1a55   : > { %v7267_v1 = vld [vmem:[#allocation17 + $0x30] sm:$0xff]   ;;  %v7268_v2 = vld [vmem:[#allocation16 + $0x28] sm:$0xff]  }
0x1a56   : > { %v5231_v35 = vpop.f32.mrf.mxu0  ;;  %v5274_v23 = vpop.f32.mrf.mxu1 }
0x1a57   : > { %v7269_v35 = vld [vmem:[#allocation17 + $0x28] sm:$0xff]   ;;  %v7270_v23 = vld [vmem:[#allocation16 + $0x20] sm:$0xff]  }
0x1a58   : > { %v6788_v47 = vpop.f32.mrf.mxu0  ;;  %v6794_v63 = vpop.f32.mrf.mxu1 }
0x1a59   : > { %v7271_v47 = vld [vmem:[#allocation17 + $0x20] sm:$0xff]   ;;  %v7272_v63 = vld [vmem:[#allocation16 + $0x18] sm:$0xff]  }
0x1a5a   : > { %v5314_v39 = vpop.f32.mrf.mxu0  ;;  %v5357_v43 = vpop.f32.mrf.mxu1 }
0x1a5b   : > { %v5369_v3 = vsel %vm2188_vm2, %v5314_v39, -inf  ;;  %v5372_v40 = vsel %vm2188_vm2, %v5357_v43, -inf }
0x1a5c   : > { %v6799_v36 = vpop.f32.mrf.mxu0  ;;  %5370 = vmax.xlane.f32.xlu0 %v5369_v3  ;;  %5373 = vmax.xlane.f32.xlu1 %v5372_v40  ;;  %v6805_v10 = vpop.f32.mrf.mxu1  ;;  %v7275_v3 = vld [vmem:[#allocation17 + $0x10] sm:$0xff]   ;;  %v7276_v40 = vld [vmem:[#allocation16 + $0x8] sm:$0xff]  }
0x1a5d   : > { %v7277_v36 = vld [vmem:[#allocation17 + $0x8] sm:$0xff]   ;;  %v7278_v10 = vld [vmem:[#allocation16] sm:$0xff]  }
0x1a5e   : > { %v5317_v8 = vpop.f32.mrf.mxu0  ;;  %v5360_v12 = vpop.f32.mrf.mxu1 }
0x1a5f   : > { %v7279_v8 = vld [vmem:[#allocation17] sm:$0xff]  }
0x1a60   : > { %v6800_v19 = vpop.f32.mrf.mxu0  ;;  %v6806_v6 = vpop.f32.mrf.mxu1 }
0x1add   : > { %v5365_v31 = vpop.xlane.xlu1 %5364  ;;  %v5368_v14 = vpop.xlane.xlu0 %5367 }
0x1ade   : > { %v5375_v15 = vsub.f32 %v5228_v59, %v5365_v31  ;;  %v5376_v51 = vsub.f32 %v5271_v60, %v5368_v14 }
0x1ae0   : > { %v5379_v17 = vmul.f32 1.442695, %v5375_v15  ;;  %v5381_v18 = vmul.f32 1.442695, %v5376_v51 }
0x1ae2   : > { %7199 = vpow2.f32 %v5379_v17 }
0x1ae3   : > { %7201 = vpow2.f32 %v5381_v18 }
0x1ae5   : > { %v5371_v28 = vpop.xlane.xlu0 %5370  ;;  %v5374_v27 = vpop.xlane.xlu1 %5373 }
0x1ae6   : > { %v5377_v57 = vsub.f32 %v5314_v39, %v5371_v28  ;;  %v5378_v20 = vsub.f32 %v5357_v43, %v5374_v27  ;;  %v7273_v39 = vld [vmem:[#allocation17 + $0x18] sm:$0xff]   ;;  %v7274_v43 = vld [vmem:[#allocation16 + $0x10] sm:$0xff]  }
0x1ae8   : > { %v5383_v22 = vmul.f32 1.442695, %v5377_v57  ;;  %v5385_v24 = vmul.f32 1.442695, %v5378_v20 }
0x1aea   : > { %7203 = vpow2.f32 %v5383_v22 }
0x1aeb   : > { %7205 = vpow2.f32 %v5385_v24 }
0x1aef   : > { %v7200_v26 = vpop.eup %7199 }
0x1af0   : > { %v7202_v25 = vpop.eup %7201  ;;  %v5387_v33 = vsel %vm2188_vm2, %v7200_v26, 0.0 }
0x1af1   : > { %5388 = vadd.xlane.f32.xlu0 %v5387_v33  ;;  %v5390_v29 = vsel %vm2188_vm2, %v7202_v25, 0.0 }
0x1af2   : > { %5391 = vadd.xlane.f32.xlu1 %v5390_v29 }
0x1af7   : > { %v7204_v32 = vpop.eup %7203 }
0x1af8   : > { %v7206_v7 = vpop.eup %7205  ;;  %v5393_v13 = vsel %vm2188_vm2, %v7204_v32, 0.0 }
0x1af9   : > { %5394 = vadd.xlane.f32.xlu0 %v5393_v13  ;;  %v5396_v34 = vsel %vm2188_vm2, %v7206_v7, 0.0 }
0x1afa   : > { %5397 = vadd.xlane.f32.xlu1 %v5396_v34 }
0x1b7a   : > { %v5389_v37 = vpop.xlane.xlu0 %5388 }
0x1b7b   : > { %7207 = vrcp.f32 %v5389_v37  ;;  %v5392_v42 = vpop.xlane.xlu1 %5391 }
0x1b7c   : > { %7209 = vrcp.f32 %v5392_v42 }
0x1b82   : > { %v5395_v45 = vpop.xlane.xlu0 %5394 }
0x1b83   : > { %7211 = vrcp.f32 %v5395_v45  ;;  %v5398_v54 = vpop.xlane.xlu1 %5397 }
0x1b84   : > { %7213 = vrcp.f32 %v5398_v54 }
0x1b88   : > { %v7208_v48 = vpop.eup %7207 }
0x1b89   : > { %v7210_v49 = vpop.eup %7209  ;;  %v5403_v52 = vmul.f32 %v7208_v48, %v7200_v26 }
0x1b8a   : > { %v5404_v56 = vmul.f32 %v7210_v49, %v7202_v25 }
0x1b8b   : > { %v5407_v58 = vpack.c.bf16 %v5403_v52, %v5403_v52 }
0x1b8c   : > { %v5408_v30 = vpack.c.bf16 %v5404_v56, %v5404_v56 }
0x1b8d   : > { %6810 = vmatmul.mubr.msk.bf16.vlgmr.msra.gmra.mxu0 %vm2188_vm2, %v5407_v58 }
0x1b8e   : > { %6816 = vmatmul.mubr.msk.bf16.vlgmr.msra.gmra.mxu1 %vm2188_vm2, %v5408_v30  ;;  %6820 = vmatpush3.bf16.msra.mxu0 %v8477_v38  ;;  %v7264_v38 = vld [vmem:[#allocation16 + $0x38] sm:$0xff]  }
0x1b8f   : > { %6826 = vmatpush3.bf16.msra.mxu1 %v8480_v41  ;;  %6821 = vmatprep.mubr.msk.bf16.mxu0 %vm7695_vm0, %v7694_v44  ;;  %v7265_v41 = vld [vmem:[#allocation17 + $0x38] sm:$0xff]  }
0x1b90   : > { %v7212_v16 = vpop.eup %7211  ;;  %6827 = vmatprep.mubr.msk.bf16.mxu1 %vm7695_vm0, %v7694_v44  ;;  %6831 = vmatprep.subr.bf16.mxu0 %v7694_v44 }
0x1b91   : > { %v7214_v50 = vpop.eup %7213  ;;  %v5405_v61 = vmul.f32 %v7212_v16, %v7204_v32  ;;  %6851 = vmatprep.subr.bf16.mxu1 %v7694_v44 }
0x1b92   : > { %v5406_v59 = vmul.f32 %v7214_v50, %v7206_v7 }
0x1b93   : > { %v5409_v60 = vpack.c.bf16 %v5405_v61, %v5405_v61 }
0x1b94   : > { %v5410_v55 = vpack.c.bf16 %v5406_v59, %v5406_v59 }
0x1b95   : > { %6822 = vmatmul.mubr.msk.bf16.vlgmr.msra.gmra.mxu0 %vm2188_vm2, %v5409_v60 }
0x1b96   : > { %6828 = vmatmul.mubr.msk.bf16.vlgmr.msra.gmra.mxu1 %vm2188_vm2, %v5410_v55  ;;  %6832 = vmatpush3.bf16.msra.mxu0 %v7264_v38 }
0x1b97   : > { %6833 = vmatprep.subr.bf16.mxu0 %v7694_v44  ;;  %6847 = vmatprep.mubr.msk.bf16.mxu0 %vm7695_vm0, %v7694_v44 }
0x1b98   : > { %6852 = vmatpush3.bf16.msra.mxu1 %v7265_v41  ;;  %6867 = vmatprep.mubr.msk.bf16.mxu1 %vm7695_vm0, %v7694_v44 }
0x1b99   : > { %6853 = vmatprep.subr.bf16.mxu1 %v7694_v44 }
0x1b9a   : > { %6834 = vmatpush3.bf16.msra.mxu0 %v7266_v62 }
0x1b9b   : > { %6835 = vmatprep.subr.bf16.mxu0 %v7694_v44 }
0x1b9c   : > { %6854 = vmatpush3.bf16.msra.mxu1 %v7267_v1 }
0x1b9d   : > { %6855 = vmatprep.subr.bf16.mxu1 %v7694_v44 }
0x1b9e   : > { %6836 = vmatpush3.bf16.msra.mxu0 %v7268_v2 }
0x1b9f   : > { %6837 = vmatprep.subr.bf16.mxu0 %v7694_v44 }
0x1ba0   : > { %6856 = vmatpush3.bf16.msra.mxu1 %v7269_v35 }
0x1ba1   : > { %6857 = vmatprep.subr.bf16.mxu1 %v7694_v44 }
0x1ba2   : > { %6838 = vmatpush3.bf16.msra.mxu0 %v7270_v23 }
0x1ba3   : > { %6839 = vmatprep.subr.bf16.mxu0 %v7694_v44 }
0x1ba4   : > { %6858 = vmatpush3.bf16.msra.mxu1 %v7271_v47 }
0x1ba5   : > { %6859 = vmatprep.subr.bf16.mxu1 %v7694_v44 }
0x1ba6   : > { %6840 = vmatpush3.bf16.msra.mxu0 %v7272_v63 }
0x1ba7   : > { %6841 = vmatprep.subr.bf16.mxu0 %v7694_v44 }
0x1ba8   : > { %6860 = vmatpush3.bf16.msra.mxu1 %v7273_v39 }
0x1ba9   : > { %6861 = vmatprep.subr.bf16.mxu1 %v7694_v44 }
0x1baa   : > { %6842 = vmatpush3.bf16.msra.mxu0 %v7274_v43 }
0x1bab   : > { %6843 = vmatprep.subr.bf16.mxu0 %v7694_v44 }
0x1bac   : > { %6862 = vmatpush3.bf16.msra.mxu1 %v7275_v3 }
0x1bad   : > { %6863 = vmatprep.subr.bf16.mxu1 %v7694_v44 }
0x1bae   : > { %6844 = vmatpush3.bf16.msra.mxu0 %v7276_v40 }
0x1baf   : > { %6845 = vmatprep.subr.bf16.mxu0 %v7694_v44 }
0x1bb0   : > { %6864 = vmatpush3.bf16.msra.mxu1 %v7277_v36 }
0x1bb1   : > { %6865 = vmatprep.subr.bf16.mxu1 %v7694_v44 }
0x1bb2   : > { %6846 = vmatpush3.bf16.msra.mxu0 %v7278_v10 }
0x1bb3   : > { %6871 = vmatprep.subr.bf16.mxu0 %v7694_v44 }
0x1bb4   : > { %6866 = vmatpush3.bf16.msra.mxu1 %v7279_v8 }
0x1c4d   : > { %v5448_v12 = vpop.f32.mrf.mxu0 }
0x1c4e   : > { %v5491_v19 = vpop.f32.mrf.mxu1 }
0x1c4f   : > { %v6811_v6 = vpop.f32.mrf.mxu0 }
0x1c50   : > { %v6817_v31 = vpop.f32.mrf.mxu1  ;;  %v7280_v6 = vld [vmem:[#allocation19 + $0x38] sm:$0xff]  }
0x1c51   : > { %v5451_v14 = vpop.f32.mrf.mxu0  ;;  %v7281_v31 = vld [vmem:[#allocation19 + $0x30] sm:$0xff]  }
0x1c52   : > { %v5494_v15 = vpop.f32.mrf.mxu1  ;;  %v7282_v14 = vld [vmem:[#allocation19 + $0x28] sm:$0xff]  }
0x1c53   : > { %v6812_v51 = vpop.f32.mrf.mxu0  ;;  %v7283_v15 = vld [vmem:[#allocation19 + $0x20] sm:$0xff]  }
0x1c54   : > { %v6818_v17 = vpop.f32.mrf.mxu1  ;;  %v7284_v51 = vld [vmem:[#allocation19 + $0x18] sm:$0xff]  }
0x1c55   : > { %v5534_v18 = vpop.f32.mrf.mxu0  ;;  %v7285_v17 = vld [vmem:[#allocation19 + $0x10] sm:$0xff]  }
0x1c56   : > { %v5583_v28 = vcombine.low %v5448_v12, %v5534_v18  ;;  %v5584_v27 = vcombine.high %v5448_v12, %v5534_v18  ;;  %v5577_v57 = vpop.f32.mrf.mxu1  ;;  %v7286_v18 = vld [vmem:[#allocation19 + $0x8] sm:$0xff]  }
0x1c57   : > { %v5599_v20 = vcombine.low %v5491_v19, %v5577_v57  ;;  %v5600_v22 = vcombine.high %v5491_v19, %v5577_v57  ;;  %v6823_v24 = vpop.f32.mrf.mxu0  ;;  %v7288_v57 = vld [vmem:[%s9027_s8] ss:$0 sm:$0xff] }
0x1c58   : > { %v5591_v26 = vrot.slane %v5583_v28, %v8118_v4  ;;  %v5598_v25 = vrot.slane %v5584_v27, %v8118_v4  ;;  %v6829_v33 = vpop.f32.mrf.mxu1  ;;  %v7287_v28 = vld [vmem:[#allocation19] sm:$0xff]  }
0x1c59   : > { %v5607_v29 = vrot.slane %v5599_v20, %v8118_v4  ;;  %v5614_v32 = vrot.slane %v5600_v22, %v8118_v4  ;;  %v5537_v7 = vpop.f32.mrf.mxu0 }
0x1c5a   : > { %v5580_v13 = vpop.f32.mrf.mxu1 }
0x1c5b   : > { %v5615_v34 = vcombine.low %v5591_v26, %v5607_v29  ;;  %v5616_v37 = vcombine.high %v5591_v26, %v5607_v29  ;;  %v5631_v42 = vcombine.low %v5598_v25, %v5614_v32  ;;  %v5632_v45 = vcombine.high %v5598_v25, %v5614_v32  ;;  %v6824_v54 = vpop.f32.mrf.mxu0 }
0x1c5c   : > { %v6830_v48 = vpop.f32.mrf.mxu1 }
0x1c5d   : > { %v5623_v49 = vrot.slane %v5615_v34, %v8123_v11  ;;  %v5630_v52 = vrot.slane %v5616_v37, %v8123_v11  ;;  %v5639_v56 = vrot.slane %v5631_v42, %v8123_v11  ;;  %v5646_v58 = vrot.slane %v5632_v45, %v8123_v11 }
0x1c5f   : > { %v5651_v30 = vcombine.low %v5623_v49, %v5630_v52  ;;  %v6281_v16 = vcombine.high %v5623_v49, %v5630_v52  ;;  %v5667_v50 = vcombine.low %v5639_v56, %v5646_v58  ;;  %v6282_v61 = vcombine.high %v5639_v56, %v5646_v58  ;;  %v7289_v58 = vld [vmem:[%s9028_s5] ss:$0 sm:$0xff] }
0x1c61   : > { %v5658_v59 = vrot.slane %v5651_v30, %v8118_v4  ;;  %v5666_v60 = vrot.slane %v6281_v16, %v8118_v4  ;;  %v5674_v55 = vrot.slane %v5667_v50, %v8118_v4  ;;  %v5682_v38 = vrot.slane %v6282_v61, %v8118_v4 }
0x1c63   : > { %v5684_v41 = vcombine.high %v5658_v59, %v5666_v60  ;;  %v5700_v62 = vcombine.high %v5674_v55, %v5682_v38  ;;  %v5683_v1 = vcombine.low %v5658_v59, %v5666_v60  ;;  %v5699_v2 = vcombine.low %v5674_v55, %v5682_v38 }
0x1c65   : > { %v5698_v35 = vrot.slane %v5684_v41, %v8123_v11  ;;  %v5714_v23 = vrot.slane %v5700_v62, %v8123_v11  ;;  %v5691_v47 = vrot.slane %v5683_v1, %v8123_v11  ;;  %v5707_v63 = vrot.slane %v5699_v2, %v8123_v11 }
0x1c67   : > { %v5717_v39 = vcombine.low %v5698_v35, %v5714_v23  ;;  %v5716_v43 = vcombine.high %v5691_v47, %v5707_v63  ;;  %v5715_v3 = vcombine.low %v5691_v47, %v5707_v63  ;;  %v5718_v4 = vcombine.high %v5698_v35, %v5714_v23 }
0x1c69   : > { %5724 = vrot.lane.b32.xlu1 %v5717_v39, %s7693_s15  ;;  %5720 = vrot.lane.b32.xlu0 %v5716_v43, %s7691_s23  ;;  %s5931_s23 = sshll.u32 %s753_s2, 4  ;;  %s5932_s23 = int_to_ptr.vmem [resolvable:$true] %s5931_s23 }
0x1c6a   : > { %s7583_s20 = scalar_lea.vmem %s5932_s23, 128  ;;  %p7590_p11 = scmp.lt.s32.totalorder %s5932_s23, %s7588_s19 }
0x1c6b   : > { %p7584_p1 = scmp.ne.s32.totalorder %s5932_s23, %s7583_s20  ;;  %p7591_p6 = scmp.lt.s32.totalorder %s7589_s1, %s7583_s20 }
0x1c6d   : > { %5728 = vrot.lane.b32.xlu1 %v5718_v4, %s7692_s21  ;;  %p7585_p2 = pnand %p7584_p1, %p9031_p3  ;;  %p7592_p9 = por %p7591_p6, %p7590_p11 }
0x1c6f   : > { %p7586_p10 = pneg %p7585_p2 }
0x1c71   : > { %p7593_p12 = pnand %p7592_p9, %p7586_p10 }
0x1cdb   : > { %v5725_v40 = vpop.permute.xlu1 %5724  ;;  %v5721_v36 = vpop.permute.xlu0 %5720 }
0x1cdc   : > { %v5731_v10 = vsel %vm2003_vm1, %v5715_v3, %v5721_v36 }
0x1cdd   : > { %v5732_v12 = vsel %vm2571_vm4, %v5731_v10, %v5725_v40 }
0x1cdf   : > { %v5729_v8 = vpop.permute.xlu1 %5728 }
0x1ce0   : > { %v5733_v19 = vsel %vm2573_vm5, %v5732_v12, %v5729_v8 }
0x1ce1   : > { %v5734_v11 = vpack.c.bf16 %v5733_v19, %v5733_v19 }
0x1ce3   : > { %6848 = vmatmul.mubr.bf16.vlgmr.msra.gmra.mxu0 %v5734_v11 }
0x1ce4   : > { %6872 = vmatpush3.bf16.msra.mxu0 %v7280_v6  ;;  %6887 = vmatprep.mubr.msk.bf16.mxu0 %vm7695_vm0, %v7694_v44 }
0x1ce5   : > { %6873 = vmatprep.subr.bf16.mxu0 %v7694_v44 }
0x1ce8   : > { %6874 = vmatpush3.bf16.msra.mxu0 %v7281_v31 }
0x1ce9   : > { %6875 = vmatprep.subr.bf16.mxu0 %v7694_v44 }
0x1cec   : > { %6876 = vmatpush3.bf16.msra.mxu0 %v7282_v14 }
0x1ced   : > { %6877 = vmatprep.subr.bf16.mxu0 %v7694_v44 }
0x1cf0   : > { %6878 = vmatpush3.bf16.msra.mxu0 %v7283_v15 }
0x1cf1   : > { %6879 = vmatprep.subr.bf16.mxu0 %v7694_v44 }
0x1cf4   : > { %6880 = vmatpush3.bf16.msra.mxu0 %v7284_v51 }
0x1cf5   : > { %6881 = vmatprep.subr.bf16.mxu0 %v7694_v44 }
0x1cf8   : > { %6882 = vmatpush3.bf16.msra.mxu0 %v7285_v17 }
0x1cf9   : > { %6883 = vmatprep.subr.bf16.mxu0 %v7694_v44 }
0x1cfc   : > { %6884 = vmatpush3.bf16.msra.mxu0 %v7286_v18 }
0x1cfd   : > { %6885 = vmatprep.subr.bf16.mxu0 %v7694_v44 }
0x1d00   : > { %6886 = vmatpush3.bf16.msra.mxu0 %v7287_v28 }
0x1da3   : > { %v5769_v27 = vpop.f32.mrf.mxu0 }
0x1da4   : > { %v5770_v20 = vadd.f32 %v7288_v57, %v5769_v27 }
0x1da5   : > { %v6849_v22 = vpop.f32.mrf.mxu0 }
0x1da6   : > { %v5775_v24 = vadd.f32 %v5770_v20, %v8772_v9  ;;  %v7292_v22 = vld [vmem:[%s8966_s17] sm:$0xf] }
0x1da7   : > { %v5772_v26 = vpop.f32.mrf.mxu0 }
0x1da8   : > { %5776 = vadd.xlane.f32.xlu0 %v5775_v24 }
0x1da9   : > { %v6850_v25 = vpop.f32.mrf.mxu0 }
0x1e31   : > { %v5777_v33 = vpop.xlane.xlu0 %5776 }
0x1e32   : > { %v5778_v29 = vmul.f32 0.03125, %v5777_v33 }
0x1e34   : > { %v5779_v32 = vsub.f32 %v5775_v24, %v5778_v29  ;;  %v5783_v44 = vmul.f32 96.0, %v5778_v29 }
0x1e36   : > { %v5780_v7 = vmul.f32 %v5779_v32, %v5779_v32  ;;  %v5784_v13 = vmul.f32 %v5783_v44, %v5778_v29 }
0x1e38   : > { %5781 = vadd.xlane.f32.xlu1 %v5780_v7 }
0x1ec1   : > { %v5782_v34 = vpop.xlane.xlu1 %5781 }
0x1ec2   : > { %v5785_v37 = vsub.f32 %v5782_v34, %v5784_v13 }
0x1ec4   : > { %v5786_v42 = vmul.f32 0.03125, %v5785_v37 }
0x1ec6   : > { %v5787_v45 = vadd.f32 1e-05, %v5786_v42 }
0x1ec8   : > { %7215 = vrsqrt.f32 %v5787_v45 }
0x1ed5   : > { %v7216_v54 = vpop.eup %7215 }
0x1ed6   : > { %v5789_v48 = vmul.f32 %v7216_v54, %v5779_v32 }
0x1ed8   : > { %v5790_v49 = vmul.f32 %v5789_v48, %v8549_v46  ;;  %v7290_v46 = vld [vmem:[%s9029_s26] ss:$0 sm:$0xff] }
0x1eda   : > { %v5791_v9 = vadd.f32 %v5790_v49, %v8553_v53 }
0x1edc   : > { %v5792_v52 = vpack.c.bf16 %v5791_v9, %v5791_v9 }
0x1ede   : > { %6868 = vmatmul.mubr.bf16.vlgmr.msra.gmra.mxu1 %v5792_v52 }
0x1f9e   : > { %v5827_v56 = vpop.f32.mrf.mxu1 }
0x1f9f   : > { %v5828_v30 = vadd.f32 %v7289_v58, %v5827_v56 }
0x1fa0   : > { %v6869_v16 = vpop.f32.mrf.mxu1 }
0x1fa1   : > { %v5833_v50 = vmax.f32 %v5828_v30, 0.0 }
0x1fa2   : > { %v5830_v61 = vpop.f32.mrf.mxu1 }
0x1fa3   : > { %v5834_v59 = vpack.c.bf16 %v5833_v50, %v5833_v50 }
0x1fa4   : > { %v6870_v60 = vpop.f32.mrf.mxu1 }
0x1fa5   : > { %6888 = vmatmul.mubr.bf16.vlgmr.msra.gmra.mxu0 %v5834_v59 }
0x2065   : > { %v5869_v55 = vpop.f32.mrf.mxu0 }
0x2066   : > { %v5870_v53 = vadd.f32 %v7290_v46, %v5869_v55 }
0x2067   : > { %v6889_v38 = vpop.f32.mrf.mxu0 }
0x2068   : > { %v5875_v41 = vadd.f32 %v5870_v53, %v5791_v9 }
0x2069   : > { %v5872_v62 = vpop.f32.mrf.mxu0 }
0x206a   : > { %5876 = vadd.xlane.f32.xlu0 %v5875_v41 }
0x206b   : > { %v6890_v1 = vpop.f32.mrf.mxu0 }
0x20f3   : > { %v5877_v2 = vpop.xlane.xlu0 %5876 }
0x20f4   : > { %v5878_v35 = vmul.f32 0.03125, %v5877_v2 }
0x20f6   : > { %v5879_v23 = vsub.f32 %v5875_v41, %v5878_v35  ;;  %v5883_v63 = vmul.f32 96.0, %v5878_v35 }
0x20f8   : > { %v5880_v47 = vmul.f32 %v5879_v23, %v5879_v23  ;;  %v5884_v39 = vmul.f32 %v5883_v63, %v5878_v35 }
0x20fa   : > { %5881 = vadd.xlane.f32.xlu0 %v5880_v47 }
0x2183   : > { %v5882_v43 = vpop.xlane.xlu0 %5881 }
0x2184   : > { %v5885_v3 = vsub.f32 %v5882_v43, %v5884_v39 }
0x2186   : > { %v5886_v4 = vmul.f32 0.03125, %v5885_v3 }
0x2188   : > { %v5887_v40 = vadd.f32 1e-05, %v5886_v4 }
0x218a   : > { %7217 = vrsqrt.f32 %v5887_v40 }
0x2197   : > { %v7218_v36 = vpop.eup %7217 }
0x2198   : > { %v5889_v10 = vmul.f32 %v7218_v36, %v5879_v23 }
0x219a   : > { %v5890_v8 = vmul.f32 %v5889_v10, %v8584_v5  ;;  %v5908_v5 = vsub.s32 3, %v8062_v21 }
0x219c   : > { %v5891_v12 = vadd.f32 %v5890_v8, %v8588_v0  ;;  %v7291_v0 = vld [vmem:[%s8965_s16] sm:$0xf]  ;;  %v5914_v24 = vrot.slane %v7292_v22, %v5908_v5 }
0x219d   : > { %v5909_v27 = vrot.slane %v7291_v0, %v5908_v5 }
0x219e   : > { %5892 = vadd.xlane.f32.xlu1 %v5891_v12 }
0x2227   : > { %v5893_v19 = vpop.xlane.xlu1 %5892 }
0x2228   : > { %v5894_v11 = vmul.f32 0.03125, %v5893_v19 }
0x222a   : > { %v5895_v6 = vsub.f32 %v5891_v12, %v5894_v11  ;;  %v5899_v14 = vmul.f32 96.0, %v5894_v11 }
0x222c   : > { %v5896_v31 = vmul.f32 %v5895_v6, %v5895_v6  ;;  %v5900_v15 = vmul.f32 %v5899_v14, %v5894_v11 }
0x222e   : > { %5897 = vadd.xlane.f32.xlu0 %v5896_v31 }
0x22b7   : > { %v5898_v51 = vpop.xlane.xlu0 %5897 }
0x22b8   : > { %v5901_v17 = vsub.f32 %v5898_v51, %v5900_v15 }
0x22ba   : > { %v5902_v18 = vmul.f32 0.03125, %v5901_v17 }
0x22bc   : > { %v5903_v28 = vadd.f32 1e-05, %v5902_v18 }
0x22be   : > { %7219 = vrsqrt.f32 %v5903_v28 }
0x22cb   : > { %v7220_v57 = vpop.eup %7219 }
0x22cc   : > { %v5905_v20 = vmul.f32 %v7220_v57, %v5895_v6 }
0x22ce   : > { %v5910_v26 = vmul.f32 %v5909_v27, %v5905_v20 }
0x22d0   : > { %v5915_v25 = vadd.f32 %v5914_v24, %v5910_v26 }
0x22d2   : > { %5916 = vst [vmem:[%s753_s2] sm:$0xff] %v5915_v25 }
0x22d3   : > { %7596 = shalt.err (!%p7593_p12)
}
0x22d4   : > { %s7597_s14 = scalar_lea.hbm %s5929_s0, 128  ;;  %s7601_s7 = scalar_lea.hbm %s9030_s11, 256 }
0x22d5   : > { %p7598_p0 = scmp.ne.s32.totalorder %s5929_s0, %s7597_s14  ;;  %p7602_p8 = scmp.lt.s32.totalorder %s5929_s0, %s9030_s11 }
0x22d6   : > { %p7603_p7 = scmp.lt.s32.totalorder %s7601_s7, %s7597_s14 }
0x22d7   : > { %p7599_p4 = pnand %p7598_p0, %p9031_p3 }
0x22d8   : > { %p7604_p13 = por %p7603_p7, %p7602_p8 }
0x22d9   : > { %p7600_p5 = pneg %p7599_p4 }
0x22db   : > { %p7605_p1 = pnand %p7604_p13, %p7600_p5 }
0x22dd   : > { %7608 = shalt.err (!%p7605_p1)
}
0x22de   : > { %6931 = dma.vmem_to_hbm [thread:$0]  (%p9031_p3), %s5932_s23, 128, %s5929_s0, %s5918_s3  }
0x22df PF: > { %s5943_s15 = sand.u32 1, %s7659_s27   ;;  %p9032_p2 = scmp.ne.s32.totalorder %s9010_s24, 0 }
0x22e0   : > { %p9033_p10 = scmp.ge.s32.totalorder %s7671_s30, 2  ;;  %s5944_s20 = scalar_lea.sflag [#allocation4], %s5943_s15 }
0x22e2   : > { %p6969_p11 = pnand %p9033_p10, %p9032_p2 }
0x22e4   : > { %p6970_p6 = pneg %p6969_p11 }
0x22e6   : > { %7654 = dma.done.wait (%p6970_p6), %s5944_s20, 128  }
0x22e7   : > { %7656 = vsyncadd (%p6970_p6), %s5944_s20, 4294967168  ;;  %s9034_s4 = sld [smem:[#allocation29_spill]]  ;;  %p38_p9 = scmp.ge.s32.totalorder %s7927_s25, 4  }
0x22e8   : > { %s9035_s27 = smov %s7663_s28  ;;  %s9036_s28 = smov %s7667_s29 }
0x22e9   : > { %s9038_s30 = smov %s7927_s25  ;;  %40 = sbr.rel (!%p38_p9) target bundleno = 28 (0x1c), region = 186 }
0x22ed   : > { %s9037_s29 = smov %s9034_s4 }
0x22ee   :  { %5949 = vsyncpa [#allocation3], 1 }
0x22ef   :  { %5951 = vsyncpa [#allocation3 + $0x1], 1 }
0x22f0   :  { %5952 = vsyncpa [#allocation6], 1 }
0x22f1   :  { %5954 = vsyncpa [#allocation6 + $0x1], 1 }
0x22f2   :  { %5955 = vsyncpa [#allocation9], 1 }
0x22f3   :  { %5956 = vsyncpa [#allocation12], 1 }
0x22f4   :  { %5957 = vsyncpa [#allocation15], 1 }
0x22f5   :  { %5958 = vsyncpa [#allocation18], 1 }
0x22f6   :  { %5959 = vsyncpa [#allocation4], 1 }
0x22f7   :  { %5961 = vsyncpa [#allocation4 + $0x1], 1 }

</bundles_post_ra>
